<compile_context>
chip_gen: v7x
topology: tpu7x:2x2x1
jax: 0.10.0
libtpu: 0.0.40
codegen_flags: <defaults>
</compile_context>

<pallas_src>
import functools

import jax
import jax.numpy as jnp
from jax.experimental import pallas as pl
from jax.experimental.pallas import tpu as pltpu

EPS = 1e-5
LANE = 128                     # channel dims padded to the 128-lane width
MXU_DTYPE = jnp.bfloat16       # MXU operand dtype; accumulation stays f32
VMEM_LIMIT = 32 * 1024 * 1024  # explicit scoped-VMEM cap (safe on v5e/v6e/v7x)


def _round_up(x, m):
    return (x + m - 1) // m * m


# ----------------------------- kernels ---------------------------------------
def conv_bn_stats_kernel(xp_ref, w_ref, b_ref, pn_ref, y_ref, ps_ref, *,
                         pre_norm, tile_h):
    """One (image, row-tile) grid step:
       [optional fused BN+ReLU of the previous stage on load] ->
       3x3 conv as a single im2col MXU matmul + bias ->
       raw conv output tile + per-tile BN partial sums.

    xp_ref: (1, H+2, W+2, CI)  spatially padded image (resident across tiles)
    w_ref : (9*CI, CO)         im2col-packed weights (MXU dtype)
    b_ref : (1, CO)            conv bias (f32)
    pn_ref: (2, CI)            folded scale/shift of previous BN; ignored if
                               pre_norm=False
    y_ref : (1, TH, W, CO)     raw conv output tile (f32)
    ps_ref: (1, 1, 2, CO)      [sum, sum-of-squares] over this tile (f32)
    """
    _, hp, wp, ci = xp_ref.shape
    h, w = hp - 2, wp - 2
    co = y_ref.shape[-1]
    th = tile_h
    t = pl.program_id(1)

    row0 = pl.multiple_of(t * th, th)
    xt = xp_ref[0, pl.ds(row0, th + 2)]               # (TH+2, W+2, CI) f32

    if pre_norm:
        # Fused BatchNorm+ReLU of the previous stage, applied on load (f32).
        xt = jnp.maximum(xt * pn_ref[0] + pn_ref[1], 0.0)
        # The HBM halo zeros stand for zeros of the *normalized* activation,
        # so re-zero the border after the affine+ReLU.
        r = row0 + jax.lax.broadcasted_iota(jnp.int32, (th + 2, wp, 1), 0)
        c = jax.lax.broadcasted_iota(jnp.int32, (th + 2, wp, 1), 1)
        valid = (r >= 1) & (r <= h) & (c >= 1) & (c <= w)
        xt = jnp.where(valid, xt, 0.0)

    # im2col: 9 shifted views, cast to MXU dtype, concatenated on the lane
    # axis -> ONE dense matmul instead of 9 sliver matmuls.
    cols = []
    for kh in range(3):
        for kw in range(3):
            cols.append(
                xt[kh:kh + th, kw:kw + w, :].reshape(th * w, ci)
                .astype(MXU_DTYPE))
    patch = jnp.concatenate(cols, axis=-1)             # (TH*W, 9*CI)

    acc = jnp.dot(patch, w_ref[...], preferred_element_type=jnp.float32)
    acc = acc + b_ref[...]                             # (TH*W, CO) f32

    y_ref[...] = acc.reshape(1, th, w, co)
    # BN partial statistics in f32; finalized (folded with gamma/beta) outside.
    ps_ref[0, 0, 0:1, :] = jnp.sum(acc, axis=0, keepdims=True)
    ps_ref[0, 0, 1:2, :] = jnp.sum(acc * acc, axis=0, keepdims=True)


def norm_relu_kernel(y_ref, ss_ref, o_ref):
    """Folded BatchNorm (scale/shift) + ReLU, one FMA + max per element."""
    o_ref[...] = jnp.maximum(y_ref[...] * ss_ref[0] + ss_ref[1], 0.0)


# ------------------------- pallas_call builders -------------------------------
def conv_bn_stats(xp, wmat, bias, prenorm, *, pre_norm, tile_h):
    n, hp, wp, ci = xp.shape
    h, w = hp - 2, wp - 2
    kc, co = wmat.shape
    n_tiles = h // tile_h
    kernel = functools.partial(conv_bn_stats_kernel, pre_norm=pre_norm,
                               tile_h=tile_h)
    return pl.pallas_call(
        kernel,
        out_shape=(jax.ShapeDtypeStruct((n, h, w, co), jnp.float32),
                   jax.ShapeDtypeStruct((n, n_tiles, 2, co), jnp.float32)),
        grid_spec=pltpu.PrefetchScalarGridSpec(
            num_scalar_prefetch=0,
            grid=(n, n_tiles),
            in_specs=[
                # full padded image; same block across the tile axis => fetched
                # once per image and kept resident while output tiles pipeline
                pl.BlockSpec((1, hp, wp, ci), lambda i, j: (i, 0, 0, 0)),
                pl.BlockSpec((kc, co), lambda i, j: (0, 0)),
                pl.BlockSpec((1, co), lambda i, j: (0, 0)),
                pl.BlockSpec((2, ci), lambda i, j: (0, 0)),
            ],
            out_specs=[
                pl.BlockSpec((1, tile_h, w, co), lambda i, j: (i, j, 0, 0)),
                pl.BlockSpec((1, 1, 2, co), lambda i, j: (i, j, 0, 0)),
            ],
        ),
        compiler_params=pltpu.CompilerParams(
            dimension_semantics=("parallel", "parallel"),
            vmem_limit_bytes=VMEM_LIMIT),
    )(xp, wmat, bias, prenorm)


def norm_relu(y, ss, *, tile_h):
    n, h, w, co = y.shape
    n_tiles = h // tile_h
    return pl.pallas_call(
        norm_relu_kernel,
        out_shape=jax.ShapeDtypeStruct((n, h, w, co), jnp.float32),
        grid_spec=pltpu.PrefetchScalarGridSpec(
            num_scalar_prefetch=0,
            grid=(n, n_tiles),
            in_specs=[
                pl.BlockSpec((1, tile_h, w, co), lambda i, j: (i, j, 0, 0)),
                pl.BlockSpec((2, co), lambda i, j: (0, 0)),
            ],
            out_specs=pl.BlockSpec((1, tile_h, w, co),
                                   lambda i, j: (i, j, 0, 0)),
        ),
        compiler_params=pltpu.CompilerParams(
            dimension_semantics=("parallel", "parallel"),
            vmem_limit_bytes=VMEM_LIMIT),
    )(y, ss)


# ------------------------------ wrapper ---------------------------------------
def _pack_weights(w_oihw, ci_pad, co_pad):
    o, i, kh, kw = w_oihw.shape
    w = jnp.transpose(w_oihw, (2, 3, 1, 0))                      # OIHW -> HWIO
    w = jnp.pad(w, ((0, 0), (0, 0), (0, ci_pad - i), (0, co_pad - o)))
    return w.reshape(kh * kw * ci_pad, co_pad).astype(MXU_DTYPE)


def _pad_vec(v, cp):
    return jnp.pad(v, (0, cp - v.shape[0]))


def _finalize_bn(ps, gamma_p, beta_p, count):
    """Per-tile [sum, sumsq] -> folded (scale, shift) so that
       y*scale + shift == (y - mean) * rsqrt(var + eps) * gamma + beta
       (training-mode BatchNorm2d, biased variance)."""
    s = jnp.sum(ps, axis=(0, 1))                 # (2, CP) f32
    mean = s[0] / count
    var = s[1] / count - mean * mean
    scale = gamma_p * jax.lax.rsqrt(var + EPS)
    shift = beta_p - mean * scale
    return jnp.stack([scale, shift], axis=0)     # (2, CP)


@jax.jit
def double_conv(x_nchw, w1, b1, g1, be1, w2, b2, g2, be2):
    """DoubleConv forward pass. Input/output are NCHW like PyTorch."""
    n, cin, h, w = x_nchw.shape
    cout = w1.shape[0]
    ci_pad = _round_up(cin, LANE)
    co_pad = _round_up(cout, LANE)
    tile_h = 8 if h % 8 == 0 else h
    count = n * h * w

    # glue: NCHW -> NHWC, lane-dense channel pad, 1-px spatial halo pad
    x = jnp.transpose(x_nchw, (0, 2, 3, 1)).astype(jnp.float32)
    x = jnp.pad(x, ((0, 0), (1, 1), (1, 1), (0, ci_pad - cin)))
    # TODO(synk): for large H,W produce the 1-px halo inside the kernel
    # (Element-indexed / manually DMA'd halo blocks) instead of HBM-side jnp.pad.

    w1m = _pack_weights(w1, ci_pad, co_pad)
    w2m = _pack_weights(w2, co_pad, co_pad)
    b1p = _pad_vec(b1, co_pad).reshape(1, co_pad)
    b2p = _pad_vec(b2, co_pad).reshape(1, co_pad)
    g1p, be1p = _pad_vec(g1, co_pad), _pad_vec(be1, co_pad)
    g2p, be2p = _pad_vec(g2, co_pad), _pad_vec(be2, co_pad)

    no_prenorm = jnp.zeros((2, ci_pad), jnp.float32)   # unused when pre_norm=False

    # stage 1: conv1 + bias, per-tile BN partial stats
    y1_raw, ps1 = conv_bn_stats(x, w1m, b1p, no_prenorm,
                                pre_norm=False, tile_h=tile_h)
    ss1 = _finalize_bn(ps1, g1p, be1p, count)          # folded BN1 scale/shift

    # stage 2: BN1+ReLU fused into conv2's load path, conv2 + bias + stats
    y1_pad = jnp.pad(y1_raw, ((0, 0), (1, 1), (1, 1), (0, 0)))
    y2_raw, ps2 = conv_bn_stats(y1_pad, w2m, b2p, ss1,
                                pre_norm=True, tile_h=tile_h)
    ss2 = _finalize_bn(ps2, g2p, be2p, count)

    # final BN2 + ReLU (tiled elementwise pass), then back to NCHW
    out = norm_relu(y2_raw, ss2, tile_h=tile_h)
    return jnp.transpose(out[..., :cout], (0, 3, 1, 2))


# ----------------------------- reference (plain JAX) --------------------------
def _ref_stage(x, w_oihw, b, g, be):
    y = jax.lax.conv_general_dilated(
        x, w_oihw, window_strides=(1, 1), padding="SAME",
        dimension_numbers=("NCHW", "OIHW", "NCHW"))
    y = y + b[None, :, None, None]
    mean = jnp.mean(y, axis=(0, 2, 3), keepdims=True)
    var = jnp.mean((y - mean) ** 2, axis=(0, 2, 3), keepdims=True)
    y = (y - mean) * jax.lax.rsqrt(var + EPS)
    y = y * g[None, :, None, None] + be[None, :, None, None]
    return jnp.maximum(y, 0.0)


def ref_double_conv(x, w1, b1, g1, be1, w2, b2, g2, be2):
    return _ref_stage(_ref_stage(x, w1, b1, g1, be1), w2, b2, g2, be2)


if __name__ == "__main__":
    key = jax.random.PRNGKey(0)
    N, Cin, Cout, H, W = 2, 4, 8, 16, 16

    k1, k2, k3, k4, kx = jax.random.split(key, 5)
    fan1, fan2 = float(Cin * 9), float(Cout * 9)
    # deterministic synthetic params (shapes match nn.Conv2d / nn.BatchNorm2d)
    w1 = jax.random.uniform(k1, (Cout, Cin, 3, 3), jnp.float32, -1, 1) / jnp.sqrt(fan1)
    b1 = jax.random.uniform(k2, (Cout,), jnp.float32, -1, 1) / jnp.sqrt(fan1)
    w2 = jax.random.uniform(k3, (Cout, Cout, 3, 3), jnp.float32, -1, 1) / jnp.sqrt(fan2)
    b2 = jax.random.uniform(k4, (Cout,), jnp.float32, -1, 1) / jnp.sqrt(fan2)
    g1 = jnp.ones((Cout,), jnp.float32)
    be1 = jnp.zeros((Cout,), jnp.float32)     # BatchNorm2d default affine init
    g2 = jnp.ones((Cout,), jnp.float32)
    be2 = jnp.zeros((Cout,), jnp.float32)

    x = jax.random.normal(kx, (N, Cin, H, W), jnp.float32)   # NCHW like PyTorch

    out = jax.block_until_ready(double_conv(x, w1, b1, g1, be1, w2, b2, g2, be2))
    ref = ref_double_conv(x, w1, b1, g1, be1, w2, b2, g2, be2)

    assert out.shape == ref.shape == (N, Cout, H, W)
    max_err = float(jnp.max(jnp.abs(out - ref)))
    # bf16 MXU operands (f32 accumulation + f32 BN stats) deviate slightly from
    # the all-f32 reference; flip MXU_DTYPE to f32 for bit-tighter matching.
    tol = 1e-3 if MXU_DTYPE == jnp.float32 else 1e-1
    assert max_err < tol, f"max abs err {max_err} (tol {tol})"
    print("KERNEL_OK")
</pallas_src>

<mosaic_0001>
module attributes {stable_mosaic.version = 11 : i64} {
  func.func @conv_bn_stats_kernel(%arg0: i32, %arg1: i32, %arg2: memref<1x18x18x128xf32, #tpu.memory_space<vmem>>, %arg3: memref<1152x128xbf16, #tpu.memory_space<vmem>>, %arg4: memref<1x128xf32, #tpu.memory_space<vmem>>, %arg5: memref<2x128xf32, #tpu.memory_space<vmem>>, %arg6: memref<1x8x16x128xf32, #tpu.memory_space<vmem>>, %arg7: memref<1x1x2x128xf32, #tpu.memory_space<vmem>>) attributes {dimension_semantics = [#tpu.dimension_semantics<parallel>, #tpu.dimension_semantics<parallel>], iteration_bounds = array<i64: 2, 2>, scalar_prefetch = 0 : i64, scratch_operands = 0 : i64, tpu.core_type = #tpu.core_type<tc>, window_params = [{transform_indices = @transform_0, window_bounds = array<i64: 1, 18, 18, 128>}, {pipeline_mode = #tpu.pipeline_mode<synchronous>, transform_indices = @transform_1, window_bounds = array<i64: 1152, 128>}, {pipeline_mode = #tpu.pipeline_mode<synchronous>, transform_indices = @transform_2, window_bounds = array<i64: 1, 128>}, {pipeline_mode = #tpu.pipeline_mode<synchronous>, transform_indices = @transform_3, window_bounds = array<i64: 2, 128>}, {transform_indices = @transform_4, window_bounds = array<i64: 1, 8, 16, 128>}, {transform_indices = @transform_5, window_bounds = array<i64: 1, 1, 2, 128>}]} {
    %c8_i32 = arith.constant 8 : i32
    %0 = arith.muli %arg1, %c8_i32 : i32
    %1 = tpu.assume_multiple %0, 8 : i32
    %c0 = arith.constant 0 : index
    %2 = arith.index_cast %1 : i32 to index
    %c0_0 = arith.constant 0 : index
    %c0_1 = arith.constant 0 : index
    %3 = vector.load %arg2[%c0, %2, %c0_0, %c0_1] : memref<1x18x18x128xf32, #tpu.memory_space<vmem>>, vector<1x10x18x128xf32>
    %4 = vector.shape_cast %3 : vector<1x10x18x128xf32> to vector<10x18x128xf32>
    %5 = vector.extract_strided_slice %4 {offsets = [0, 0, 0], sizes = [8, 16, 128], strides = [1, 1, 1]} : vector<10x18x128xf32> to vector<8x16x128xf32>
    %6 = vector.shape_cast %5 : vector<8x16x128xf32> to vector<128x128xf32>
    %7 = arith.truncf %6 : vector<128x128xf32> to vector<128x128xbf16>
    %8 = vector.extract_strided_slice %4 {offsets = [0, 1, 0], sizes = [8, 16, 128], strides = [1, 1, 1]} : vector<10x18x128xf32> to vector<8x16x128xf32>
    %9 = vector.shape_cast %8 : vector<8x16x128xf32> to vector<128x128xf32>
    %10 = arith.truncf %9 : vector<128x128xf32> to vector<128x128xbf16>
    %11 = vector.extract_strided_slice %4 {offsets = [0, 2, 0], sizes = [8, 16, 128], strides = [1, 1, 1]} : vector<10x18x128xf32> to vector<8x16x128xf32>
    %12 = vector.shape_cast %11 : vector<8x16x128xf32> to vector<128x128xf32>
    %13 = arith.truncf %12 : vector<128x128xf32> to vector<128x128xbf16>
    %14 = vector.extract_strided_slice %4 {offsets = [1, 0, 0], sizes = [8, 16, 128], strides = [1, 1, 1]} : vector<10x18x128xf32> to vector<8x16x128xf32>
    %15 = vector.shape_cast %14 : vector<8x16x128xf32> to vector<128x128xf32>
    %16 = arith.truncf %15 : vector<128x128xf32> to vector<128x128xbf16>
    %17 = vector.extract_strided_slice %4 {offsets = [1, 1, 0], sizes = [8, 16, 128], strides = [1, 1, 1]} : vector<10x18x128xf32> to vector<8x16x128xf32>
    %18 = vector.shape_cast %17 : vector<8x16x128xf32> to vector<128x128xf32>
    %19 = arith.truncf %18 : vector<128x128xf32> to vector<128x128xbf16>
    %20 = vector.extract_strided_slice %4 {offsets = [1, 2, 0], sizes = [8, 16, 128], strides = [1, 1, 1]} : vector<10x18x128xf32> to vector<8x16x128xf32>
    %21 = vector.shape_cast %20 : vector<8x16x128xf32> to vector<128x128xf32>
    %22 = arith.truncf %21 : vector<128x128xf32> to vector<128x128xbf16>
    %23 = vector.extract_strided_slice %4 {offsets = [2, 0, 0], sizes = [8, 16, 128], strides = [1, 1, 1]} : vector<10x18x128xf32> to vector<8x16x128xf32>
    %24 = vector.shape_cast %23 : vector<8x16x128xf32> to vector<128x128xf32>
    %25 = arith.truncf %24 : vector<128x128xf32> to vector<128x128xbf16>
    %26 = vector.extract_strided_slice %4 {offsets = [2, 1, 0], sizes = [8, 16, 128], strides = [1, 1, 1]} : vector<10x18x128xf32> to vector<8x16x128xf32>
    %27 = vector.shape_cast %26 : vector<8x16x128xf32> to vector<128x128xf32>
    %28 = arith.truncf %27 : vector<128x128xf32> to vector<128x128xbf16>
    %29 = vector.extract_strided_slice %4 {offsets = [2, 2, 0], sizes = [8, 16, 128], strides = [1, 1, 1]} : vector<10x18x128xf32> to vector<8x16x128xf32>
    %30 = vector.shape_cast %29 : vector<8x16x128xf32> to vector<128x128xf32>
    %31 = arith.truncf %30 : vector<128x128xf32> to vector<128x128xbf16>
    %32 = tpu.concatenate %7, %10, %13, %16, %19, %22, %25, %28, %31 in 1 : vector<128x128xbf16>, vector<128x128xbf16>, vector<128x128xbf16>, vector<128x128xbf16>, vector<128x128xbf16>, vector<128x128xbf16>, vector<128x128xbf16>, vector<128x128xbf16>, vector<128x128xbf16> -> vector<128x1152xbf16>
    %c0_2 = arith.constant 0 : index
    %c0_3 = arith.constant 0 : index
    %33 = vector.load %arg3[%c0_2, %c0_3] : memref<1152x128xbf16, #tpu.memory_space<vmem>>, vector<1152x128xbf16>
    %cst = arith.constant dense<0.000000e+00> : vector<128x128xf32>
    %34 = tpu.matmul %32, %33, %cst {dimension_numbers = #tpu.dot_dimension_numbers<[1], [0], [0], [1], [0, 0, 1, 1], [], []>} : vector<128x1152xbf16>, vector<1152x128xbf16>, vector<128x128xf32> -> vector<128x128xf32>
    %c0_4 = arith.constant 0 : index
    %c0_5 = arith.constant 0 : index
    %35 = vector.load %arg4[%c0_4, %c0_5] : memref<1x128xf32, #tpu.memory_space<vmem>>, vector<1x128xf32>
    %36 = vector.broadcast %35 : vector<1x128xf32> to vector<128x128xf32>
    %37 = arith.addf %34, %36 : vector<128x128xf32>
    %38 = vector.shape_cast %37 : vector<128x128xf32> to vector<1x8x16x128xf32>
    %c0_6 = arith.constant 0 : index
    %c0_7 = arith.constant 0 : index
    %c0_8 = arith.constant 0 : index
    %c0_9 = arith.constant 0 : index
    %39 = vector.load %arg6[%c0_6, %c0_7, %c0_8, %c0_9] : memref<1x8x16x128xf32, #tpu.memory_space<vmem>>, vector<1x8x16x128xf32>
    tpu.vector_store %arg6[%c0_6, %c0_7, %c0_8, %c0_9], %38 {strides = array<i32>} : memref<1x8x16x128xf32, #tpu.memory_space<vmem>>, vector<1x8x16x128xf32>,
    %cst_10 = arith.constant dense<0.000000e+00> : vector<128xf32>
    %40 = vector.multi_reduction <add>, %37, %cst_10 [0] : vector<128x128xf32> to vector<128xf32>
    %41 = vector.shape_cast %40 : vector<128xf32> to vector<1x128xf32>
    %c0_11 = arith.constant 0 : index
    %c0_12 = arith.constant 0 : index
    %c0_13 = arith.constant 0 : index
    %c0_14 = arith.constant 0 : index
    %42 = vector.load %arg7[%c0_11, %c0_12, %c0_13, %c0_14] : memref<1x1x2x128xf32, #tpu.memory_space<vmem>>, vector<1x1x1x128xf32>
    %43 = vector.shape_cast %42 : vector<1x1x1x128xf32> to vector<1x128xf32>
    %44 = vector.shape_cast %41 : vector<1x128xf32> to vector<1x1x1x128xf32>
    tpu.vector_store %arg7[%c0_11, %c0_12, %c0_13, %c0_14], %44 {strides = array<i32>} : memref<1x1x2x128xf32, #tpu.memory_space<vmem>>, vector<1x1x1x128xf32>,
    %45 = arith.mulf %37, %37 : vector<128x128xf32>
    %cst_15 = arith.constant dense<0.000000e+00> : vector<128xf32>
    %46 = vector.multi_reduction <add>, %45, %cst_15 [0] : vector<128x128xf32> to vector<128xf32>
    %47 = vector.shape_cast %46 : vector<128xf32> to vector<1x128xf32>
    %c0_16 = arith.constant 0 : index
    %c0_17 = arith.constant 0 : index
    %c1 = arith.constant 1 : index
    %c0_18 = arith.constant 0 : index
    %48 = vector.load %arg7[%c0_16, %c0_17, %c1, %c0_18] : memref<1x1x2x128xf32, #tpu.memory_space<vmem>>, vector<1x1x1x128xf32>
    %49 = vector.shape_cast %48 : vector<1x1x1x128xf32> to vector<1x128xf32>
    %50 = vector.shape_cast %47 : vector<1x128xf32> to vector<1x1x1x128xf32>
    tpu.vector_store %arg7[%c0_16, %c0_17, %c1, %c0_18], %50 {strides = array<i32>} : memref<1x1x2x128xf32, #tpu.memory_space<vmem>>, vector<1x1x1x128xf32>,
    return
  }
  func.func @transform_0(%arg0: i32, %arg1: i32) -> (i32, i32, i32, i32) {
    %c0_i32 = arith.constant 0 : i32
    %c0_i32_0 = arith.constant 0 : i32
    %c0_i32_1 = arith.constant 0 : i32
    %c0_i32_2 = arith.constant 0 : i32
    return %arg0, %c0_i32, %c0_i32_0, %c0_i32_1 : i32, i32, i32, i32
  }
  func.func @transform_1(%arg0: i32, %arg1: i32) -> (i32, i32) {
    %c0_i32 = arith.constant 0 : i32
    %c0_i32_0 = arith.constant 0 : i32
    %c0_i32_1 = arith.constant 0 : i32
    return %c0_i32, %c0_i32_0 : i32, i32
  }
  func.func @transform_2(%arg0: i32, %arg1: i32) -> (i32, i32) {
    %c0_i32 = arith.constant 0 : i32
    %c0_i32_0 = arith.constant 0 : i32
    %c0_i32_1 = arith.constant 0 : i32
    return %c0_i32, %c0_i32_0 : i32, i32
  }
  func.func @transform_3(%arg0: i32, %arg1: i32) -> (i32, i32) {
    %c0_i32 = arith.constant 0 : i32
    %c0_i32_0 = arith.constant 0 : i32
    %c0_i32_1 = arith.constant 0 : i32
    return %c0_i32, %c0_i32_0 : i32, i32
  }
  func.func @transform_4(%arg0: i32, %arg1: i32) -> (i32, i32, i32, i32) {
    %c0_i32 = arith.constant 0 : i32
    %c0_i32_0 = arith.constant 0 : i32
    %c0_i32_1 = arith.constant 0 : i32
    return %arg0, %arg1, %c0_i32, %c0_i32_0 : i32, i32, i32, i32
  }
  func.func @transform_5(%arg0: i32, %arg1: i32) -> (i32, i32, i32, i32) {
    %c0_i32 = arith.constant 0 : i32
    %c0_i32_0 = arith.constant 0 : i32
    %c0_i32_1 = arith.constant 0 : i32
    return %arg0, %arg1, %c0_i32, %c0_i32_0 : i32, i32, i32, i32
  }
}

module attributes {stable_mosaic.version = 11 : i64} {
  func.func @conv_bn_stats_kernel(%arg0: i32, %arg1: i32, %arg2: memref<1x18x18x128xf32, #tpu.memory_space<vmem>>, %arg3: memref<1152x128xbf16, #tpu.memory_space<vmem>>, %arg4: memref<1x128xf32, #tpu.memory_space<vmem>>, %arg5: memref<2x128xf32, #tpu.memory_space<vmem>>, %arg6: memref<1x8x16x128xf32, #tpu.memory_space<vmem>>, %arg7: memref<1x1x2x128xf32, #tpu.memory_space<vmem>>) attributes {dimension_semantics = [#tpu.dimension_semantics<parallel>, #tpu.dimension_semantics<parallel>], iteration_bounds = array<i64: 2, 2>, scalar_prefetch = 0 : i64, scratch_operands = 0 : i64, tpu.core_type = #tpu.core_type<tc>, window_params = [{transform_indices = @transform_0, window_bounds = array<i64: 1, 18, 18, 128>}, {pipeline_mode = #tpu.pipeline_mode<synchronous>, transform_indices = @transform_1, window_bounds = array<i64: 1152, 128>}, {pipeline_mode = #tpu.pipeline_mode<synchronous>, transform_indices = @transform_2, window_bounds = array<i64: 1, 128>}, {pipeline_mode = #tpu.pipeline_mode<synchronous>, transform_indices = @transform_3, window_bounds = array<i64: 2, 128>}, {transform_indices = @transform_4, window_bounds = array<i64: 1, 8, 16, 128>}, {transform_indices = @transform_5, window_bounds = array<i64: 1, 1, 2, 128>}]} {
    %c8_i32 = arith.constant 8 : i32
    %0 = arith.muli %arg1, %c8_i32 : i32
    %1 = tpu.assume_multiple %0, 8 : i32
    %c0 = arith.constant 0 : index
    %2 = arith.index_cast %1 : i32 to index
    %c0_0 = arith.constant 0 : index
    %c0_1 = arith.constant 0 : index
    %3 = vector.load %arg2[%c0, %2, %c0_0, %c0_1] : memref<1x18x18x128xf32, #tpu.memory_space<vmem>>, vector<1x10x18x128xf32>
    %4 = vector.shape_cast %3 : vector<1x10x18x128xf32> to vector<10x18x128xf32>
    %c0_2 = arith.constant 0 : index
    %c0_3 = arith.constant 0 : index
    %5 = vector.load %arg5[%c0_2, %c0_3] : memref<2x128xf32, #tpu.memory_space<vmem>>, vector<1x128xf32>
    %6 = vector.shape_cast %5 : vector<1x128xf32> to vector<128xf32>
    %7 = vector.shape_cast %6 : vector<128xf32> to vector<1x1x128xf32>
    %8 = vector.broadcast %7 : vector<1x1x128xf32> to vector<10x18x128xf32>
    %9 = arith.mulf %4, %8 : vector<10x18x128xf32>
    %c1 = arith.constant 1 : index
    %c0_4 = arith.constant 0 : index
    %10 = vector.load %arg5[%c1, %c0_4] : memref<2x128xf32, #tpu.memory_space<vmem>>, vector<1x128xf32>
    %11 = vector.shape_cast %10 : vector<1x128xf32> to vector<128xf32>
    %12 = vector.shape_cast %11 : vector<128xf32> to vector<1x1x128xf32>
    %13 = vector.broadcast %12 : vector<1x1x128xf32> to vector<10x18x128xf32>
    %14 = arith.addf %9, %13 : vector<10x18x128xf32>
    %cst = arith.constant 0.000000e+00 : f32
    %15 = vector.broadcast %cst : f32 to vector<10x18x128xf32>
    %16 = arith.maximumf %14, %15 : vector<10x18x128xf32>
    %17 = tpu.iota {dimensions = array<i32: 0>} : vector<10x18x1xi32>
    %18 = vector.broadcast %1 : i32 to vector<10x18x1xi32>
    %19 = arith.addi %18, %17 : vector<10x18x1xi32>
    %20 = tpu.iota {dimensions = array<i32: 1>} : vector<10x18x1xi32>
    %c1_i32 = arith.constant 1 : i32
    %21 = vector.broadcast %c1_i32 : i32 to vector<10x18x1xi32>
    %22 = arith.cmpi sge, %19, %21 : vector<10x18x1xi32>
    %c16_i32 = arith.constant 16 : i32
    %23 = vector.broadcast %c16_i32 : i32 to vector<10x18x1xi32>
    %24 = arith.cmpi sle, %19, %23 : vector<10x18x1xi32>
    %25 = arith.andi %22, %24 : vector<10x18x1xi1>
    %c1_i32_5 = arith.constant 1 : i32
    %26 = vector.broadcast %c1_i32_5 : i32 to vector<10x18x1xi32>
    %27 = arith.cmpi sge, %20, %26 : vector<10x18x1xi32>
    %28 = arith.andi %25, %27 : vector<10x18x1xi1>
    %c16_i32_6 = arith.constant 16 : i32
    %29 = vector.broadcast %c16_i32_6 : i32 to vector<10x18x1xi32>
    %30 = arith.cmpi sle, %20, %29 : vector<10x18x1xi32>
    %31 = arith.andi %28, %30 : vector<10x18x1xi1>
    %cst_7 = arith.constant 0.000000e+00 : f32
    %32 = vector.shape_cast %31 : vector<10x18x1xi1> to vector<10x18x1xi1>
    %33 = vector.broadcast %32 : vector<10x18x1xi1> to vector<10x18x128xi1>
    %34 = vector.broadcast %cst_7 : f32 to vector<10x18x128xf32>
    %35 = arith.select %33, %16, %34 : vector<10x18x128xi1>, vector<10x18x128xf32>
    %36 = vector.extract_strided_slice %35 {offsets = [0, 0, 0], sizes = [8, 16, 128], strides = [1, 1, 1]} : vector<10x18x128xf32> to vector<8x16x128xf32>
    %37 = vector.shape_cast %36 : vector<8x16x128xf32> to vector<128x128xf32>
    %38 = arith.truncf %37 : vector<128x128xf32> to vector<128x128xbf16>
    %39 = vector.extract_strided_slice %35 {offsets = [0, 1, 0], sizes = [8, 16, 128], strides = [1, 1, 1]} : vector<10x18x128xf32> to vector<8x16x128xf32>
    %40 = vector.shape_cast %39 : vector<8x16x128xf32> to vector<128x128xf32>
    %41 = arith.truncf %40 : vector<128x128xf32> to vector<128x128xbf16>
    %42 = vector.extract_strided_slice %35 {offsets = [0, 2, 0], sizes = [8, 16, 128], strides = [1, 1, 1]} : vector<10x18x128xf32> to vector<8x16x128xf32>
    %43 = vector.shape_cast %42 : vector<8x16x128xf32> to vector<128x128xf32>
    %44 = arith.truncf %43 : vector<128x128xf32> to vector<128x128xbf16>
    %45 = vector.extract_strided_slice %35 {offsets = [1, 0, 0], sizes = [8, 16, 128], strides = [1, 1, 1]} : vector<10x18x128xf32> to vector<8x16x128xf32>
    %46 = vector.shape_cast %45 : vector<8x16x128xf32> to vector<128x128xf32>
    %47 = arith.truncf %46 : vector<128x128xf32> to vector<128x128xbf16>
    %48 = vector.extract_strided_slice %35 {offsets = [1, 1, 0], sizes = [8, 16, 128], strides = [1, 1, 1]} : vector<10x18x128xf32> to vector<8x16x128xf32>
    %49 = vector.shape_cast %48 : vector<8x16x128xf32> to vector<128x128xf32>
    %50 = arith.truncf %49 : vector<128x128xf32> to vector<128x128xbf16>
    %51 = vector.extract_strided_slice %35 {offsets = [1, 2, 0], sizes = [8, 16, 128], strides = [1, 1, 1]} : vector<10x18x128xf32> to vector<8x16x128xf32>
    %52 = vector.shape_cast %51 : vector<8x16x128xf32> to vector<128x128xf32>
    %53 = arith.truncf %52 : vector<128x128xf32> to vector<128x128xbf16>
    %54 = vector.extract_strided_slice %35 {offsets = [2, 0, 0], sizes = [8, 16, 128], strides = [1, 1, 1]} : vector<10x18x128xf32> to vector<8x16x128xf32>
    %55 = vector.shape_cast %54 : vector<8x16x128xf32> to vector<128x128xf32>
    %56 = arith.truncf %55 : vector<128x128xf32> to vector<128x128xbf16>
    %57 = vector.extract_strided_slice %35 {offsets = [2, 1, 0], sizes = [8, 16, 128], strides = [1, 1, 1]} : vector<10x18x128xf32> to vector<8x16x128xf32>
    %58 = vector.shape_cast %57 : vector<8x16x128xf32> to vector<128x128xf32>
    %59 = arith.truncf %58 : vector<128x128xf32> to vector<128x128xbf16>
    %60 = vector.extract_strided_slice %35 {offsets = [2, 2, 0], sizes = [8, 16, 128], strides = [1, 1, 1]} : vector<10x18x128xf32> to vector<8x16x128xf32>
    %61 = vector.shape_cast %60 : vector<8x16x128xf32> to vector<128x128xf32>
    %62 = arith.truncf %61 : vector<128x128xf32> to vector<128x128xbf16>
    %63 = tpu.concatenate %38, %41, %44, %47, %50, %53, %56, %59, %62 in 1 : vector<128x128xbf16>, vector<128x128xbf16>, vector<128x128xbf16>, vector<128x128xbf16>, vector<128x128xbf16>, vector<128x128xbf16>, vector<128x128xbf16>, vector<128x128xbf16>, vector<128x128xbf16> -> vector<128x1152xbf16>
    %c0_8 = arith.constant 0 : index
    %c0_9 = arith.constant 0 : index
    %64 = vector.load %arg3[%c0_8, %c0_9] : memref<1152x128xbf16, #tpu.memory_space<vmem>>, vector<1152x128xbf16>
    %cst_10 = arith.constant dense<0.000000e+00> : vector<128x128xf32>
    %65 = tpu.matmul %63, %64, %cst_10 {dimension_numbers = #tpu.dot_dimension_numbers<[1], [0], [0], [1], [0, 0, 1, 1], [], []>} : vector<128x1152xbf16>, vector<1152x128xbf16>, vector<128x128xf32> -> vector<128x128xf32>
    %c0_11 = arith.constant 0 : index
    %c0_12 = arith.constant 0 : index
    %66 = vector.load %arg4[%c0_11, %c0_12] : memref<1x128xf32, #tpu.memory_space<vmem>>, vector<1x128xf32>
    %67 = vector.broadcast %66 : vector<1x128xf32> to vector<128x128xf32>
    %68 = arith.addf %65, %67 : vector<128x128xf32>
    %69 = vector.shape_cast %68 : vector<128x128xf32> to vector<1x8x16x128xf32>
    %c0_13 = arith.constant 0 : index
    %c0_14 = arith.constant 0 : index
    %c0_15 = arith.constant 0 : index
    %c0_16 = arith.constant 0 : index
    %70 = vector.load %arg6[%c0_13, %c0_14, %c0_15, %c0_16] : memref<1x8x16x128xf32, #tpu.memory_space<vmem>>, vector<1x8x16x128xf32>
    tpu.vector_store %arg6[%c0_13, %c0_14, %c0_15, %c0_16], %69 {strides = array<i32>} : memref<1x8x16x128xf32, #tpu.memory_space<vmem>>, vector<1x8x16x128xf32>,
    %cst_17 = arith.constant dense<0.000000e+00> : vector<128xf32>
    %71 = vector.multi_reduction <add>, %68, %cst_17 [0] : vector<128x128xf32> to vector<128xf32>
    %72 = vector.shape_cast %71 : vector<128xf32> to vector<1x128xf32>
    %c0_18 = arith.constant 0 : index
    %c0_19 = arith.constant 0 : index
    %c0_20 = arith.constant 0 : index
    %c0_21 = arith.constant 0 : index
    %73 = vector.load %arg7[%c0_18, %c0_19, %c0_20, %c0_21] : memref<1x1x2x128xf32, #tpu.memory_space<vmem>>, vector<1x1x1x128xf32>
    %74 = vector.shape_cast %73 : vector<1x1x1x128xf32> to vector<1x128xf32>
    %75 = vector.shape_cast %72 : vector<1x128xf32> to vector<1x1x1x128xf32>
    tpu.vector_store %arg7[%c0_18, %c0_19, %c0_20, %c0_21], %75 {strides = array<i32>} : memref<1x1x2x128xf32, #tpu.memory_space<vmem>>, vector<1x1x1x128xf32>,
    %76 = arith.mulf %68, %68 : vector<128x128xf32>
    %cst_22 = arith.constant dense<0.000000e+00> : vector<128xf32>
    %77 = vector.multi_reduction <add>, %76, %cst_22 [0] : vector<128x128xf32> to vector<128xf32>
    %78 = vector.shape_cast %77 : vector<128xf32> to vector<1x128xf32>
    %c0_23 = arith.constant 0 : index
    %c0_24 = arith.constant 0 : index
    %c1_25 = arith.constant 1 : index
    %c0_26 = arith.constant 0 : index
    %79 = vector.load %arg7[%c0_23, %c0_24, %c1_25, %c0_26] : memref<1x1x2x128xf32, #tpu.memory_space<vmem>>, vector<1x1x1x128xf32>
    %80 = vector.shape_cast %79 : vector<1x1x1x128xf32> to vector<1x128xf32>
    %81 = vector.shape_cast %78 : vector<1x128xf32> to vector<1x1x1x128xf32>
    tpu.vector_store %arg7[%c0_23, %c0_24, %c1_25, %c0_26], %81 {strides = array<i32>} : memref<1x1x2x128xf32, #tpu.memory_space<vmem>>, vector<1x1x1x128xf32>,
    return
  }
  func.func @transform_0(%arg0: i32, %arg1: i32) -> (i32, i32, i32, i32) {
    %c0_i32 = arith.constant 0 : i32
    %c0_i32_0 = arith.constant 0 : i32
    %c0_i32_1 = arith.constant 0 : i32
    %c0_i32_2 = arith.constant 0 : i32
    return %arg0, %c0_i32, %c0_i32_0, %c0_i32_1 : i32, i32, i32, i32
  }
  func.func @transform_1(%arg0: i32, %arg1: i32) -> (i32, i32) {
    %c0_i32 = arith.constant 0 : i32
    %c0_i32_0 = arith.constant 0 : i32
    %c0_i32_1 = arith.constant 0 : i32
    return %c0_i32, %c0_i32_0 : i32, i32
  }
  func.func @transform_2(%arg0: i32, %arg1: i32) -> (i32, i32) {
    %c0_i32 = arith.constant 0 : i32
    %c0_i32_0 = arith.constant 0 : i32
    %c0_i32_1 = arith.constant 0 : i32
    return %c0_i32, %c0_i32_0 : i32, i32
  }
  func.func @transform_3(%arg0: i32, %arg1: i32) -> (i32, i32) {
    %c0_i32 = arith.constant 0 : i32
    %c0_i32_0 = arith.constant 0 : i32
    %c0_i32_1 = arith.constant 0 : i32
    return %c0_i32, %c0_i32_0 : i32, i32
  }
  func.func @transform_4(%arg0: i32, %arg1: i32) -> (i32, i32, i32, i32) {
    %c0_i32 = arith.constant 0 : i32
    %c0_i32_0 = arith.constant 0 : i32
    %c0_i32_1 = arith.constant 0 : i32
    return %arg0, %arg1, %c0_i32, %c0_i32_0 : i32, i32, i32, i32
  }
  func.func @transform_5(%arg0: i32, %arg1: i32) -> (i32, i32, i32, i32) {
    %c0_i32 = arith.constant 0 : i32
    %c0_i32_0 = arith.constant 0 : i32
    %c0_i32_1 = arith.constant 0 : i32
    return %arg0, %arg1, %c0_i32, %c0_i32_0 : i32, i32, i32, i32
  }
}

module attributes {stable_mosaic.version = 11 : i64} {
  func.func @norm_relu_kernel(%arg0: i32, %arg1: i32, %arg2: memref<1x8x16x128xf32, #tpu.memory_space<vmem>>, %arg3: memref<2x128xf32, #tpu.memory_space<vmem>>, %arg4: memref<1x8x16x128xf32, #tpu.memory_space<vmem>>) attributes {dimension_semantics = [#tpu.dimension_semantics<parallel>, #tpu.dimension_semantics<parallel>], iteration_bounds = array<i64: 2, 2>, scalar_prefetch = 0 : i64, scratch_operands = 0 : i64, tpu.core_type = #tpu.core_type<tc>, window_params = [{transform_indices = @transform_0, window_bounds = array<i64: 1, 8, 16, 128>}, {pipeline_mode = #tpu.pipeline_mode<synchronous>, transform_indices = @transform_1, window_bounds = array<i64: 2, 128>}, {transform_indices = @transform_2, window_bounds = array<i64: 1, 8, 16, 128>}]} {
    %c0 = arith.constant 0 : index
    %c0_0 = arith.constant 0 : index
    %c0_1 = arith.constant 0 : index
    %c0_2 = arith.constant 0 : index
    %0 = vector.load %arg2[%c0, %c0_0, %c0_1, %c0_2] : memref<1x8x16x128xf32, #tpu.memory_space<vmem>>, vector<1x8x16x128xf32>
    %c0_3 = arith.constant 0 : index
    %c0_4 = arith.constant 0 : index
    %1 = vector.load %arg3[%c0_3, %c0_4] : memref<2x128xf32, #tpu.memory_space<vmem>>, vector<1x128xf32>
    %2 = vector.shape_cast %1 : vector<1x128xf32> to vector<128xf32>
    %3 = vector.shape_cast %2 : vector<128xf32> to vector<1x1x1x128xf32>
    %4 = vector.broadcast %3 : vector<1x1x1x128xf32> to vector<1x8x16x128xf32>
    %5 = arith.mulf %0, %4 : vector<1x8x16x128xf32>
    %c1 = arith.constant 1 : index
    %c0_5 = arith.constant 0 : index
    %6 = vector.load %arg3[%c1, %c0_5] : memref<2x128xf32, #tpu.memory_space<vmem>>, vector<1x128xf32>
    %7 = vector.shape_cast %6 : vector<1x128xf32> to vector<128xf32>
    %8 = vector.shape_cast %7 : vector<128xf32> to vector<1x1x1x128xf32>
    %9 = vector.broadcast %8 : vector<1x1x1x128xf32> to vector<1x8x16x128xf32>
    %10 = arith.addf %5, %9 : vector<1x8x16x128xf32>
    %cst = arith.constant 0.000000e+00 : f32
    %11 = vector.broadcast %cst : f32 to vector<1x8x16x128xf32>
    %12 = arith.maximumf %10, %11 : vector<1x8x16x128xf32>
    %c0_6 = arith.constant 0 : index
    %c0_7 = arith.constant 0 : index
    %c0_8 = arith.constant 0 : index
    %c0_9 = arith.constant 0 : index
    %13 = vector.load %arg4[%c0_6, %c0_7, %c0_8, %c0_9] : memref<1x8x16x128xf32, #tpu.memory_space<vmem>>, vector<1x8x16x128xf32>
    tpu.vector_store %arg4[%c0_6, %c0_7, %c0_8, %c0_9], %12 {strides = array<i32>} : memref<1x8x16x128xf32, #tpu.memory_space<vmem>>, vector<1x8x16x128xf32>,
    return
  }
  func.func @transform_0(%arg0: i32, %arg1: i32) -> (i32, i32, i32, i32) {
    %c0_i32 = arith.constant 0 : i32
    %c0_i32_0 = arith.constant 0 : i32
    %c0_i32_1 = arith.constant 0 : i32
    return %arg0, %arg1, %c0_i32, %c0_i32_0 : i32, i32, i32, i32
  }
  func.func @transform_1(%arg0: i32, %arg1: i32) -> (i32, i32) {
    %c0_i32 = arith.constant 0 : i32
    %c0_i32_0 = arith.constant 0 : i32
    %c0_i32_1 = arith.constant 0 : i32
    return %c0_i32, %c0_i32_0 : i32, i32
  }
  func.func @transform_2(%arg0: i32, %arg1: i32) -> (i32, i32, i32, i32) {
    %c0_i32 = arith.constant 0 : i32
    %c0_i32_0 = arith.constant 0 : i32
    %c0_i32_1 = arith.constant 0 : i32
    return %arg0, %arg1, %c0_i32, %c0_i32_0 : i32, i32, i32, i32
  }
}

</mosaic_0001>

<bundles_post_ra>
// kernel: double_conv.5
= control target key start
LH: loop header
LB: loop body
LE: loop exit
PB: predicated region body
PF: predicated region fallthrough
CT: control target
= control target key end

     0   :  { %s489_s9 = smov 0   ;;  %s491_s10 = smov 0   ;;  %s618_s0 = inlined_call_operand.vmem [shape: f32[2,16,16,128], index: 0, kind: input, shape index: {}]   ;;  %s619_s1 = inlined_call_operand.vmem [shape: f32[2,128], index: 1, kind: input, shape index: {}]   ;;  %s620_s2 = inlined_call_operand.vmem [shape: f32[2,16,16,128], index: 2, kind: output, shape index: {}]  }
   0x1   :  { %s493_s11 = smov 0   ;;  %s495_s12 = smov 0  }
   0x2   :  { %s497_s13 = smov 0  }
   0x3 LB: > { %s21_s14 = sadd.s32 1, %s464_s11  ;;  %s24_s15 = sadd.s32 1, %s468_s12  ;;  %s472_s13 = sphi %s497_s13, %s12_s13   ;;  %s468_s12 = sphi %s495_s12, %s624_s12   ;;  %s464_s11 = sphi %s493_s11, %s623_s11   ;;  %s460_s10 = sphi %s491_s10, %s622_s10   ;;  %s456_s9 = sphi %s489_s9, %s621_s9  }
   0x4   : > { %p22_p0 = scmp.ge.s32.totalorder %s21_s14, 2  ;;  %p381_p1 = scmp.ge.s32.totalorder %s472_s13, 1 }
   0x5   : > { %p134_p2 = scmp.lt.s32.totalorder %s472_s13, 5 }
   0x6   : > { %s626_s14 = smov (%p22_p0, %s21_s14), 0  ;;  %s628_s15 = smov (!%p22_p0, %s24_s15), %s468_s12 }
   0x7   : > { %p135_p3 = pnand %p381_p1, %p134_p2  ;;  %p26_p4 = scmp.ge.s32.totalorder %s628_s15, 2 }
   0x8   : > { %s382_s16 = sshll.u32 (!%p135_p3), %s456_s9, 3  ;;  %p167_p5 = scmp.lt.s32.totalorder (!%p135_p3), %s460_s10, 1  ;;  %v522_v0 = vld [vmem:[%s619_s1] ss:$0 sm:$0xff] (!%p135_p3)  ;;  %v532_v1 = vld [vmem:[%s619_s1 + $0x1] ss:$0 sm:$0xff] (!%p135_p3) }
   0x9   : > { %s630_s15 = smov (%p26_p4, %s628_s15), 0  ;;  %138 = sbr.rel (%p135_p3) target bundleno = 39 (0x27), region = 28 }
   0xa   : > { %p169_p6 = scmp.lt.s32.totalorder (!%p135_p3), %s382_s16, 15 }
  0x10   : > { %s632_s10 = smov (!%p167_p5, %s460_s10), 1  ;;  %s634_s16 = smov (!%p169_p6, %s382_s16), 15 }
  0x11   : > { %s384_s17 = sshll.u32 %s632_s10, 5  ;;  %s383_s18 = sshll.u32 %s634_s16, 1 }
  0x12   : > { %s173_s19 = sadd.s32 %s384_s17, %s383_s18 }
  0x13   : > { %s385_s20 = sshll.u32 %s173_s19, 3 }
  0x14   : > { %s527_s25 = scalar_lea.vmem %s618_s0, %s385_s20  ;;  %s555_s30 = scalar_lea.vmem %s620_s2, %s385_s20 }
  0x15   : > { %v188_v2 = vld [vmem:[%s527_s25] sm:$0xff]  ;;  %v189_v3 = vld [vmem:[%s527_s25 + $0x8] sm:$0xff]  ;;  %v190_v4 = vld [vmem:[%s527_s25 + $0x10] sm:$0xff] }
  0x16   : > { %v209_v5 = vmul.f32 %v522_v0, %v188_v2  ;;  %v210_v6 = vmul.f32 %v522_v0, %v189_v3  ;;  %v211_v7 = vmul.f32 %v522_v0, %v190_v4  ;;  %v191_v8 = vld [vmem:[%s527_s25 + $0x18] sm:$0xff]  ;;  %v192_v9 = vld [vmem:[%s527_s25 + $0x20] sm:$0xff]  ;;  %v193_v10 = vld [vmem:[%s527_s25 + $0x28] sm:$0xff] }
  0x17   : > { %v212_v11 = vmul.f32 %v522_v0, %v191_v8  ;;  %v213_v12 = vmul.f32 %v522_v0, %v192_v9  ;;  %v214_v13 = vmul.f32 %v522_v0, %v193_v10  ;;  %v194_v14 = vld [vmem:[%s527_s25 + $0x30] sm:$0xff]  ;;  %v195_v15 = vld [vmem:[%s527_s25 + $0x38] sm:$0xff]  ;;  %v196_v24 = vld [vmem:[%s527_s25 + $0x40] sm:$0xff] }
  0x18   : > { %v230_v16 = vadd.f32 %v532_v1, %v209_v5  ;;  %v231_v17 = vadd.f32 %v532_v1, %v210_v6  ;;  %v232_v18 = vadd.f32 %v532_v1, %v211_v7  ;;  %v215_v19 = vmul.f32 %v522_v0, %v194_v14  ;;  %v197_v25 = vld [vmem:[%s527_s25 + $0x48] sm:$0xff]  ;;  %v198_v26 = vld [vmem:[%s527_s25 + $0x50] sm:$0xff]  ;;  %v199_v31 = vld [vmem:[%s527_s25 + $0x58] sm:$0xff] }
  0x19   : > { %v233_v20 = vadd.f32 %v532_v1, %v212_v11  ;;  %v234_v21 = vadd.f32 %v532_v1, %v213_v12  ;;  %v235_v22 = vadd.f32 %v532_v1, %v214_v13  ;;  %v216_v23 = vmul.f32 %v522_v0, %v195_v15  ;;  %v200_v32 = vld [vmem:[%s527_s25 + $0x60] sm:$0xff]  ;;  %v201_v33 = vld [vmem:[%s527_s25 + $0x68] sm:$0xff]  ;;  %v202_v38 = vld [vmem:[%s527_s25 + $0x70] sm:$0xff] }
  0x1a   : > { %v246_v27 = vmax.f32 %v230_v16, 0.0  ;;  %v247_v28 = vmax.f32 %v231_v17, 0.0  ;;  %v248_v29 = vmax.f32 %v232_v18, 0.0  ;;  %v236_v30 = vadd.f32 %v532_v1, %v215_v19  ;;  %v203_v43 = vld [vmem:[%s527_s25 + $0x78] sm:$0xff] }
  0x1b   : > { %v249_v34 = vmax.f32 %v233_v20, 0.0  ;;  %v250_v35 = vmax.f32 %v234_v21, 0.0  ;;  %v251_v36 = vmax.f32 %v235_v22, 0.0  ;;  %v237_v37 = vadd.f32 %v532_v1, %v216_v23 }
  0x1c   : > { %262 = vst [vmem:[%s555_s30] sm:$0xff] %v246_v27  ;;  %263 = vst [vmem:[%s555_s30 + $0x8] sm:$0xff] %v247_v28  ;;  %v252_v39 = vmax.f32 %v236_v30, 0.0  ;;  %v217_v40 = vmul.f32 %v522_v0, %v196_v24  ;;  %v218_v41 = vmul.f32 %v522_v0, %v197_v25  ;;  %v219_v42 = vmul.f32 %v522_v0, %v198_v26 }
  0x1d   : > { %264 = vst [vmem:[%s555_s30 + $0x10] sm:$0xff] %v248_v29  ;;  %265 = vst [vmem:[%s555_s30 + $0x18] sm:$0xff] %v249_v34  ;;  %v253_v44 = vmax.f32 %v237_v37, 0.0  ;;  %v220_v45 = vmul.f32 %v522_v0, %v199_v31  ;;  %v221_v46 = vmul.f32 %v522_v0, %v200_v32  ;;  %v222_v47 = vmul.f32 %v522_v0, %v201_v33 }
  0x1e   : > { %266 = vst [vmem:[%s555_s30 + $0x20] sm:$0xff] %v250_v35  ;;  %267 = vst [vmem:[%s555_s30 + $0x28] sm:$0xff] %v251_v36  ;;  %v238_v48 = vadd.f32 %v532_v1, %v217_v40  ;;  %v239_v49 = vadd.f32 %v532_v1, %v218_v41  ;;  %v240_v50 = vadd.f32 %v532_v1, %v219_v42 }
  0x1f   : > { %268 = vst [vmem:[%s555_s30 + $0x30] sm:$0xff] %v252_v39  ;;  %v223_v51 = vmul.f32 %v522_v0, %v202_v38  ;;  %269 = vst [vmem:[%s555_s30 + $0x38] sm:$0xff] %v253_v44  ;;  %v241_v52 = vadd.f32 %v532_v1, %v220_v45  ;;  %v242_v53 = vadd.f32 %v532_v1, %v221_v46 }
  0x20   : > { %v243_v54 = vadd.f32 %v532_v1, %v222_v47  ;;  %v224_v55 = vmul.f32 %v522_v0, %v203_v43  ;;  %v254_v56 = vmax.f32 %v238_v48, 0.0  ;;  %v255_v57 = vmax.f32 %v239_v49, 0.0 }
  0x21   : > { %v256_v58 = vmax.f32 %v240_v50, 0.0  ;;  %v244_v59 = vadd.f32 %v532_v1, %v223_v51  ;;  %v257_v60 = vmax.f32 %v241_v52, 0.0  ;;  %v258_v61 = vmax.f32 %v242_v53, 0.0 }
  0x22   : > { %v259_v62 = vmax.f32 %v243_v54, 0.0  ;;  %v245_v63 = vadd.f32 %v532_v1, %v224_v55  ;;  %270 = vst [vmem:[%s555_s30 + $0x40] sm:$0xff] %v254_v56  ;;  %271 = vst [vmem:[%s555_s30 + $0x48] sm:$0xff] %v255_v57 }
  0x23   : > { %272 = vst [vmem:[%s555_s30 + $0x50] sm:$0xff] %v256_v58  ;;  %v260_v2 = vmax.f32 %v244_v59, 0.0  ;;  %273 = vst [vmem:[%s555_s30 + $0x58] sm:$0xff] %v257_v60 }
  0x24   : > { %274 = vst [vmem:[%s555_s30 + $0x60] sm:$0xff] %v258_v61  ;;  %275 = vst [vmem:[%s555_s30 + $0x68] sm:$0xff] %v259_v62  ;;  %v261_v0 = vmax.f32 %v245_v63, 0.0 }
  0x25   : > { %276 = vst [vmem:[%s555_s30 + $0x70] sm:$0xff] %v260_v2 }
  0x26   : > { %277 = vst [vmem:[%s555_s30 + $0x78] sm:$0xff] %v261_v0 }
  0x27 PF: > { %s12_s13 = sadd.s32 1, %s472_s13   ;;  %s621_s9 = smov %s464_s11 }
  0x28   : > { %p9_p7 = scmp.ge.s32.totalorder %s12_s13, 6   ;;  %s622_s10 = smov %s468_s12 }
  0x29   : > { %s623_s11 = smov %s626_s14  ;;  %s624_s12 = smov %s630_s15 }
  0x2a   :  { %11 = sbr.rel (!%p9_p7) target bundleno = 3 (0x3), region = 58 }

// kernel: double_conv.3
= control target key start
LH: loop header
LB: loop body
LE: loop exit
PB: predicated region body
PF: predicated region fallthrough
CT: control target
= control target key end

     0   :  { %s2382_s18 = smov 0   ;;  %s2384_s19 = smov 0   ;;  %s3082_s0 = inlined_call_operand.vmem [shape: f32[2,18,18,128], index: 0, kind: input, shape index: {}]   ;;  %s3083_s1 = inlined_call_operand.vmem [shape: bf16[1152,128], index: 1, kind: input, shape index: {}]   ;;  %s3084_s2 = inlined_call_operand.vmem [shape: f32[1,128], index: 2, kind: input, shape index: {}]   ;;  %s3085_s3 = inlined_call_operand.vmem [shape: f32[2,128], index: 3, kind: input, shape index: {}]   ;;  %s3086_s4 = inlined_call_operand.vmem [shape: f32[2,16,16,128], index: 4, kind: output, shape index: {0}]   ;;  %s3087_s5 = inlined_call_operand.vmem [shape: f32[2,2,2,128], index: 5, kind: output, shape index: {1}]  }
   0x1   :  { %s2386_s20 = smov 0   ;;  %s2388_s21 = smov 0  }
   0x2   :  { %s2390_s22 = smov 0  }
   0x3 LB: > { %s25_s3 = sadd.s32 1, %s2342_s20  ;;  %s28_s23 = sadd.s32 1, %s2346_s21  ;;  %s2350_s22 = sphi %s2390_s22, %s16_s22   ;;  %s2346_s21 = sphi %s2388_s21, %s3091_s21   ;;  %s2342_s20 = sphi %s2386_s20, %s3090_s20   ;;  %s2338_s19 = sphi %s2384_s19, %s3089_s19   ;;  %s2334_s18 = sphi %s2382_s18, %s3088_s18  }
   0x4   : > { %p26_p0 = scmp.ge.s32.totalorder %s25_s3, 2  ;;  %p1794_p1 = scmp.ge.s32.totalorder %s2350_s22, 1 }
   0x5   : > { %p206_p2 = scmp.lt.s32.totalorder %s2350_s22, 5 }
   0x6   : > { %s3093_s3 = smov (%p26_p0, %s25_s3), 0  ;;  %s3095_s23 = smov (!%p26_p0, %s28_s23), %s2346_s21 }
   0x7   : > { %p207_p3 = pnand %p1794_p1, %p206_p2  ;;  %p30_p4 = scmp.ge.s32.totalorder %s3095_s23, 2 }
   0x8   : > { %v2240_v0 = vld [vmem:[%s3083_s1 + $0x40] sm:$0xff] (!%p207_p3)   ;;  %v2244_v4 = vld [vmem:[%s3083_s1 + $0x48] sm:$0xff] (!%p207_p3)   ;;  %v2248_v8 = vld [vmem:[%s3083_s1 + $0x50] sm:$0xff] (!%p207_p3)   ;;  %p247_p5 = scmp.lt.s32.totalorder (!%p207_p3), %s2338_s19, 1  ;;  %s1803_s14 = smul.u32 (!%p207_p3), 192, %s2334_s18  ;;  %vm337_vm0 = vcmask (!%p207_p3), 1046528  }
   0x9   : > { %s3097_s23 = smov (%p30_p4, %s3095_s23), 0  ;;  %210 = sbr.rel (%p207_p3) target bundleno = 434 (0x1b2), region = 36 }
   0xa   : > { %v2241_v1 = vld [vmem:[%s3083_s1 + $0xc0] sm:$0xff] (!%p207_p3)   ;;  %1879 = vmatprep.subr.bf16.mxu0 (!%p207_p3), %v2240_v0  ;;  %v2245_v5 = vld [vmem:[%s3083_s1 + $0xc8] sm:$0xff] (!%p207_p3)   ;;  %v2249_v9 = vld [vmem:[%s3083_s1 + $0xd0] sm:$0xff] (!%p207_p3)   ;;  %vm402_vm1 = vcmask (!%p207_p3), 1045504   ;;  %s1796_s27 = sshll.u32 (!%p207_p3), %s2334_s18, 3  ;;  %p265_p7 = scmp.lt.s32.totalorder (!%p207_p3), %s2334_s18, 1 }
   0xb   : > { %v2242_v2 = vld [vmem:[%s3083_s1] sm:$0xff] (!%p207_p3)   ;;  %1943 = vmatprep.subr.bf16.mxu1 (!%p207_p3), %v2241_v1  ;;  %v2246_v6 = vld [vmem:[%s3083_s1 + $0x8] sm:$0xff] (!%p207_p3)   ;;  %v2250_v10 = vld [vmem:[%s3083_s1 + $0x10] sm:$0xff] (!%p207_p3)   ;;  %p255_p6 = scmp.lt.s32.totalorder (!%p207_p3), %s1796_s27, 15 }
   0xc   : > { %v2243_v3 = vld [vmem:[%s3083_s1 + $0x80] sm:$0xff] (!%p207_p3)   ;;  %1880 = vmatpush3.bf16.msra.mxu0 (!%p207_p3), %v2242_v2  ;;  %v2247_v7 = vld [vmem:[%s3083_s1 + $0x88] sm:$0xff] (!%p207_p3)   ;;  %v2251_v11 = vld [vmem:[%s3083_s1 + $0x90] sm:$0xff] (!%p207_p3)  }
   0xd   : > { %1944 = vmatpush3.bf16.msra.mxu1 (!%p207_p3), %v2243_v3  ;;  %1881 = vmatprep.subr.bf16.mxu0 (!%p207_p3), %v2244_v4  ;;  %v2252_v12 = vld [vmem:[%s3083_s1 + $0x58] sm:$0xff] (!%p207_p3)   ;;  %v2256_v16 = vld [vmem:[%s3083_s1 + $0x60] sm:$0xff] (!%p207_p3)   ;;  %v2260_v20 = vld [vmem:[%s3083_s1 + $0x68] sm:$0xff] (!%p207_p3)  }
   0xe   : > { %1945 = vmatprep.subr.bf16.mxu1 (!%p207_p3), %v2245_v5  ;;  %v2253_v13 = vld [vmem:[%s3083_s1 + $0xd8] sm:$0xff] (!%p207_p3)   ;;  %v2257_v17 = vld [vmem:[%s3083_s1 + $0xe0] sm:$0xff] (!%p207_p3)   ;;  %v2261_v21 = vld [vmem:[%s3083_s1 + $0xe8] sm:$0xff] (!%p207_p3)  }
   0xf   : > { %v2254_v14 = vld [vmem:[%s3083_s1 + $0x18] sm:$0xff] (!%p207_p3)   ;;  %v2258_v18 = vld [vmem:[%s3083_s1 + $0x20] sm:$0xff] (!%p207_p3)   ;;  %v2262_v22 = vld [vmem:[%s3083_s1 + $0x28] sm:$0xff] (!%p207_p3)  }
  0x10   : > { %1882 = vmatpush3.bf16.msra.mxu0 %v2246_v6  ;;  %v2255_v15 = vld [vmem:[%s3083_s1 + $0x98] sm:$0xff]   ;;  %s3099_s19 = smov (!%p247_p5, %s2338_s19), 1  ;;  %v2259_v19 = vld [vmem:[%s3083_s1 + $0xa0] sm:$0xff]   ;;  %v2263_v23 = vld [vmem:[%s3083_s1 + $0xa8] sm:$0xff]   ;;  %s3101_s27 = smov (!%p255_p6, %s1796_s27), 15 }
  0x11   : > { %1946 = vmatpush3.bf16.msra.mxu1 %v2247_v7  ;;  %1883 = vmatprep.subr.bf16.mxu0 %v2248_v8  ;;  %s2199_s7 = smul.u32 432, %s3099_s19  ;;  %v2264_v24 = vld [vmem:[%s3083_s1 + $0x70] sm:$0xff]   ;;  %v2268_v28 = vld [vmem:[%s3083_s1 + $0x78] sm:$0xff]   ;;  %v2272_v45 = vld [vmem:[%s3083_s1 + $0x140] sm:$0xff]   ;;  %s1797_s28 = sshll.u32 %s3101_s27, 1 }
  0x12   : > { %1947 = vmatprep.subr.bf16.mxu1 %v2249_v9  ;;  %v2265_v25 = vld [vmem:[%s3083_s1 + $0xf0] sm:$0xff]   ;;  %v2269_v29 = vld [vmem:[%s3083_s1 + $0xf8] sm:$0xff]   ;;  %v2273_v50 = vld [vmem:[%s3083_s1 + $0x100] sm:$0xff]   ;;  %s1798_s29 = sshll.u32 %s3099_s19, 5  ;;  %s3103_s18 = smov (!%p265_p7, %s2334_s18), 1 }
  0x13   : > { %v2266_v26 = vld [vmem:[%s3083_s1 + $0x30] sm:$0xff]   ;;  %s251_s25 = scalar_lea.vmem %s3082_s0, %s2199_s7  ;;  %v2270_v30 = vld [vmem:[%s3083_s1 + $0x38] sm:$0xff]   ;;  %v2274_v0 = vld [vmem:[%s3083_s1 + $0x148] sm:$0xff]   ;;  %s1800_s10 = sshll.u32 %s3099_s19, 1 }
  0x14   : > { %1884 = vmatpush3.bf16.msra.mxu0 %v2250_v10  ;;  %v2267_v27 = vld [vmem:[%s3083_s1 + $0xb0] sm:$0xff]   ;;  %s2515_s8 = scalar_lea.vmem %s251_s25, %s1803_s14  ;;  %v2271_v31 = vld [vmem:[%s3083_s1 + $0xb8] sm:$0xff]   ;;  %v2275_v5 = vld [vmem:[%s3083_s1 + $0x108] sm:$0xff]   ;;  %s268_s11 = sadd.s32 %s1800_s10, %s3103_s18 }
  0x15   : > { %1948 = vmatpush3.bf16.msra.mxu1 %v2251_v11  ;;  %1885 = vmatprep.subr.bf16.mxu0 %v2252_v12  ;;  %v275_v32 = vld [vmem:[%s2515_s8] sm:$0xff]  ;;  %v276_v33 = vld [vmem:[%s2515_s8 + $0x8] sm:$0xff]  ;;  %v277_v34 = vld [vmem:[%s2515_s8 + $0x10] sm:$0x3]  ;;  %s1801_s12 = sshll.u32 %s268_s11, 1 }
  0x16   : > { %1949 = vmatprep.subr.bf16.mxu1 %v2253_v13  ;;  %v338_v35 = vrot.slane %v275_v32, 1  ;;  %v339_v36 = vrot.slane %v276_v33, 1  ;;  %v341_v37 = vrot.slane %v277_v34, 1  ;;  %v406_v38 = vrot.slane %v277_v34, 2  ;;  %v278_v39 = vld [vmem:[%s2515_s8 + $0x18] sm:$0xff]  ;;  %v279_v40 = vld [vmem:[%s2515_s8 + $0x20] sm:$0xff]  ;;  %s270_s15 = scalar_lea.vmem %s3087_s5, %s1801_s12 }
  0x17   : > { %v2528_v41 = vpack.c.bf16 %v279_v40, %v278_v39  ;;  %v343_v42 = vrot.slane %v278_v39, 1  ;;  %v344_v43 = vrot.slane %v279_v40, 1  ;;  %v408_v44 = vrot.slane %v278_v39, 2  ;;  %v280_v54 = vld [vmem:[%s2515_s8 + $0x28] sm:$0x3]  ;;  %v281_v57 = vld [vmem:[%s2515_s8 + $0x30] sm:$0xff] }
  0x18   : > { %1886 = vmatpush3.bf16.msra.mxu0 %v2254_v14  ;;  %v340_v46 = vsel %vm337_vm0, %v338_v35, %v339_v36  ;;  %v342_v47 = vsel %vm337_vm0, %v339_v36, %v341_v37  ;;  %v409_v48 = vrot.slane %v279_v40, 2  ;;  %v305_v49 = vpack.c.bf16 %v276_v33, %v275_v32  ;;  %v282_v58 = vld [vmem:[%s2515_s8 + $0x38] sm:$0xff]  ;;  %v283_v6 = vld [vmem:[%s2515_s8 + $0x40] sm:$0x3]  ;;  %v2276_v7 = vld [vmem:[%s3083_s1 + $0x150] sm:$0xff]  }
  0x19   : > { %1950 = vmatpush3.bf16.msra.mxu1 %v2255_v15  ;;  %1887 = vmatprep.subr.bf16.mxu0 %v2256_v16  ;;  %v394_v51 = vpack.c.bf16 %v342_v47, %v340_v46  ;;  %v403_v52 = vrot.slane %v275_v32, 2  ;;  %v404_v53 = vrot.slane %v276_v33, 2  ;;  %v345_v55 = vsel %vm337_vm0, %v343_v42, %v344_v43  ;;  %v2562_v10 = vld [vmem:[%s2515_s8 + $0x48] sm:$0xff]  ;;  %v2277_v11 = vld [vmem:[%s3083_s1 + $0x1c0] sm:$0xff]   ;;  %v2572_v14 = vld [vmem:[%s2515_s8 + $0x50] sm:$0xff] }
  0x1a   : > { %1951 = vmatprep.subr.bf16.mxu1 %v2257_v17  ;;  %1219 = vmatprep.mubr.bf16.mxu1 %v2528_v41  ;;  %v346_v56 = vrot.slane %v280_v54, 1  ;;  %v411_v59 = vrot.slane %v280_v54, 2  ;;  %v2545_v62 = vpack.c.bf16 %v282_v58, %v281_v57  ;;  %v348_v63 = vrot.slane %v281_v57, 1  ;;  %v2278_v15 = vld [vmem:[%s3083_s1 + $0x110] sm:$0xff]   ;;  %v2282_v32 = vld [vmem:[%s3083_s1 + $0x118] sm:$0xff]   ;;  %v2283_v35 = vld [vmem:[%s3083_s1 + $0x188] sm:$0xff]  }
  0x1b   : > { %1122 = vmatprep.mubr.bf16.mxu0 %v394_v51  ;;  %v405_v60 = vsel %vm402_vm1, %v403_v52, %v404_v53  ;;  %v407_v61 = vsel %vm402_vm1, %v404_v53, %v406_v38  ;;  %v349_v3 = vrot.slane %v282_v58, 1  ;;  %v351_v9 = vrot.slane %v283_v6, 1  ;;  %v2613_v36 = vld [vmem:[%s2515_s8 + $0x70] sm:$0x3]  ;;  %v2617_v38 = vld [vmem:[%s2515_s8 + $0x60] sm:$0xff]  ;;  %v2620_v39 = vld [vmem:[%s2515_s8 + $0x68] sm:$0xff] }
  0x1c   : > { %1888 = vmatpush3.bf16.msra.mxu0 %v2258_v18  ;;  %v459_v1 = vpack.c.bf16 %v407_v61, %v405_v60  ;;  %v347_v2 = vsel %vm337_vm0, %v344_v43, %v346_v56  ;;  %v410_v12 = vsel %vm402_vm1, %v408_v44, %v409_v48  ;;  %v412_v13 = vsel %vm402_vm1, %v409_v48, %v411_v59  ;;  %v2279_v18 = vld [vmem:[%s3083_s1 + $0x180] sm:$0xff]   ;;  %v2285_v47 = vld [vmem:[%s3083_s1 + $0x1d0] sm:$0xff]   ;;  %v2652_v54 = vld [vmem:[%s2515_s8 + $0x78] sm:$0xff] }
  0x1d   : > { %1952 = vmatpush3.bf16.msra.mxu1 %v2259_v19  ;;  %1889 = vmatprep.subr.bf16.mxu0 %v2260_v20  ;;  %v2551_v4 = vpack.c.bf16 %v347_v2, %v345_v55  ;;  %v350_v8 = vsel %vm337_vm0, %v348_v63, %v349_v3  ;;  %v413_v16 = vrot.slane %v281_v57, 2  ;;  %v352_v17 = vsel %vm337_vm0, %v349_v3, %v351_v9  ;;  %v2284_v44 = vld [vmem:[%s3083_s1 + $0x160] sm:$0xff]   ;;  %v2287_v51 = vld [vmem:[%s3083_s1 + $0x190] sm:$0xff]   ;;  %v2288_v56 = vld [vmem:[%s3083_s1 + $0x168] sm:$0xff]  }
  0x1e   : > { %1953 = vmatprep.subr.bf16.mxu1 %v2261_v21  ;;  %v2581_v19 = vpack.c.bf16 %v352_v17, %v350_v8  ;;  %v414_v20 = vrot.slane %v282_v58, 2  ;;  %v2583_v21 = vpack.c.bf16 %v412_v13, %v410_v12  ;;  %v418_v37 = vrot.slane %v2562_v10, 2  ;;  %v2655_v55 = vld [vmem:[%s2515_s8 + $0x80] sm:$0xff]  ;;  %v2664_v59 = vld [vmem:[%s2515_s8 + $0x88] sm:$0x3]  ;;  %v2289_v60 = vld [vmem:[%s3083_s1 + $0x1d8] sm:$0xff]  }
  0x1f   : > { %v419_v40 = vrot.slane %v2572_v14, 2  ;;  %v358_v42 = vrot.slane %v2617_v38, 1  ;;  %v359_v43 = vrot.slane %v2620_v39, 1  ;;  %v361_v46 = vrot.slane %v2613_v36, 1  ;;  %v2290_v63 = vld [vmem:[%s3083_s1 + $0x128] sm:$0xff]   ;;  %v2293_v12 = vld [vmem:[%s3083_s1 + $0x1e0] sm:$0xff]  }
  0x20   : > { %1890 = vmatpush3.bf16.msra.mxu0 %v2262_v22  ;;  %v353_v22 = vrot.slane %v2562_v10, 1  ;;  %v415_v33 = vsel %vm402_vm1, %v413_v16, %v414_v20  ;;  %v2638_v48 = vpack.c.bf16 %v2620_v39, %v2617_v38  ;;  %v364_v2 = vrot.slane %v2655_v55, 1  ;;  %v2707_v16 = vld [vmem:[%s2515_s8 + $0x98] sm:$0xff]  ;;  %v2294_v17 = vld [vmem:[%s3083_s1 + $0x130] sm:$0xff]  }
  0x21   : > { %1954 = vmatpush3.bf16.msra.mxu1 %v2263_v23  ;;  %1891 = vmatprep.subr.bf16.mxu0 %v2264_v24  ;;  %v354_v23 = vrot.slane %v2572_v14, 1  ;;  %v286_v24 = vld [vmem:[%s2515_s8 + $0x58] sm:$0x3]  ;;  %v360_v52 = vsel %vm337_vm0, %v358_v42, %v359_v43  ;;  %v362_v53 = vsel %vm337_vm0, %v359_v43, %v361_v46  ;;  %v420_v57 = vsel %vm402_vm1, %v418_v37, %v419_v40  ;;  %v2299_v37 = vld [vmem:[%s3083_s1 + $0x1f0] sm:$0xff]  }
  0x22   : > { %1955 = vmatprep.subr.bf16.mxu1 %v2265_v25  ;;  %v2590_v25 = vpack.c.bf16 %v2572_v14, %v2562_v10  ;;  %v2669_v61 = vpack.c.bf16 %v362_v53, %v360_v52  ;;  %v366_v3 = vrot.slane %v2664_v59, 1  ;;  %v2686_v8 = vpack.c.bf16 %v2655_v55, %v2652_v54  ;;  %v2292_v10 = vld [vmem:[%s3083_s1 + $0x170] sm:$0xff]   ;;  %v2300_v46 = vld [vmem:[%s3083_s1 + $0x138] sm:$0xff]  }
  0x23   : > { %v426_v9 = vrot.slane %v2613_v36, 2  ;;  %v2302_v53 = vld [vmem:[%s3083_s1 + $0x1f8] sm:$0xff]  }
  0x24   : > { %1892 = vmatpush3.bf16.msra.mxu0 %v2266_v26  ;;  %v416_v26 = vrot.slane %v283_v6, 2  ;;  %v423_v6 = vrot.slane %v2617_v38, 2  ;;  %v367_v14 = vsel %vm337_vm0, %v364_v2, %v366_v3  ;;  %v2748_v38 = vld [vmem:[%s2515_s8 + $0xa8] sm:$0xff] }
  0x25   : > { %1956 = vmatpush3.bf16.msra.mxu1 %v2267_v27  ;;  %1893 = vmatprep.subr.bf16.mxu0 %v2268_v28  ;;  %v356_v27 = vrot.slane %v286_v24, 1  ;;  %v2280_v28 = vld [vmem:[%s3083_s1 + $0x158] sm:$0xff]   ;;  %v373_v52 = vrot.slane %v2748_v38, 1 }
  0x26   : > { %1957 = vmatprep.subr.bf16.mxu1 %v2269_v29  ;;  %v2281_v29 = vld [vmem:[%s3083_s1 + $0x1c8] sm:$0xff]   ;;  %v417_v34 = vsel %vm402_vm1, %v414_v20, %v416_v26 }
  0x27   : > { %v2297_v26 = vld [vmem:[%s3083_s1 + $0x1a8] sm:$0xff]  }
  0x28   : > { %1894 = vmatpush3.bf16.msra.mxu0 %v2270_v30  ;;  %v355_v30 = vsel %vm337_vm0, %v353_v22, %v354_v23  ;;  %v2295_v22 = vld [vmem:[%s3083_s1 + $0x1a0] sm:$0xff]  }
  0x29   : > { %1958 = vmatpush3.bf16.msra.mxu1 %v2271_v31  ;;  %2007 = vmatprep.subr.bf16.mxu0 %v2272_v45  ;;  %v357_v31 = vsel %vm337_vm0, %v354_v23, %v356_v27  ;;  %v2630_v45 = vpack.c.bf16 %v417_v34, %v415_v33  ;;  %v2296_v23 = vld [vmem:[%s3083_s1 + $0x1e8] sm:$0xff]   ;;  %v431_v34 = vrot.slane %v2664_v59, 2 }
  0x2a   : > { %2071 = vmatprep.subr.bf16.mxu1 %v2277_v11  ;;  %v2695_v11 = vld [vmem:[%s2515_s8 + $0xa0] sm:$0x3] }
  0x2b   : > { %1123 = vmatmul.mubr.bf16.vlgmr.msra.gmra.mrb[0].mxu0 %v305_v49  ;;  %v421_v49 = vrot.slane %v286_v24, 2 }
  0x2c   : > { %2008 = vmatpush3.bf16.msra.mxu0 %v2273_v50  ;;  %1220 = vmatmul.mubr.bf16.vlgmr.msra.gmra.mrb[0].mxu1 %v459_v1  ;;  %v2286_v50 = vld [vmem:[%s3083_s1 + $0x120] sm:$0xff]   ;;  %v363_v1 = vrot.slane %v2652_v54, 1 }
  0x2d   : > { %2009 = vmatprep.subr.bf16.mxu0 %v2274_v0  ;;  %1130 = vmatprep.mubr.bf16.mxu0 %v2551_v4  ;;  %v422_v58 = vsel %vm402_vm1, %v419_v40, %v421_v49  ;;  %v434_v40 = vrot.slane %v2707_v16, 2 }
  0x2e   : > { %1227 = vmatprep.mubr.bf16.mxu1 %v2545_v62  ;;  %2072 = vmatpush3.bf16.msra.mxu1 %v2279_v18  ;;  %v2674_v0 = vpack.c.bf16 %v422_v58, %v420_v57  ;;  %v365_v13 = vsel %vm337_vm0, %v363_v1, %v364_v2  ;;  %v2303_v57 = vld [vmem:[%s3083_s1 + $0x1b8] sm:$0xff]   ;;  %v300_v1 = vld [vmem:[%s2515_s8 + $0xc8] sm:$0xff] }
  0x2f   : > { %2073 = vmatprep.subr.bf16.mxu1 %v2281_v29  ;;  %v2721_v24 = vpack.c.bf16 %v367_v14, %v365_v13  ;;  %v369_v29 = vrot.slane %v2707_v16, 1  ;;  %v472_v3 = vrot.slane %v300_v1, 1  ;;  %v301_v13 = vld [vmem:[%s2515_s8 + $0xd0] sm:$0x3] }
  0x30   : > { %2010 = vmatpush3.bf16.msra.mxu0 %v2275_v5  ;;  %v2291_v5 = vld [vmem:[%s3083_s1 + $0x198] sm:$0xff]  }
  0x31   : > { %2011 = vmatprep.subr.bf16.mxu0 %v2276_v7  ;;  %v424_v7 = vrot.slane %v2620_v39, 2  ;;  %v2751_v39 = vld [vmem:[%s2515_s8 + $0xb8] sm:$0x3] }
  0x32   : > { %2074 = vmatpush3.bf16.msra.mxu1 %v2283_v35  ;;  %v2298_v35 = vld [vmem:[%s3083_s1 + $0x178] sm:$0xff]   ;;  %v376_v59 = vrot.slane %v2751_v39, 1 }
  0x33   : > { %1131 = vmatmul.mubr.bf16.gmra.mrb[4].mxu0 %v2528_v41  ;;  %v2623_v41 = vpack.c.bf16 %v357_v31, %v355_v30  ;;  %2075 = vmatprep.subr.bf16.mxu1 %v2285_v47  ;;  %v425_v18 = vsel %vm402_vm1, %v423_v6, %v424_v7  ;;  %v427_v20 = vsel %vm402_vm1, %v424_v7, %v426_v9  ;;  %v371_v30 = vrot.slane %v2695_v11, 1 }
  0x34   : > { %1138 = vmatprep.mubr.bf16.mxu0 %v2581_v19  ;;  %2012 = vmatpush3.bf16.msra.mxu0 %v2278_v15  ;;  %v2704_v15 = vld [vmem:[%s2515_s8 + $0x90] sm:$0xff]  ;;  %v2726_v27 = vpack.c.bf16 %v427_v20, %v425_v18  ;;  %v428_v31 = vrot.slane %v2652_v54, 2  ;;  %v480_v9 = vrot.slane %v300_v1, 2 }
  0x35   : > { %1228 = vmatmul.mubr.bf16.gmra.mrb[4].mxu1 %v2583_v21  ;;  %2013 = vmatprep.subr.bf16.mxu0 %v2280_v28  ;;  %v368_v28 = vrot.slane %v2704_v15, 1  ;;  %v2735_v33 = vpack.c.bf16 %v2707_v16, %v2704_v15  ;;  %v433_v36 = vrot.slane %v2704_v15, 2  ;;  %v372_v43 = vsel %vm337_vm0, %v369_v29, %v371_v30 }
  0x36   : > { %1235 = vmatprep.mubr.bf16.mxu1 %v2590_v25  ;;  %2076 = vmatpush3.bf16.msra.mxu1 %v2287_v51  ;;  %v2301_v51 = vld [vmem:[%s3083_s1 + $0x1b0] sm:$0xff]  }
  0x37   : > { %2077 = vmatprep.subr.bf16.mxu1 %v2289_v60  ;;  %v370_v42 = vsel %vm337_vm0, %v368_v28, %v369_v29  ;;  %v2787_v60 = vld [vmem:[%s3083_s1 + $0x200] sm:$0xff]   ;;  %v304_v29 = vld [vmem:[%s2515_s8 + $0xe8] sm:$0x3] }
  0x38   : > { %2014 = vmatpush3.bf16.msra.mxu0 %v2282_v32  ;;  %v429_v32 = vrot.slane %v2655_v55, 2  ;;  %v2774_v54 = vpack.c.bf16 %v372_v43, %v370_v42  ;;  %v2819_v28 = vld [vmem:[%s2515_s8 + $0xe0] sm:$0xff] }
  0x39   : > { %2015 = vmatprep.subr.bf16.mxu0 %v2284_v44  ;;  %v2758_v44 = vld [vmem:[%s2515_s8 + $0xb0] sm:$0xff] }
  0x3a   : > { %2078 = vmatpush3.bf16.msra.mxu1 %v2291_v5  ;;  %v430_v47 = vsel %vm402_vm1, %v428_v31, %v429_v32  ;;  %v432_v49 = vsel %vm402_vm1, %v429_v32, %v431_v34  ;;  %v374_v55 = vrot.slane %v2758_v44, 1  ;;  %v435_v5 = vsel %vm402_vm1, %v433_v36, %v434_v40 }
  0x3b   : > { %1139 = vmatmul.mubr.bf16.gmra.mrb[8].mxu0 %v2545_v62  ;;  %2079 = vmatprep.subr.bf16.mxu1 %v2293_v12  ;;  %v2781_v58 = vpack.c.bf16 %v432_v49, %v430_v47  ;;  %v438_v12 = vrot.slane %v2748_v38, 2  ;;  %v439_v14 = vrot.slane %v2758_v44, 2  ;;  %v492_v32 = vrot.slane %v2819_v28, 1 }
  0x3c   : > { %1146 = vmatprep.mubr.bf16.mxu0 %v2623_v41  ;;  %2016 = vmatpush3.bf16.msra.mxu0 %v2286_v50  ;;  %v436_v50 = vrot.slane %v2695_v11, 2  ;;  %v377_v11 = vsel %vm337_vm0, %v374_v55, %v376_v59  ;;  %v494_v34 = vrot.slane %v304_v29, 1 }
  0x3d   : > { %1236 = vmatmul.mubr.bf16.gmra.mrb[8].mxu1 %v2630_v45  ;;  %2017 = vmatprep.subr.bf16.mxu0 %v2288_v56  ;;  %v299_v56 = vld [vmem:[%s2515_s8 + $0xc0] sm:$0xff]  ;;  %v440_v49 = vsel %vm402_vm1, %v438_v12, %v439_v14 }
  0x3e   : > { %1243 = vmatprep.mubr.bf16.mxu1 %v2638_v48  ;;  %2080 = vmatpush3.bf16.msra.mxu1 %v2295_v22  ;;  %v471_v2 = vrot.slane %v299_v56, 1  ;;  %v437_v6 = vsel %vm402_vm1, %v434_v40, %v436_v50  ;;  %v479_v7 = vrot.slane %v299_v56, 2  ;;  %v2812_v20 = vpack.c.bf16 %v300_v1, %v299_v56 }
  0x3f   : > { %2081 = vmatprep.subr.bf16.mxu1 %v2296_v23  ;;  %v2807_v15 = vpack.c.bf16 %v437_v6, %v435_v5  ;;  %v482_v23 = vrot.slane %v301_v13, 2  ;;  %v2837_v43 = vsel %vm337_vm0, %v492_v32, %v494_v34 }
  0x40   : > { %2018 = vmatpush3.bf16.msra.mxu0 %v2290_v63  ;;  %v2791_v63 = vpack.c.bf16 %v2758_v44, %v2748_v38  ;;  %v473_v16 = vsel %vm337_vm0, %v471_v2, %v472_v3  ;;  %v481_v22 = vsel %vm402_vm1, %v479_v7, %v480_v9  ;;  %v500_v44 = vrot.slane %v2819_v28, 2 }
  0x41   : > { %2019 = vmatprep.subr.bf16.mxu0 %v2292_v10  ;;  %v375_v10 = vsel %vm337_vm0, %v373_v52, %v374_v55  ;;  %v2305_v55 = vld [vmem:[%s3083_s1 + $0x208] sm:$0xff]  }
  0x42   : > { %2082 = vmatpush3.bf16.msra.mxu1 %v2297_v26  ;;  %v2810_v18 = vpack.c.bf16 %v377_v11, %v375_v10  ;;  %v2816_v26 = vld [vmem:[%s2515_s8 + $0xd8] sm:$0xff]  ;;  %s259_s8 = sadd.s32 %s1798_s29, %s1797_s28 }
  0x43   : > { %1147 = vmatmul.mubr.bf16.gmra.mrb[12].mxu0 %v2590_v25  ;;  %2083 = vmatprep.subr.bf16.mxu1 %v2299_v37  ;;  %v491_v31 = vrot.slane %v2816_v26, 1  ;;  %v483_v37 = vsel %vm402_vm1, %v480_v9, %v482_v23  ;;  %v499_v38 = vrot.slane %v2816_v26, 2  ;;  %s1799_s30 = sshll.u32 %s259_s8, 3 }
  0x44   : > { %1154 = vmatprep.mubr.bf16.mxu0 %v2669_v61  ;;  %2020 = vmatpush3.bf16.msra.mxu0 %v2294_v17  ;;  %v474_v17 = vrot.slane %v301_v13, 1  ;;  %v2831_v40 = vpack.c.bf16 %v483_v37, %v481_v22  ;;  %s3025_s9 = scalar_lea.vmem %s3086_s4, %s1799_s30 }
  0x45   : > { %1244 = vmatmul.mubr.bf16.gmra.mrb[12].mxu1 %v2674_v0  ;;  %2021 = vmatprep.subr.bf16.mxu0 %v2298_v35  ;;  %v441_v35 = vrot.slane %v2751_v39, 2  ;;  %v2834_v42 = vsel %vm337_vm0, %v491_v31, %v492_v32  ;;  %v2845_v47 = vsel %vm402_vm1, %v499_v38, %v500_v44 }
  0x46   : > { %1251 = vmatprep.mubr.bf16.mxu1 %v2686_v8  ;;  %2084 = vmatpush3.bf16.msra.mxu1 %v2301_v51  ;;  %v475_v30 = vsel %vm337_vm0, %v472_v3, %v474_v17  ;;  %v498_v39 = vpack.c.bf16 %v2837_v43, %v2834_v42 }
  0x47   : > { %2085 = vmatprep.subr.bf16.mxu1 %v2302_v53  ;;  %v2826_v36 = vpack.c.bf16 %v475_v30, %v473_v16  ;;  %v442_v50 = vsel %vm402_vm1, %v439_v14, %v441_v35 }
  0x48   : > { %2022 = vmatpush3.bf16.msra.mxu0 %v2300_v46  ;;  %v502_v46 = vrot.slane %v304_v29, 2  ;;  %v2855_v53 = vpack.c.bf16 %v442_v50, %v440_v49 }
  0x49   : > { %2151 = vmatprep.subr.bf16.mxu0 %v2787_v60 }
  0x4a   : > { %2086 = vmatpush3.bf16.msra.mxu1 %v2303_v57  ;;  %v2851_v51 = vsel %vm402_vm1, %v500_v44, %v502_v46 }
  0x4b   : > { %1155 = vmatmul.mubr.bf16.gmra.mrb[16].mxu0 %v2638_v48  ;;  %2183 = vmatprep.subr.bf16.mxu1 %v2787_v60  ;;  %v506_v52 = vpack.c.bf16 %v2851_v51, %v2845_v47 }
  0x4c   : > { %1162 = vmatprep.mubr.bf16.mxu0 %v2721_v24 }
  0x4d   : > { %1252 = vmatmul.mubr.bf16.gmra.mrb[16].mxu1 %v2726_v27 }
  0x4e   : > { %1259 = vmatprep.mubr.bf16.mxu1 %v2735_v33 }
  0x53   : > { %1163 = vmatmul.mubr.bf16.gmra.mrb[20].mxu0 %v2686_v8 }
  0x54   : > { %1170 = vmatprep.mubr.bf16.mxu0 %v2774_v54 }
  0x55   : > { %1260 = vmatmul.mubr.bf16.gmra.mrb[20].mxu1 %v2781_v58 }
  0x56   : > { %1267 = vmatprep.mubr.bf16.mxu1 %v2791_v63 }
  0x5b   : > { %1171 = vmatmul.mubr.bf16.gmra.mrb[24].mxu0 %v2735_v33 }
  0x5c   : > { %1178 = vmatprep.mubr.bf16.mxu0 %v2810_v18 }
  0x5d   : > { %1268 = vmatmul.mubr.bf16.gmra.mrb[24].mxu1 %v2807_v15 }
  0x5e   : > { %1275 = vmatprep.mubr.bf16.mxu1 %v2812_v20 }
  0x63   : > { %1179 = vmatmul.mubr.bf16.gmra.mrb[28].mxu0 %v2791_v63 }
  0x64   : > { %1316 = vmatprep.mubr.bf16.mxu0 %v2583_v21  ;;  %v2306_v21 = vld [vmem:[%s3083_s1 + $0x210] sm:$0xff]  }
  0x65   : > { %1276 = vmatmul.mubr.bf16.gmra.mrb[28].mxu1 %v2855_v53 }
  0x66   : > { %1413 = vmatprep.mubr.bf16.mxu1 %v2581_v19 }
  0x6b   : > { %1317 = vmatmul.mubr.bf16.vlgmr.msra.gmra.mrb[32].mxu0 %v2551_v4  ;;  %v2307_v4 = vld [vmem:[%s3083_s1 + $0x218] sm:$0xff]  }
  0x6c   : > { %2152 = vmatpush3.bf16.msra.mxu0 %v2787_v60  ;;  %1324 = vmatprep.mubr.bf16.mxu0 %v2630_v45 }
  0x6d   : > { %1414 = vmatmul.mubr.bf16.vlgmr.msra.gmra.mrb[32].mxu1 %v2545_v62  ;;  %2153 = vmatprep.subr.bf16.mxu0 %v2305_v55  ;;  %v2308_v62 = vld [vmem:[%s3083_s1 + $0x220] sm:$0xff]  }
  0x6e   : > { %1421 = vmatprep.mubr.bf16.mxu1 %v2623_v41  ;;  %2191 = vmatpush3.bf16.msra.mxu1 %v2787_v60 }
  0x6f   : > { %2184 = vmatprep.subr.bf16.mxu1 %v2305_v55 }
  0x70   : > { %2154 = vmatpush3.bf16.msra.mxu0 %v2305_v55 }
  0x71   : > { %2155 = vmatprep.subr.bf16.mxu0 %v2306_v21 }
  0x72   : > { %2192 = vmatpush3.bf16.msra.mxu1 %v2305_v55 }
  0x73   : > { %1325 = vmatmul.mubr.bf16.gmra.mrb[36].mxu0 %v2581_v19  ;;  %2185 = vmatprep.subr.bf16.mxu1 %v2306_v21  ;;  %v2309_v19 = vld [vmem:[%s3083_s1 + $0x228] sm:$0xff]  }
  0x74   : > { %1332 = vmatprep.mubr.bf16.mxu0 %v2674_v0  ;;  %2156 = vmatpush3.bf16.msra.mxu0 %v2306_v21 }
  0x75   : > { %1422 = vmatmul.mubr.bf16.gmra.mrb[36].mxu1 %v2590_v25  ;;  %2157 = vmatprep.subr.bf16.mxu0 %v2307_v4  ;;  %v2310_v25 = vld [vmem:[%s3083_s1 + $0x230] sm:$0xff]  }
  0x76   : > { %1429 = vmatprep.mubr.bf16.mxu1 %v2669_v61  ;;  %2193 = vmatpush3.bf16.msra.mxu1 %v2306_v21 }
  0x77   : > { %2186 = vmatprep.subr.bf16.mxu1 %v2307_v4 }
  0x78   : > { %2158 = vmatpush3.bf16.msra.mxu0 %v2307_v4 }
  0x79   : > { %2159 = vmatprep.subr.bf16.mxu0 %v2308_v62 }
  0x7a   : > { %2194 = vmatpush3.bf16.msra.mxu1 %v2307_v4 }
  0x7b   : > { %1333 = vmatmul.mubr.bf16.gmra.mrb[40].mxu0 %v2623_v41  ;;  %2187 = vmatprep.subr.bf16.mxu1 %v2308_v62  ;;  %v2311_v41 = vld [vmem:[%s3083_s1 + $0x238] sm:$0xff]  }
  0x7c   : > { %1340 = vmatprep.mubr.bf16.mxu0 %v2726_v27  ;;  %2160 = vmatpush3.bf16.msra.mxu0 %v2308_v62 }
  0x7d   : > { %1430 = vmatmul.mubr.bf16.gmra.mrb[40].mxu1 %v2638_v48  ;;  %2161 = vmatprep.subr.bf16.mxu0 %v2309_v19  ;;  %v487_v48 = vpack.c.bf16 %v2819_v28, %v2816_v26 }
  0x7e   : > { %1437 = vmatprep.mubr.bf16.mxu1 %v2721_v24  ;;  %2195 = vmatpush3.bf16.msra.mxu1 %v2308_v62 }
  0x7f   : > { %2188 = vmatprep.subr.bf16.mxu1 %v2309_v19 }
  0x80   : > { %2162 = vmatpush3.bf16.msra.mxu0 %v2309_v19 }
  0x81   : > { %2163 = vmatprep.subr.bf16.mxu0 %v2310_v25 }
  0x82   : > { %2196 = vmatpush3.bf16.msra.mxu1 %v2309_v19 }
  0x83   : > { %1341 = vmatmul.mubr.bf16.gmra.mrb[44].mxu0 %v2669_v61  ;;  %2189 = vmatprep.subr.bf16.mxu1 %v2310_v25 }
  0x84   : > { %1348 = vmatprep.mubr.bf16.mxu0 %v2781_v58  ;;  %2164 = vmatpush3.bf16.msra.mxu0 %v2310_v25 }
  0x85   : > { %1438 = vmatmul.mubr.bf16.gmra.mrb[44].mxu1 %v2686_v8  ;;  %2165 = vmatprep.subr.bf16.mxu0 %v2311_v41 }
  0x86   : > { %1445 = vmatprep.mubr.bf16.mxu1 %v2774_v54  ;;  %2197 = vmatpush3.bf16.msra.mxu1 %v2310_v25 }
  0x87   : > { %2190 = vmatprep.subr.bf16.mxu1 %v2311_v41 }
  0x88   : > { %2166 = vmatpush3.bf16.msra.mxu0 %v2311_v41 }
  0x8a   : > { %2198 = vmatpush3.bf16.msra.mxu1 %v2311_v41 }
  0x8b   : > { %1349 = vmatmul.mubr.bf16.gmra.mrb[48].mxu0 %v2721_v24 }
  0x8c   : > { %1356 = vmatprep.mubr.bf16.mxu0 %v2807_v15 }
  0x8d   : > { %1446 = vmatmul.mubr.bf16.gmra.mrb[48].mxu1 %v2735_v33 }
  0x8e   : > { %1453 = vmatprep.mubr.bf16.mxu1 %v2810_v18 }
  0x93   : > { %1357 = vmatmul.mubr.bf16.gmra.mrb[52].mxu0 %v2774_v54 }
  0x94   : > { %1364 = vmatprep.mubr.bf16.mxu0 %v2855_v53 }
  0x95   : > { %1454 = vmatmul.mubr.bf16.gmra.mrb[52].mxu1 %v2791_v63 }
  0x96   : > { %1461 = vmatprep.mubr.bf16.mxu1 %v2826_v36 }
  0x9b   : > { %1365 = vmatmul.mubr.bf16.gmra.mrb[56].mxu0 %v2810_v18 }
  0x9c   : > { %1372 = vmatprep.mubr.bf16.mxu0 %v2831_v40 }
  0x9d   : > { %1462 = vmatmul.mubr.bf16.gmra.mrb[56].mxu1 %v2812_v20 }
  0x9e   : > { %1469 = vmatprep.mubr.bf16.mxu1 %v498_v39 }
  0xa3   : > { %1373 = vmatmul.mubr.bf16.gmra.mrb[60].mxu0 %v2826_v36 }
  0xa4   : > { %2167 = vmatprep.mubr.bf16.mxu0 %v2630_v45  ;;  %v2930_v45 = vld [vmem:[%s3084_s2] ss:$0 sm:$0xff] }
  0xa5   : > { %1470 = vmatmul.mubr.bf16.gmra.mrb[60].mxu1 %v487_v48 }
  0xa6   : > { %2175 = vmatprep.mubr.bf16.mxu1 %v2807_v15 }
  0xab   : > { %2168 = vmatmul.mubr.bf16.vlgmr.msra.gmra.mrb[64].mxu0 %v2674_v0 }
  0xac   : > { %2171 = vmatprep.mubr.bf16.mxu0 %v2726_v27 }
  0xad   : > { %2176 = vmatmul.mubr.bf16.vlgmr.msra.gmra.mrb[64].mxu1 %v2855_v53 }
  0xae   : > { %2179 = vmatprep.mubr.bf16.mxu1 %v2831_v40 }
  0xb3   : > { %2172 = vmatmul.mubr.bf16.gmra.mrb[68].mxu0 %v2781_v58 }
  0xb5   : > { %2180 = vmatmul.mubr.bf16.gmra.mrb[68].mxu1 %v506_v52 }
  0xfe   : > { %v1895_v61 = vpop.f32.mrb[0].mxu0 }
  0xff   : > { %v1896_v8 = vpop.f32.mrb[1].mxu0  ;;  %v1959_v27 = vpop.f32.mrb[0].mxu1 }
 0x100   : > { %v1897_v0 = vadd.f32 %v1896_v8, %v1895_v61  ;;  %v1898_v24 = vpop.f32.mrb[2].mxu0  ;;  %v1960_v54 = vpop.f32.mrb[1].mxu1 }
 0x101   : > { %v1899_v33 = vpop.f32.mrb[3].mxu0  ;;  %v1961_v58 = vadd.f32 %v1960_v54, %v1959_v27  ;;  %v1962_v59 = vpop.f32.mrb[2].mxu1 }
 0x102   : > { %v1125_v56 = vadd.f32 %v1897_v0, %v2930_v45  ;;  %v1900_v57 = vadd.f32 %v1899_v33, %v1898_v24  ;;  %v1963_v60 = vpop.f32.mrb[3].mxu1 }
 0x103   : > { %v1964_v2 = vadd.f32 %v1963_v60, %v1962_v59 }
 0x104   : > { %v1128_v63 = vadd.f32 %v1900_v57, %v2930_v45  ;;  %v2934_v1 = vadd.f32 %v1961_v58, %v1125_v56 }
 0x106   : > { %v2936_v3 = vadd.f32 %v1964_v2, %v1128_v63  ;;  %v1901_v5 = vpop.f32.mrb[4].mxu0 }
 0x107   : > { %v1902_v6 = vpop.f32.mrb[5].mxu0 }
 0x108   : > { %v1903_v7 = vadd.f32 %v1902_v6, %v1901_v5  ;;  %v1904_v9 = vpop.f32.mrb[6].mxu0  ;;  %v1965_v10 = vpop.f32.mrb[4].mxu1 }
 0x109   : > { %v1905_v11 = vpop.f32.mrb[7].mxu0  ;;  %v1966_v12 = vpop.f32.mrb[5].mxu1 }
 0x10a   : > { %v1133_v13 = vadd.f32 %v1903_v7, %v2930_v45  ;;  %v1906_v14 = vadd.f32 %v1905_v11, %v1904_v9  ;;  %v1967_v15 = vadd.f32 %v1966_v12, %v1965_v10  ;;  %v1968_v16 = vpop.f32.mrb[6].mxu1 }
 0x10b   : > { %v1969_v17 = vpop.f32.mrb[7].mxu1 }
 0x10c   : > { %v1136_v18 = vadd.f32 %v1906_v14, %v2930_v45  ;;  %v2940_v20 = vadd.f32 %v1967_v15, %v1133_v13  ;;  %v1970_v22 = vadd.f32 %v1969_v17, %v1968_v16 }
 0x10e   : > { %v2942_v23 = vadd.f32 %v1970_v22, %v1136_v18  ;;  %v1907_v26 = vpop.f32.mrb[8].mxu0 }
 0x10f   : > { %v1908_v28 = vpop.f32.mrb[9].mxu0 }
 0x110   : > { %v1909_v29 = vadd.f32 %v1908_v28, %v1907_v26  ;;  %v1910_v30 = vpop.f32.mrb[10].mxu0  ;;  %v1971_v31 = vpop.f32.mrb[8].mxu1 }
 0x111   : > { %v1911_v32 = vpop.f32.mrb[11].mxu0  ;;  %v1972_v34 = vpop.f32.mrb[9].mxu1 }
 0x112   : > { %v1141_v35 = vadd.f32 %v1909_v29, %v2930_v45  ;;  %v1912_v36 = vadd.f32 %v1911_v32, %v1910_v30  ;;  %v1973_v37 = vadd.f32 %v1972_v34, %v1971_v31  ;;  %v1974_v38 = vpop.f32.mrb[10].mxu1 }
 0x113   : > { %v1975_v40 = vpop.f32.mrb[11].mxu1 }
 0x114   : > { %v1144_v42 = vadd.f32 %v1912_v36, %v2930_v45  ;;  %v2946_v43 = vadd.f32 %v1973_v37, %v1141_v35  ;;  %v1976_v44 = vadd.f32 %v1975_v40, %v1974_v38 }
 0x116   : > { %v2948_v39 = vadd.f32 %v1976_v44, %v1144_v42  ;;  %v1913_v46 = vpop.f32.mrb[12].mxu0 }
 0x117   : > { %v1914_v47 = vpop.f32.mrb[13].mxu0 }
 0x118   : > { %v1915_v49 = vadd.f32 %v1914_v47, %v1913_v46  ;;  %v1916_v50 = vpop.f32.mrb[14].mxu0  ;;  %v1977_v51 = vpop.f32.mrb[12].mxu1 }
 0x119   : > { %v1917_v52 = vpop.f32.mrb[15].mxu0  ;;  %v1978_v53 = vpop.f32.mrb[13].mxu1 }
 0x11a   : > { %v1149_v55 = vadd.f32 %v1915_v49, %v2930_v45  ;;  %v1918_v21 = vadd.f32 %v1917_v52, %v1916_v50  ;;  %v1979_v4 = vadd.f32 %v1978_v53, %v1977_v51  ;;  %v1980_v62 = vpop.f32.mrb[14].mxu1 }
 0x11b   : > { %v1981_v19 = vpop.f32.mrb[15].mxu1 }
 0x11c   : > { %v1152_v25 = vadd.f32 %v1918_v21, %v2930_v45  ;;  %v2952_v41 = vadd.f32 %v1979_v4, %v1149_v55  ;;  %v1982_v48 = vadd.f32 %v1981_v19, %v1980_v62 }
 0x11e   : > { %v2954_v61 = vadd.f32 %v1982_v48, %v1152_v25  ;;  %v1919_v8 = vpop.f32.mrb[16].mxu0 }
 0x11f   : > { %v1920_v0 = vpop.f32.mrb[17].mxu0 }
 0x120   : > { %v1921_v24 = vadd.f32 %v1920_v0, %v1919_v8  ;;  %v1922_v27 = vpop.f32.mrb[18].mxu0  ;;  %v1983_v33 = vpop.f32.mrb[16].mxu1 }
 0x121   : > { %v1923_v54 = vpop.f32.mrb[19].mxu0  ;;  %v1984_v56 = vpop.f32.mrb[17].mxu1 }
 0x122   : > { %v1157_v57 = vadd.f32 %v1921_v24, %v2930_v45  ;;  %v1924_v58 = vadd.f32 %v1923_v54, %v1922_v27  ;;  %v1985_v59 = vadd.f32 %v1984_v56, %v1983_v33  ;;  %v1986_v60 = vpop.f32.mrb[18].mxu1 }
 0x123   : > { %v1987_v63 = vpop.f32.mrb[19].mxu1 }
 0x124   : > { %v1160_v2 = vadd.f32 %v1924_v58, %v2930_v45  ;;  %v2958_v5 = vadd.f32 %v1985_v59, %v1157_v57  ;;  %v1988_v6 = vadd.f32 %v1987_v63, %v1986_v60 }
 0x126   : > { %v2960_v7 = vadd.f32 %v1988_v6, %v1160_v2  ;;  %v1925_v9 = vpop.f32.mrb[20].mxu0 }
 0x127   : > { %v1926_v10 = vpop.f32.mrb[21].mxu0 }
 0x128   : > { %v1927_v11 = vadd.f32 %v1926_v10, %v1925_v9  ;;  %v1928_v12 = vpop.f32.mrb[22].mxu0  ;;  %v1989_v13 = vpop.f32.mrb[20].mxu1 }
 0x129   : > { %v1929_v14 = vpop.f32.mrb[23].mxu0  ;;  %v1990_v15 = vpop.f32.mrb[21].mxu1 }
 0x12a   : > { %v1165_v16 = vadd.f32 %v1927_v11, %v2930_v45  ;;  %v1930_v17 = vadd.f32 %v1929_v14, %v1928_v12  ;;  %v1991_v18 = vadd.f32 %v1990_v15, %v1989_v13  ;;  %v1992_v22 = vpop.f32.mrb[22].mxu1 }
 0x12b   : > { %v1993_v26 = vpop.f32.mrb[23].mxu1 }
 0x12c   : > { %v1168_v28 = vadd.f32 %v1930_v17, %v2930_v45  ;;  %v2964_v29 = vadd.f32 %v1991_v18, %v1165_v16  ;;  %v1994_v30 = vadd.f32 %v1993_v26, %v1992_v22 }
 0x12e   : > { %v2966_v31 = vadd.f32 %v1994_v30, %v1168_v28  ;;  %v1931_v32 = vpop.f32.mrb[24].mxu0 }
 0x12f   : > { %v1932_v34 = vpop.f32.mrb[25].mxu0 }
 0x130   : > { %v1933_v35 = vadd.f32 %v1932_v34, %v1931_v32  ;;  %v1934_v36 = vpop.f32.mrb[26].mxu0  ;;  %v1995_v37 = vpop.f32.mrb[24].mxu1 }
 0x131   : > { %v1935_v38 = vpop.f32.mrb[27].mxu0  ;;  %v1996_v40 = vpop.f32.mrb[25].mxu1 }
 0x132   : > { %v1173_v42 = vadd.f32 %v1933_v35, %v2930_v45  ;;  %v1936_v44 = vadd.f32 %v1935_v38, %v1934_v36  ;;  %v1997_v46 = vadd.f32 %v1996_v40, %v1995_v37  ;;  %v1998_v47 = vpop.f32.mrb[26].mxu1 }
 0x133   : > { %v1999_v49 = vpop.f32.mrb[27].mxu1 }
 0x134   : > { %v1176_v50 = vadd.f32 %v1936_v44, %v2930_v45  ;;  %v2970_v51 = vadd.f32 %v1997_v46, %v1173_v42  ;;  %v2000_v52 = vadd.f32 %v1999_v49, %v1998_v47 }
 0x136   : > { %v2972_v53 = vadd.f32 %v2000_v52, %v1176_v50  ;;  %v1937_v55 = vpop.f32.mrb[28].mxu0 }
 0x137   : > { %v1938_v21 = vpop.f32.mrb[29].mxu0 }
 0x138   : > { %v1939_v4 = vadd.f32 %v1938_v21, %v1937_v55  ;;  %v1940_v62 = vpop.f32.mrb[30].mxu0  ;;  %v2001_v19 = vpop.f32.mrb[28].mxu1 }
 0x139   : > { %v1941_v25 = vpop.f32.mrb[31].mxu0  ;;  %v2002_v48 = vpop.f32.mrb[29].mxu1 }
 0x13a   : > { %v1181_v8 = vadd.f32 %v1939_v4, %v2930_v45  ;;  %v1942_v0 = vadd.f32 %v1941_v25, %v1940_v62  ;;  %v2003_v24 = vadd.f32 %v2002_v48, %v2001_v19  ;;  %v2004_v27 = vpop.f32.mrb[30].mxu1 }
 0x13b   : > { %v2005_v33 = vpop.f32.mrb[31].mxu1 }
 0x13c   : > { %v1184_v54 = vadd.f32 %v1942_v0, %v2930_v45  ;;  %v2976_v56 = vadd.f32 %v2003_v24, %v1181_v8  ;;  %v2006_v57 = vadd.f32 %v2005_v33, %v2004_v27 }
 0x13e   : > { %v2978_v58 = vadd.f32 %v2006_v57, %v1184_v54  ;;  %v2023_v59 = vpop.f32.mrb[32].mxu0 }
 0x13f   : > { %v2024_v60 = vpop.f32.mrb[33].mxu0 }
 0x140   : > { %v2025_v63 = vadd.f32 %v2024_v60, %v2023_v59  ;;  %v2026_v2 = vpop.f32.mrb[34].mxu0  ;;  %v2087_v6 = vpop.f32.mrb[32].mxu1 }
 0x141   : > { %v2027_v9 = vpop.f32.mrb[35].mxu0  ;;  %v2088_v10 = vpop.f32.mrb[33].mxu1 }
 0x142   : > { %v1319_v11 = vadd.f32 %v2025_v63, %v2934_v1  ;;  %v2028_v12 = vadd.f32 %v2027_v9, %v2026_v2  ;;  %v2089_v13 = vadd.f32 %v2088_v10, %v2087_v6  ;;  %v2090_v14 = vpop.f32.mrb[34].mxu1 }
 0x143   : > { %v2091_v15 = vpop.f32.mrb[35].mxu1 }
 0x144   : > { %v1322_v45 = vadd.f32 %v2028_v12, %v2936_v3  ;;  %v2092_v16 = vadd.f32 %v2091_v15, %v2090_v14  ;;  %v2982_v17 = vadd.f32 %v2089_v13, %v1319_v11 }
 0x146   : > { %v2029_v18 = vpop.f32.mrb[36].mxu0  ;;  %v2984_v22 = vadd.f32 %v2092_v16, %v1322_v45 }
 0x147   : > { %v2030_v26 = vpop.f32.mrb[37].mxu0 }
 0x148   : > { %v2031_v28 = vadd.f32 %v2030_v26, %v2029_v18  ;;  %v2032_v30 = vpop.f32.mrb[38].mxu0  ;;  %v2093_v32 = vpop.f32.mrb[36].mxu1 }
 0x149   : > { %v2033_v34 = vpop.f32.mrb[39].mxu0  ;;  %v2094_v35 = vpop.f32.mrb[37].mxu1 }
 0x14a   : > { %v1327_v1 = vadd.f32 %v2031_v28, %v2940_v20  ;;  %v2034_v36 = vadd.f32 %v2033_v34, %v2032_v30  ;;  %v2095_v37 = vadd.f32 %v2094_v35, %v2093_v32  ;;  %v2096_v38 = vpop.f32.mrb[38].mxu1 }
 0x14b   : > { %v2097_v40 = vpop.f32.mrb[39].mxu1 }
 0x14c   : > { %v1330_v3 = vadd.f32 %v2034_v36, %v2942_v23  ;;  %v2098_v42 = vadd.f32 %v2097_v40, %v2096_v38  ;;  %v2988_v44 = vadd.f32 %v2095_v37, %v1327_v1 }
 0x14e   : > { %v2035_v46 = vpop.f32.mrb[40].mxu0  ;;  %v2990_v47 = vadd.f32 %v2098_v42, %v1330_v3 }
 0x14f   : > { %v2036_v49 = vpop.f32.mrb[41].mxu0 }
 0x150   : > { %v2037_v50 = vadd.f32 %v2036_v49, %v2035_v46  ;;  %v2038_v52 = vpop.f32.mrb[42].mxu0  ;;  %v2099_v55 = vpop.f32.mrb[40].mxu1 }
 0x151   : > { %v2039_v21 = vpop.f32.mrb[43].mxu0  ;;  %v2100_v4 = vpop.f32.mrb[41].mxu1 }
 0x152   : > { %v1335_v20 = vadd.f32 %v2037_v50, %v2946_v43  ;;  %v2040_v62 = vadd.f32 %v2039_v21, %v2038_v52  ;;  %v2101_v19 = vadd.f32 %v2100_v4, %v2099_v55  ;;  %v2102_v25 = vpop.f32.mrb[42].mxu1 }
 0x153   : > { %v2103_v48 = vpop.f32.mrb[43].mxu1 }
 0x154   : > { %v1338_v23 = vadd.f32 %v2040_v62, %v2948_v39  ;;  %v2104_v8 = vadd.f32 %v2103_v48, %v2102_v25  ;;  %v2994_v0 = vadd.f32 %v2101_v19, %v1335_v20 }
 0x156   : > { %v2041_v24 = vpop.f32.mrb[44].mxu0  ;;  %v2996_v27 = vadd.f32 %v2104_v8, %v1338_v23 }
 0x157   : > { %v2042_v33 = vpop.f32.mrb[45].mxu0 }
 0x158   : > { %v2043_v54 = vadd.f32 %v2042_v33, %v2041_v24  ;;  %v2044_v57 = vpop.f32.mrb[46].mxu0  ;;  %v2105_v59 = vpop.f32.mrb[44].mxu1 }
 0x159   : > { %v2045_v60 = vpop.f32.mrb[47].mxu0  ;;  %v2106_v63 = vpop.f32.mrb[45].mxu1 }
 0x15a   : > { %v1343_v43 = vadd.f32 %v2043_v54, %v2952_v41  ;;  %v2046_v2 = vadd.f32 %v2045_v60, %v2044_v57  ;;  %v2107_v6 = vadd.f32 %v2106_v63, %v2105_v59  ;;  %v2108_v9 = vpop.f32.mrb[46].mxu1 }
 0x15b   : > { %v2109_v10 = vpop.f32.mrb[47].mxu1 }
 0x15c   : > { %v1346_v39 = vadd.f32 %v2046_v2, %v2954_v61  ;;  %v2110_v11 = vadd.f32 %v2109_v10, %v2108_v9  ;;  %v3000_v12 = vadd.f32 %v2107_v6, %v1343_v43 }
 0x15e   : > { %v2047_v13 = vpop.f32.mrb[48].mxu0  ;;  %v3002_v14 = vadd.f32 %v2110_v11, %v1346_v39 }
 0x15f   : > { %v2048_v15 = vpop.f32.mrb[49].mxu0 }
 0x160   : > { %v2049_v45 = vadd.f32 %v2048_v15, %v2047_v13  ;;  %v2050_v16 = vpop.f32.mrb[50].mxu0  ;;  %v2111_v18 = vpop.f32.mrb[48].mxu1 }
 0x161   : > { %v2051_v26 = vpop.f32.mrb[51].mxu0  ;;  %v2112_v28 = vpop.f32.mrb[49].mxu1 }
 0x162   : > { %v1351_v41 = vadd.f32 %v2049_v45, %v2958_v5  ;;  %v2052_v30 = vadd.f32 %v2051_v26, %v2050_v16  ;;  %v2113_v32 = vadd.f32 %v2112_v28, %v2111_v18  ;;  %v2114_v34 = vpop.f32.mrb[50].mxu1 }
 0x163   : > { %v2115_v35 = vpop.f32.mrb[51].mxu1 }
 0x164   : > { %v1354_v61 = vadd.f32 %v2052_v30, %v2960_v7  ;;  %v2116_v1 = vadd.f32 %v2115_v35, %v2114_v34  ;;  %v3006_v36 = vadd.f32 %v2113_v32, %v1351_v41 }
 0x166   : > { %v2053_v37 = vpop.f32.mrb[52].mxu0  ;;  %v3008_v38 = vadd.f32 %v2116_v1, %v1354_v61 }
 0x167   : > { %v2054_v40 = vpop.f32.mrb[53].mxu0 }
 0x168   : > { %v2055_v3 = vadd.f32 %v2054_v40, %v2053_v37  ;;  %v2056_v42 = vpop.f32.mrb[54].mxu0  ;;  %v2117_v46 = vpop.f32.mrb[52].mxu1 }
 0x169   : > { %v2057_v49 = vpop.f32.mrb[55].mxu0  ;;  %v2118_v50 = vpop.f32.mrb[53].mxu1 }
 0x16a   : > { %v1359_v5 = vadd.f32 %v2055_v3, %v2964_v29  ;;  %v2058_v52 = vadd.f32 %v2057_v49, %v2056_v42  ;;  %v2119_v55 = vadd.f32 %v2118_v50, %v2117_v46  ;;  %v2120_v21 = vpop.f32.mrb[54].mxu1 }
 0x16b   : > { %v2121_v4 = vpop.f32.mrb[55].mxu1 }
 0x16c   : > { %v1362_v7 = vadd.f32 %v2058_v52, %v2966_v31  ;;  %v2122_v20 = vadd.f32 %v2121_v4, %v2120_v21  ;;  %v1456_v62 = vadd.f32 %v2119_v55, %v1359_v5 }
 0x16e   : > { %v2059_v19 = vpop.f32.mrb[56].mxu0  ;;  %v1459_v25 = vadd.f32 %v2122_v20, %v1362_v7 }
 0x16f   : > { %v2060_v48 = vpop.f32.mrb[57].mxu0 }
 0x170   : > { %v2061_v23 = vadd.f32 %v2060_v48, %v2059_v19  ;;  %v2062_v8 = vpop.f32.mrb[58].mxu0  ;;  %v2123_v24 = vpop.f32.mrb[56].mxu1 }
 0x171   : > { %v2063_v33 = vpop.f32.mrb[59].mxu0  ;;  %v2124_v54 = vpop.f32.mrb[57].mxu1 }
 0x172   : > { %v1367_v29 = vadd.f32 %v2061_v23, %v2970_v51  ;;  %v2064_v57 = vadd.f32 %v2063_v33, %v2062_v8  ;;  %v2125_v59 = vadd.f32 %v2124_v54, %v2123_v24  ;;  %v2126_v60 = vpop.f32.mrb[58].mxu1 }
 0x173   : > { %v2127_v63 = vpop.f32.mrb[59].mxu1 }
 0x174   : > { %v1370_v31 = vadd.f32 %v2064_v57, %v2972_v53  ;;  %v2128_v43 = vadd.f32 %v2127_v63, %v2126_v60  ;;  %v3015_v2 = vadd.f32 %v2125_v59, %v1367_v29 }
 0x176   : > { %v2065_v6 = vpop.f32.mrb[60].mxu0  ;;  %v3018_v9 = vadd.f32 %v2128_v43, %v1370_v31 }
 0x177   : > { %v2066_v10 = vpop.f32.mrb[61].mxu0 }
 0x178   : > { %v2067_v39 = vadd.f32 %v2066_v10, %v2065_v6  ;;  %v2068_v11 = vpop.f32.mrb[62].mxu0  ;;  %v2129_v13 = vpop.f32.mrb[60].mxu1 }
 0x179   : > { %v2069_v51 = vpop.f32.mrb[63].mxu0  ;;  %v2130_v15 = vpop.f32.mrb[61].mxu1 }
 0x17a   : > { %v1375_v45 = vadd.f32 %v2067_v39, %v2976_v56  ;;  %v2070_v16 = vadd.f32 %v2069_v51, %v2068_v11  ;;  %v2131_v18 = vadd.f32 %v2130_v15, %v2129_v13  ;;  %v2132_v53 = vpop.f32.mrb[62].mxu1 }
 0x17b   : > { %v2133_v26 = vpop.f32.mrb[63].mxu1 }
 0x17c   : > { %v1378_v28 = vadd.f32 %v2070_v16, %v2978_v58  ;;  %v2134_v41 = vadd.f32 %v2133_v26, %v2132_v53  ;;  %v1472_v30 = vadd.f32 %v2131_v18, %v1375_v45 }
 0x17e   : > { %v2169_v32 = vpop.f32.mrb[64].mxu0  ;;  %v1475_v34 = vadd.f32 %v2134_v41, %v1378_v28 }
 0x17f   : > { %v1521_v56 = vadd.f32 %v2169_v32, %v2988_v44  ;;  %v1512_v35 = vpop.f32.mrb[65].mxu0 }
 0x180   : > { %v2177_v61 = vpop.f32.mrb[64].mxu1  ;;  %v1513_v1 = vadd.f32 %v1512_v35, %v2982_v17  ;;  %v2170_v58 = vpop.f32.mrb[66].mxu0 }
 0x181   : > { %1577 = vst [vmem:[%s3025_s9 + $0x10] sm:$0xff] %v1521_v56  ;;  %v3030_v37 = vadd.f32 %v2177_v61, %v1456_v62  ;;  %v1544_v40 = vpop.f32.mrb[65].mxu1  ;;  %v1524_v3 = vadd.f32 %v2170_v58, %v2990_v47  ;;  %v1515_v42 = vpop.f32.mrb[67].mxu0  ;;  %v1615_v21 = vmul.f32 %v1521_v56, %v1521_v56 }
 0x182   : > { %1575 = vst [vmem:[%s3025_s9] sm:$0xff] %v1513_v1  ;;  %v1545_v46 = vadd.f32 %v1544_v40, %v3006_v36  ;;  %v2178_v49 = vpop.f32.mrb[66].mxu1  ;;  %v1516_v44 = vadd.f32 %v1515_v42, %v2984_v22  ;;  %v1613_v5 = vmul.f32 %v1513_v1, %v1513_v1 }
 0x183   : > { %1585 = vst [vmem:[%s3025_s9 + $0x50] sm:$0xff] %v3030_v37  ;;  %1578 = vst [vmem:[%s3025_s9 + $0x18] sm:$0xff] %v1524_v3  ;;  %v1556_v17 = vadd.f32 %v2178_v49, %v1459_v25  ;;  %v1547_v50 = vpop.f32.mrb[67].mxu1  ;;  %v1616_v62 = vmul.f32 %v1524_v3, %v1524_v3 }
 0x184   : > { %1583 = vst [vmem:[%s3025_s9 + $0x40] sm:$0xff] %v1545_v46  ;;  %1576 = vst [vmem:[%s3025_s9 + $0x8] sm:$0xff] %v1516_v44  ;;  %v1591_v52 = vadd.f32 %v1516_v44, %v1513_v1  ;;  %v1614_v55 = vmul.f32 %v1516_v44, %v1516_v44  ;;  %v1548_v47 = vadd.f32 %v1547_v50, %v3008_v38 }
 0x185   : > { %1586 = vst [vmem:[%s3025_s9 + $0x58] sm:$0xff] %v1556_v17  ;;  %v1621_v45 = vmul.f32 %v1545_v46, %v1545_v46 }
 0x186   : > { %v1592_v36 = vadd.f32 %v1591_v52, %v1521_v56  ;;  %v1629_v4 = vadd.f32 %v1614_v55, %v1613_v5  ;;  %1584 = vst [vmem:[%s3025_s9 + $0x48] sm:$0xff] %v1548_v47  ;;  %v2173_v22 = vpop.f32.mrb[68].mxu0 }
 0x187   : > { %v1537_v7 = vadd.f32 %v2173_v22, %v3000_v12  ;;  %v1528_v20 = vpop.f32.mrb[69].mxu0 }
 0x188   : > { %v1630_v19 = vadd.f32 %v1629_v4, %v1615_v21  ;;  %v2181_v25 = vpop.f32.mrb[68].mxu1  ;;  %v1529_v48 = vadd.f32 %v1528_v20, %v2994_v0  ;;  %v1593_v23 = vadd.f32 %v1592_v36, %v1524_v3  ;;  %v2174_v8 = vpop.f32.mrb[70].mxu0 }
 0x189   : > { %1581 = vst [vmem:[%s3025_s9 + $0x30] sm:$0xff] %v1537_v7  ;;  %v1569_v38 = vadd.f32 %v2181_v25, %v1472_v30  ;;  %v1560_v24 = vpop.f32.mrb[69].mxu1  ;;  %v1540_v33 = vadd.f32 %v2174_v8, %v3002_v14  ;;  %v1531_v54 = vpop.f32.mrb[71].mxu0  ;;  %v1619_v39 = vmul.f32 %v1537_v7, %v1537_v7  ;;  %v1624_v30 = vmul.f32 %v1556_v17, %v1556_v17 }
 0x18a   : > { %1579 = vst [vmem:[%s3025_s9 + $0x20] sm:$0xff] %v1529_v48  ;;  %v1594_v12 = vadd.f32 %v1593_v23, %v1529_v48  ;;  %v1617_v29 = vmul.f32 %v1529_v48, %v1529_v48  ;;  %v1631_v57 = vadd.f32 %v1630_v19, %v1616_v62  ;;  %v1561_v59 = vadd.f32 %v1560_v24, %v3015_v2  ;;  %v2182_v60 = vpop.f32.mrb[70].mxu1 }
 0x18b   : > { %1589 = vst [vmem:[%s3025_s9 + $0x70] sm:$0xff] %v1569_v38  ;;  %1582 = vst [vmem:[%s3025_s9 + $0x38] sm:$0xff] %v1540_v33  ;;  %v1572_v0 = vadd.f32 %v2182_v60, %v1475_v34  ;;  %v1532_v63 = vadd.f32 %v1531_v54, %v2996_v27  ;;  %v1563_v31 = vpop.f32.mrb[71].mxu1  ;;  %v1620_v2 = vmul.f32 %v1540_v33, %v1540_v33 }
 0x18c   : > { %v1632_v43 = vadd.f32 %v1631_v57, %v1617_v29  ;;  %1587 = vst [vmem:[%s3025_s9 + $0x60] sm:$0xff] %v1561_v59  ;;  %v1564_v14 = vadd.f32 %v1563_v31, %v3018_v9  ;;  %v1622_v27 = vmul.f32 %v1548_v47, %v1548_v47  ;;  %v1623_v9 = vmul.f32 %v3030_v37, %v3030_v37 }
 0x18d   : > { %1590 = vst [vmem:[%s3025_s9 + $0x78] sm:$0xff] %v1572_v0  ;;  %1580 = vst [vmem:[%s3025_s9 + $0x28] sm:$0xff] %v1532_v63  ;;  %v1595_v6 = vadd.f32 %v1594_v12, %v1532_v63  ;;  %v1618_v10 = vmul.f32 %v1532_v63, %v1532_v63  ;;  %v1625_v56 = vmul.f32 %v1561_v59, %v1561_v59 }
 0x18e   : > { %1588 = vst [vmem:[%s3025_s9 + $0x68] sm:$0xff] %v1564_v14  ;;  %v1626_v58 = vmul.f32 %v1564_v14, %v1564_v14  ;;  %v1627_v3 = vmul.f32 %v1569_v38, %v1569_v38  ;;  %v1628_v49 = vmul.f32 %v1572_v0, %v1572_v0 }
 0x18f   : > { %v1596_v11 = vadd.f32 %v1595_v6, %v1537_v7  ;;  %v1633_v13 = vadd.f32 %v1632_v43, %v1618_v10 }
 0x191   : > { %v1597_v51 = vadd.f32 %v1596_v11, %v1540_v33  ;;  %v1634_v15 = vadd.f32 %v1633_v13, %v1619_v39 }
 0x193   : > { %v1598_v16 = vadd.f32 %v1597_v51, %v1545_v46  ;;  %v1635_v18 = vadd.f32 %v1634_v15, %v1620_v2 }
 0x195   : > { %v1636_v53 = vadd.f32 %v1635_v18, %v1621_v45  ;;  %v1599_v26 = vadd.f32 %v1598_v16, %v1548_v47 }
 0x197   : > { %v1600_v28 = vadd.f32 %v1599_v26, %v3030_v37  ;;  %v1637_v41 = vadd.f32 %v1636_v53, %v1622_v27 }
 0x199   : > { %v1601_v32 = vadd.f32 %v1600_v28, %v1556_v17  ;;  %v1638_v34 = vadd.f32 %v1637_v41, %v1623_v9 }
 0x19b   : > { %v1602_v35 = vadd.f32 %v1601_v32, %v1561_v59  ;;  %v1639_v61 = vadd.f32 %v1638_v34, %v1624_v30 }
 0x19d   : > { %v1603_v1 = vadd.f32 %v1602_v35, %v1564_v14  ;;  %v1640_v40 = vadd.f32 %v1639_v61, %v1625_v56 }
 0x19f   : > { %v1604_v42 = vadd.f32 %v1603_v1, %v1569_v38  ;;  %v1641_v46 = vadd.f32 %v1640_v40, %v1626_v58 }
 0x1a1   : > { %v1605_v44 = vadd.f32 %v1604_v42, %v1572_v0  ;;  %v1642_v50 = vadd.f32 %v1641_v46, %v1627_v3 }
 0x1a3   : > { %v1606_v37 = vrot.slane %v1605_v44, 4  ;;  %v1643_v5 = vadd.f32 %v1642_v50, %v1628_v49 }
 0x1a5   : > { %v1607_v17 = vadd.f32 %v1606_v37, %v1605_v44  ;;  %v1644_v52 = vrot.slane %v1643_v5, 4 }
 0x1a7   : > { %v1608_v55 = vrot.slane %v1607_v17, 2  ;;  %v1645_v47 = vadd.f32 %v1644_v52, %v1643_v5 }
 0x1a9   : > { %v1609_v21 = vadd.f32 %v1608_v55, %v1607_v17  ;;  %v1646_v36 = vrot.slane %v1645_v47, 2 }
 0x1ab   : > { %v1610_v4 = vrot.slane %v1609_v21, 1  ;;  %v1647_v22 = vadd.f32 %v1646_v36, %v1645_v47 }
 0x1ad   : > { %v1611_v7 = vadd.f32 %v1610_v4, %v1609_v21  ;;  %v1648_v20 = vrot.slane %v1647_v22, 1 }
 0x1af   : > { %1612 = vst [vmem:[%s270_s15] sm:$0x1] %v1611_v7  ;;  %v1649_v62 = vadd.f32 %v1648_v20, %v1647_v22 }
 0x1b1   : > { %1650 = vst [vmem:[%s270_s15 + $0x1] sm:$0x1] %v1649_v62 }
 0x1b2 PF: > { %s16_s22 = sadd.s32 1, %s2350_s22   ;;  %s3088_s18 = smov %s2342_s20 }
 0x1b3   : > { %p13_p8 = scmp.ge.s32.totalorder %s16_s22, 6   ;;  %s3089_s19 = smov %s2346_s21 }
 0x1b4   : > { %s3090_s20 = smov %s3093_s3  ;;  %s3091_s21 = smov %s3097_s23 }
 0x1b5   :  { %15 = sbr.rel (!%p13_p8) target bundleno = 3 (0x3), region = 79 }

// kernel: double_conv.4
= control target key start
LH: loop header
LB: loop body
LE: loop exit
PB: predicated region body
PF: predicated region fallthrough
CT: control target
= control target key end

     0   :  { %s2756_s18 = smov 0   ;;  %s2758_s19 = smov 0   ;;  %s3954_s0 = inlined_call_operand.vmem [shape: f32[2,18,18,128], index: 0, kind: input, shape index: {}]   ;;  %s3955_s1 = inlined_call_operand.vmem [shape: bf16[1152,128], index: 1, kind: input, shape index: {}]   ;;  %s3956_s2 = inlined_call_operand.vmem [shape: f32[1,128], index: 2, kind: input, shape index: {}]   ;;  %s3957_s3 = inlined_call_operand.vmem [shape: f32[2,128], index: 3, kind: input, shape index: {}]   ;;  %s3958_s4 = inlined_call_operand.vmem [shape: f32[2,16,16,128], index: 4, kind: output, shape index: {0}]   ;;  %s3959_s5 = inlined_call_operand.vmem [shape: f32[2,2,2,128], index: 5, kind: output, shape index: {1}]  }
   0x1   :  { %s2760_s20 = smov 0   ;;  %s2762_s21 = smov 0  }
   0x2   :  { %s2764_s22 = smov 0  }
   0x3 LB: > { %s25_s23 = sadd.s32 1, %s2716_s20  ;;  %s28_s24 = sadd.s32 1, %s2720_s21  ;;  %s2724_s22 = sphi %s2764_s22, %s16_s22   ;;  %s2720_s21 = sphi %s2762_s21, %s4050_s21   ;;  %s2716_s20 = sphi %s2760_s20, %s4049_s20   ;;  %s2712_s19 = sphi %s2758_s19, %s4048_s19   ;;  %s2708_s18 = sphi %s2756_s18, %s4047_s18  }
   0x4   : > { %p26_p0 = scmp.ge.s32.totalorder %s25_s23, 2  ;;  %p2094_p1 = scmp.ge.s32.totalorder %s2724_s22, 1 }
   0x5   : > { %p206_p2 = scmp.lt.s32.totalorder %s2724_s22, 5 }
   0x6   : > { %s4052_s23 = smov (%p26_p0, %s25_s23), 0  ;;  %s4054_s24 = smov (!%p26_p0, %s28_s24), %s2720_s21 }
   0x7   : > { %p207_p3 = pnand %p2094_p1, %p206_p2  ;;  %p30_p4 = scmp.ge.s32.totalorder %s4054_s24, 2 }
   0x8   : > { %v2614_v0 = vld [vmem:[%s3955_s1 + $0x40] sm:$0xff] (!%p207_p3)   ;;  %v2618_v4 = vld [vmem:[%s3955_s1 + $0x48] sm:$0xff] (!%p207_p3)   ;;  %v2622_v8 = vld [vmem:[%s3955_s1 + $0x50] sm:$0xff] (!%p207_p3)   ;;  %p247_p5 = scmp.lt.s32.totalorder (!%p207_p3), %s2712_s19, 1  ;;  %v415_v19 = vlaneseq (!%p207_p3)  ;;  %s2855_s29 = sshll.u32 (!%p207_p3), %s2708_s18, 3  ;;  %vm637_vm4 = vcmask (!%p207_p3), 1046528  }
   0x9   : > { %s4056_s24 = smov (%p30_p4, %s4054_s24), 0  ;;  %210 = sbr.rel (%p207_p3) target bundleno = 434 (0x1b2), region = 36 }
   0xa   : > { %v2615_v1 = vld [vmem:[%s3955_s1 + $0xc0] sm:$0xff] (!%p207_p3)   ;;  %2253 = vmatprep.subr.bf16.mxu0 (!%p207_p3), %v2614_v0  ;;  %v2619_v5 = vld [vmem:[%s3955_s1 + $0xc8] sm:$0xff] (!%p207_p3)   ;;  %v2623_v9 = vld [vmem:[%s3955_s1 + $0xd0] sm:$0xff] (!%p207_p3)   ;;  %v2868_v24 = vstv (!%p207_p3), %s2855_s29  ;;  %v2870_v25 = vshrl.u32 (!%p207_p3), %v415_v19, 7  ;;  %s2103_s16 = smul.u32 (!%p207_p3), 192, %s2708_s18  ;;  %vm3961_vm9 = vcmask (!%p207_p3), 1045504  }
   0xb   : > { %v2616_v2 = vld [vmem:[%s3955_s1] sm:$0xff] (!%p207_p3)   ;;  %2317 = vmatprep.subr.bf16.mxu1 (!%p207_p3), %v2615_v1  ;;  %v2620_v6 = vld [vmem:[%s3955_s1 + $0x8] sm:$0xff] (!%p207_p3)   ;;  %v2624_v10 = vld [vmem:[%s3955_s1 + $0x10] sm:$0xff] (!%p207_p3)   ;;  %vm419_vm0 = vcmp.ge.s32.totalorder (!%p207_p3), %v2868_v24, 1  ;;  %vm429_vm1 = vcmp.le.s32.totalorder (!%p207_p3), %v2868_v24, 16  ;;  %v406_v34 = vadd.s32 (!%p207_p3), 1, %v2868_v24 }
   0xc   : > { %v2617_v3 = vld [vmem:[%s3955_s1 + $0x80] sm:$0xff] (!%p207_p3)   ;;  %2254 = vmatpush3.bf16.msra.mxu0 (!%p207_p3), %v2616_v2  ;;  %v2621_v7 = vld [vmem:[%s3955_s1 + $0x88] sm:$0xff] (!%p207_p3)   ;;  %v2625_v11 = vld [vmem:[%s3955_s1 + $0x90] sm:$0xff] (!%p207_p3)   ;;  %v2890_v30 = vadd.s32 (!%p207_p3), 16, %v2870_v25  ;;  %vm449_vm2 = vcmp.ge.s32.totalorder (!%p207_p3), %v2870_v25, 1  ;;  %v2910_v36 = vadd.s32 (!%p207_p3), 2, %v2868_v24 }
   0xd   : > { %2318 = vmatpush3.bf16.msra.mxu1 (!%p207_p3), %v2617_v3  ;;  %2255 = vmatprep.subr.bf16.mxu0 (!%p207_p3), %v2618_v4  ;;  %v2626_v12 = vld [vmem:[%s3955_s1 + $0x58] sm:$0xff] (!%p207_p3)   ;;  %v2630_v16 = vld [vmem:[%s3955_s1 + $0x60] sm:$0xff] (!%p207_p3)   ;;  %v2634_v21 = vld [vmem:[%s3955_s1 + $0x68] sm:$0xff] (!%p207_p3)   ;;  %v2920_v41 = vadd.s32 (!%p207_p3), 3, %v2868_v24  ;;  %vm420_vm6 = vcmp.ge.s32.totalorder (!%p207_p3), %v406_v34, 1  ;;  %vm430_vm7 = vcmp.le.s32.totalorder (!%p207_p3), %v406_v34, 16 }
   0xe   : > { %2319 = vmatprep.subr.bf16.mxu1 (!%p207_p3), %v2619_v5  ;;  %v2627_v13 = vld [vmem:[%s3955_s1 + $0xd8] sm:$0xff] (!%p207_p3)   ;;  %v2631_v17 = vld [vmem:[%s3955_s1 + $0xe0] sm:$0xff] (!%p207_p3)   ;;  %v2635_v22 = vld [vmem:[%s3955_s1 + $0xe8] sm:$0xff] (!%p207_p3)   ;;  %vm3960_vm3 = vcmp.le.s32.totalorder (!%p207_p3), %v2890_v30, 16  ;;  %vm421_vm10 = vcmp.ge.s32.totalorder (!%p207_p3), %v2910_v36, 1  ;;  %vm431_vm12 = vcmp.le.s32.totalorder (!%p207_p3), %v2910_v36, 16 }
   0xf   : > { %v2628_v14 = vld [vmem:[%s3955_s1 + $0x18] sm:$0xff] (!%p207_p3)   ;;  %v2632_v18 = vld [vmem:[%s3955_s1 + $0x20] sm:$0xff] (!%p207_p3)   ;;  %v2636_v23 = vld [vmem:[%s3955_s1 + $0x28] sm:$0xff] (!%p207_p3)   ;;  %v2967_v55 = vadd.s32 (!%p207_p3), 4, %v2868_v24  ;;  %vm432_vm15 = vcmp.le.s32.totalorder (!%p207_p3), %v2920_v41, 16  ;;  %v2995_v1 = vadd.s32 (!%p207_p3), 5, %v2868_v24 }
  0x10   : > { %2256 = vmatpush3.bf16.msra.mxu0 %v2620_v6  ;;  %v2629_v15 = vld [vmem:[%s3955_s1 + $0x98] sm:$0xff]   ;;  %s4058_s19 = smov (!%p247_p5, %s2712_s19), 1  ;;  %v2633_v20 = vld [vmem:[%s3955_s1 + $0xa0] sm:$0xff]   ;;  %v2637_v26 = vld [vmem:[%s3955_s1 + $0xa8] sm:$0xff]   ;;  %v2998_v2 = vadd.s32 6, %v2868_v24  ;;  %p255_p6 = scmp.lt.s32.totalorder %s2855_s29, 15 }
  0x11   : > { %2320 = vmatpush3.bf16.msra.mxu1 %v2621_v7  ;;  %2257 = vmatprep.subr.bf16.mxu0 %v2622_v8  ;;  %s2573_s9 = smul.u32 432, %s4058_s19  ;;  %v2638_v27 = vld [vmem:[%s3955_s1 + $0x70] sm:$0xff]   ;;  %v2642_v32 = vld [vmem:[%s3955_s1 + $0x78] sm:$0xff]   ;;  %v2925_v42 = vld [vmem:[%s3957_s3] ss:$0 sm:$0xff]  ;;  %p265_p7 = scmp.lt.s32.totalorder %s2708_s18, 1 }
  0x12   : > { %2321 = vmatprep.subr.bf16.mxu1 %v2623_v9  ;;  %v2639_v28 = vld [vmem:[%s3955_s1 + $0xf0] sm:$0xff]   ;;  %v2643_v33 = vld [vmem:[%s3955_s1 + $0xf8] sm:$0xff]   ;;  %v2930_v43 = vld [vmem:[%s3957_s3 + $0x1] ss:$0 sm:$0xff]  ;;  %s4060_s29 = smov (!%p255_p6, %s2855_s29), 15  ;;  %s2100_s12 = sshll.u32 %s4058_s19, 1 }
  0x13   : > { %v2640_v29 = vld [vmem:[%s3955_s1 + $0x30] sm:$0xff]   ;;  %s251_s6 = scalar_lea.vmem %s3954_s0, %s2573_s9  ;;  %v2644_v35 = vld [vmem:[%s3955_s1 + $0x38] sm:$0xff]   ;;  %vm2936_vm5 = vmand %vm419_vm0, %vm429_vm1  ;;  %s4062_s18 = smov (!%p265_p7, %s2708_s18), 1 }
  0x14   : > { %2258 = vmatpush3.bf16.msra.mxu0 %v2624_v10  ;;  %v2641_v31 = vld [vmem:[%s3955_s1 + $0xb0] sm:$0xff]   ;;  %s2903_s13 = scalar_lea.vmem %s251_s6, %s2103_s16  ;;  %v2645_v37 = vld [vmem:[%s3955_s1 + $0xb8] sm:$0xff]   ;;  %vm2947_vm8 = vmand %vm2936_vm5, %vm449_vm2  ;;  %s2097_s6 = sshll.u32 %s4060_s29, 1 }
  0x15   : > { %2322 = vmatpush3.bf16.msra.mxu1 %v2625_v11  ;;  %2259 = vmatprep.subr.bf16.mxu0 %v2626_v12  ;;  %v275_v38 = vld [vmem:[%s2903_s13] sm:$0xff]  ;;  %v276_v39 = vld [vmem:[%s2903_s13 + $0x8] sm:$0xff]  ;;  %v277_v40 = vld [vmem:[%s2903_s13 + $0x10] sm:$0x3]  ;;  %v3012_v12 = vadd.s32 7, %v2868_v24  ;;  %s268_s9 = sadd.s32 %s2100_s12, %s4062_s18 }
  0x16   : > { %2323 = vmatprep.subr.bf16.mxu1 %v2627_v13  ;;  %v310_v45 = vmul.f32 %v2925_v42, %v275_v38  ;;  %v311_v46 = vmul.f32 %v2925_v42, %v276_v39  ;;  %v312_v47 = vmul.f32 %v2925_v42, %v277_v40  ;;  %v278_v49 = vld [vmem:[%s2903_s13 + $0x18] sm:$0xff]  ;;  %v279_v50 = vld [vmem:[%s2903_s13 + $0x20] sm:$0xff]  ;;  %vm2958_vm11 = vmand %vm2936_vm5, %vm3960_vm3  ;;  %s2101_s14 = sshll.u32 %s268_s9, 1 }
  0x17   : > { %v280_v52 = vld [vmem:[%s2903_s13 + $0x28] sm:$0x3]  ;;  %v313_v53 = vmul.f32 %v2925_v42, %v278_v49  ;;  %v314_v54 = vmul.f32 %v2925_v42, %v279_v50  ;;  %vm2975_vm13 = vmand %vm420_vm6, %vm430_vm7  ;;  %v2646_v61 = vld [vmem:[%s3955_s1 + $0x140] sm:$0xff]   ;;  %s270_s25 = scalar_lea.vmem %s3959_s5, %s2101_s14 }
  0x18   : > { %2260 = vmatpush3.bf16.msra.mxu0 %v2628_v14  ;;  %v345_v56 = vadd.f32 %v2930_v43, %v310_v45  ;;  %v346_v57 = vadd.f32 %v2930_v43, %v311_v46  ;;  %v347_v58 = vadd.f32 %v2930_v43, %v312_v47  ;;  %v315_v59 = vmul.f32 %v2925_v42, %v280_v52  ;;  %vm2990_vm0 = vmand %vm2975_vm13, %vm449_vm2  ;;  %v281_v7 = vld [vmem:[%s2903_s13 + $0x30] sm:$0xff]  ;;  %v2648_v45 = vld [vmem:[%s3955_s1 + $0x148] sm:$0xff]  }
  0x19   : > { %2324 = vmatpush3.bf16.msra.mxu1 %v2629_v15  ;;  %2261 = vmatprep.subr.bf16.mxu0 %v2630_v16  ;;  %v348_v62 = vadd.f32 %v2930_v43, %v313_v53  ;;  %v349_v63 = vadd.f32 %v2930_v43, %v314_v54  ;;  %vm3006_vm1 = vmand %vm2975_vm13, %vm3960_vm3  ;;  %v316_v11 = vmul.f32 %v2925_v42, %v281_v7  ;;  %v283_v46 = vld [vmem:[%s2903_s13 + $0x40] sm:$0x3]  ;;  %v284_v52 = vld [vmem:[%s2903_s13 + $0x48] sm:$0xff] }
  0x1a   : > { %2325 = vmatprep.subr.bf16.mxu1 %v2631_v17  ;;  %v375_v3 = vmax.f32 %v345_v56, 0.0  ;;  %v376_v4 = vmax.f32 %v346_v57, 0.0  ;;  %v377_v5 = vmax.f32 %v347_v58, 0.0  ;;  %v350_v6 = vadd.f32 %v2930_v43, %v315_v59  ;;  %vm2182_vm6 = vmpackc.low %vm2975_vm13, %vm2990_vm0  ;;  %v2649_v58 = vld [vmem:[%s3955_s1 + $0x108] sm:$0xff]   ;;  %v2651_v44 = vld [vmem:[%s3955_s1 + $0x1c0] sm:$0xff]  }
  0x1b   : > { %v378_v8 = vmax.f32 %v348_v62, 0.0  ;;  %v379_v9 = vmax.f32 %v349_v63, 0.0  ;;  %vm3028_vm7 = vmand %vm421_vm10, %vm431_vm12  ;;  %v351_v62 = vadd.f32 %v2930_v43, %v316_v11  ;;  %v319_v7 = vmul.f32 %v2925_v42, %v284_v52  ;;  %v294_v59 = vld [vmem:[%s2903_s13 + $0x98] sm:$0xff] }
  0x1c   : > { %2262 = vmatpush3.bf16.msra.mxu0 %v2632_v18  ;;  %v575_v13 = vsel %vm2947_vm8, %v375_v3, 0.0  ;;  %v576_v14 = vsel %vm2936_vm5, %v376_v4, 0.0  ;;  %v577_v15 = vsel %vm2958_vm11, %v377_v5, 0.0  ;;  %v380_v16 = vmax.f32 %v350_v6, 0.0  ;;  %vm3045_vm10 = vmand %vm3028_vm7, %vm449_vm2  ;;  %v2681_v40 = vld [vmem:[%s3955_s1 + $0x218] sm:$0xff]  }
  0x1d   : > { %2326 = vmatpush3.bf16.msra.mxu1 %v2633_v20  ;;  %2263 = vmatprep.subr.bf16.mxu0 %v2634_v21  ;;  %v638_v17 = vrot.slane %v575_v13, 1  ;;  %v639_v18 = vrot.slane %v576_v14, 1  ;;  %v641_v19 = vrot.slane %v577_v15, 1  ;;  %v703_v20 = vrot.slane %v575_v13, 2  ;;  %vm2179_vm12 = vmpackc.low %vm2936_vm5, %vm2947_vm8 }
  0x1e   : > { %2327 = vmatprep.subr.bf16.mxu1 %v2635_v22  ;;  %v704_v22 = vrot.slane %v576_v14, 2  ;;  %vm3062_vm11 = vmpackc.low %vm3028_vm7, %vm3045_vm10  ;;  %v3070_v47 = vpack.c.bf16 %v379_v9, %v378_v8  ;;  %v2180_v49 = vpack.c.bf16 %v376_v4, %v375_v3  ;;  %v318_v4 = vmul.f32 %v2925_v42, %v283_v46  ;;  %v2653_v14 = vld [vmem:[%s3955_s1 + $0x180] sm:$0xff]  }
  0x1f   : > { %v381_v10 = vmax.f32 %v351_v62, 0.0  ;;  %vm434_vm5 = vcmp.le.s32.totalorder %v2995_v1, 16 }
  0x20   : > { %2264 = vmatpush3.bf16.msra.mxu0 %v2636_v23  ;;  %v706_v23 = vrot.slane %v577_v15, 2  ;;  %v705_v50 = vsel %vm3961_vm9, %v703_v20, %v704_v22  ;;  %2205 = vmatprep.mubr.msk.bf16.mxu1 %vm2182_vm6, %v3070_v47  ;;  %v353_v13 = vadd.f32 %v2930_v43, %v318_v4  ;;  %v286_v20 = vld [vmem:[%s2903_s13 + $0x58] sm:$0x3] }
  0x21   : > { %2328 = vmatpush3.bf16.msra.mxu1 %v2637_v26  ;;  %2265 = vmatprep.subr.bf16.mxu0 %v2638_v27  ;;  %v578_v26 = vsel %vm2990_vm0, %v378_v8, 0.0  ;;  %v579_v27 = vsel %vm2975_vm13, %v379_v9, 0.0  ;;  %v3121_v8 = vadd.s32 8, %v2868_v24  ;;  %vm3995_vm13 = vcmp.le.s32.totalorder %v2890_v30, 16 }
  0x22   : > { %2329 = vmatprep.subr.bf16.mxu1 %v2639_v28  ;;  %v2647_v28 = vld [vmem:[%s3955_s1 + $0x100] sm:$0xff]   ;;  %v643_v34 = vrot.slane %v578_v26, 1  ;;  %v708_v38 = vrot.slane %v578_v26, 2  ;;  %v709_v39 = vrot.slane %v579_v27, 2  ;;  %v707_v51 = vsel %vm3961_vm9, %v704_v22, %v706_v23 }
  0x23   : > { %v759_v53 = vpack.c.bf16 %v707_v51, %v705_v50  ;;  %v287_v22 = vld [vmem:[%s2903_s13 + $0x60] sm:$0xff]  ;;  %v581_v23 = vsel %vm3045_vm10, %v381_v10, 0.0  ;;  %v383_v26 = vmax.f32 %v353_v13, 0.0  ;;  %vm3988_vm10 = vcmp.ge.s32.totalorder %v2967_v55, 1 }
  0x24   : > { %2266 = vmatpush3.bf16.msra.mxu0 %v2640_v29  ;;  %v710_v63 = vsel %vm3961_vm9, %v708_v38, %v709_v39 }
  0x25   : > { %2330 = vmatpush3.bf16.msra.mxu1 %v2641_v31  ;;  %2267 = vmatprep.subr.bf16.mxu0 %v2642_v32  ;;  %v640_v31 = vsel %vm637_vm4, %v638_v17, %v639_v18  ;;  %v642_v32 = vsel %vm637_vm4, %v639_v18, %v641_v19  ;;  %v354_v18 = vadd.f32 %v2930_v43, %v319_v7 }
  0x26   : > { %2331 = vmatprep.subr.bf16.mxu1 %v2643_v33  ;;  %v580_v33 = vsel %vm3006_vm1, %v380_v16, 0.0  ;;  %v694_v36 = vpack.c.bf16 %v642_v32, %v640_v31  ;;  %vm3084_vm1 = vmand %vm3028_vm7, %vm3960_vm3  ;;  %vm3982_vm3 = vcmp.ge.s32.totalorder %v2920_v41, 1  ;;  %v2650_v41 = vld [vmem:[%s3955_s1 + $0x150] sm:$0xff]   ;;  %v288_v31 = vld [vmem:[%s2903_s13 + $0x68] sm:$0xff]  ;;  %v322_v32 = vmul.f32 %v2925_v42, %v287_v22 }
  0x27   : > { %v646_v56 = vrot.slane %v580_v33, 1  ;;  %v711_v3 = vrot.slane %v580_v33, 2  ;;  %vm3107_vm14 = vmand %vm3982_vm3, %vm432_vm15  ;;  %vm424_vm3 = vcmp.ge.s32.totalorder %v2995_v1, 1  ;;  %v648_v33 = vrot.slane %v581_v23, 1  ;;  %v2658_v22 = vld [vmem:[%s3955_s1 + $0x160] sm:$0xff]  }
  0x28   : > { %2268 = vmatpush3.bf16.msra.mxu0 %v2644_v35  ;;  %v282_v35 = vld [vmem:[%s2903_s13 + $0x38] sm:$0xff]  ;;  %1422 = vmatprep.mubr.bf16.mxu0 %v694_v36  ;;  %vm3140_vm8 = vmand %vm3107_vm14, %vm449_vm2  ;;  %vm3987_vm15 = vcmp.le.s32.totalorder %v2967_v55, 16  ;;  %v583_v38 = vsel %vm3084_vm1, %v383_v26, 0.0  ;;  %v384_v21 = vmax.f32 %v354_v18, 0.0  ;;  %v2655_v55 = vld [vmem:[%s3955_s1 + $0x1c8] sm:$0xff]  }
  0x29   : > { %2332 = vmatpush3.bf16.msra.mxu1 %v2645_v37  ;;  %2381 = vmatprep.subr.bf16.mxu0 %v2646_v61  ;;  %v644_v37 = vrot.slane %v579_v27, 1  ;;  %v317_v57 = vmul.f32 %v2925_v42, %v282_v35  ;;  %v285_v61 = vld [vmem:[%s2903_s13 + $0x50] sm:$0xff]  ;;  %v712_v11 = vsel %vm3961_vm9, %v709_v39, %v711_v3  ;;  %v651_v46 = vrot.slane %v583_v38, 1  ;;  %vm3184_vm1 = vmpackc.low %vm3107_vm14, %vm3140_vm8 }
  0x2a   : > { %2445 = vmatprep.subr.bf16.mxu1 %v2651_v44  ;;  %v3132_v16 = vpack.c.bf16 %v712_v11, %v710_v63  ;;  %v320_v17 = vmul.f32 %v2925_v42, %v285_v61  ;;  %v2652_v27 = vld [vmem:[%s3955_s1 + $0x110] sm:$0xff]   ;;  %v716_v51 = vrot.slane %v583_v38, 2  ;;  %vm3217_vm0 = vmand %vm3107_vm14, %vm3995_vm13 }
  0x2b   : > { %v645_v54 = vsel %vm637_vm4, %v643_v34, %v644_v37  ;;  %2181 = vmatmul.mubr.msk.bf16.vlgmr.msra.gmra.mrb[0].mxu0 %vm2179_vm12, %v2180_v49  ;;  %v647_v48 = vsel %vm637_vm4, %v644_v37, %v646_v56  ;;  %v352_v6 = vadd.f32 %v2930_v43, %v317_v57  ;;  %v713_v34 = vrot.slane %v581_v23, 2  ;;  %vm3163_vm12 = vmand %vm3988_vm10, %vm3987_vm15  ;;  %v2654_v37 = vld [vmem:[%s3955_s1 + $0x158] sm:$0xff]   ;;  %v2684_v49 = vld [vmem:[%s3955_s1 + $0x230] sm:$0xff]  }
  0x2c   : > { %1520 = vmatmul.mubr.bf16.vlgmr.msra.gmra.mrb[0].mxu1 %v759_v53  ;;  %2382 = vmatpush3.bf16.msra.mxu0 %v2647_v28  ;;  %v3123_v9 = vpack.c.bf16 %v647_v48, %v645_v54  ;;  %v321_v28 = vmul.f32 %v2925_v42, %v286_v20  ;;  %v2656_v53 = vld [vmem:[%s3955_s1 + $0x118] sm:$0xff]   ;;  %v584_v57 = vsel %vm3140_vm8, %v384_v21, 0.0  ;;  %vm3206_vm15 = vmand %vm3163_vm12, %vm449_vm2  ;;  %v2657_v48 = vld [vmem:[%s3955_s1 + $0x188] sm:$0xff]  }
  0x2d   : > { %2383 = vmatprep.subr.bf16.mxu0 %v2648_v45  ;;  %v382_v15 = vmax.f32 %v352_v6, 0.0  ;;  %2446 = vmatpush3.bf16.msra.mxu1 %v2653_v14  ;;  %v355_v45 = vadd.f32 %v2930_v43, %v320_v17  ;;  %v653_v0 = vrot.slane %v584_v57, 1  ;;  %v289_v6 = vld [vmem:[%s2903_s13 + $0x70] sm:$0x3]  ;;  %v290_v14 = vld [vmem:[%s2903_s13 + $0x78] sm:$0xff]  ;;  %v291_v20 = vld [vmem:[%s2903_s13 + $0x80] sm:$0xff] }
  0x2e   : > { %1430 = vmatprep.mubr.bf16.mxu0 %v3123_v9  ;;  %v356_v52 = vadd.f32 %v2930_v43, %v321_v28  ;;  %2447 = vmatprep.subr.bf16.mxu1 %v2655_v55  ;;  %v324_v18 = vmul.f32 %v2925_v42, %v289_v6  ;;  %vm3268_vm10 = vmand %vm424_vm3, %vm434_vm5  ;;  %vm426_vm3 = vcmp.ge.s32.totalorder %v3012_v12, 1  ;;  %v2662_v6 = vld [vmem:[%s3955_s1 + $0x168] sm:$0xff]  }
  0x2f   : > { %v3155_v35 = vpack.c.bf16 %v382_v15, %v381_v10  ;;  %v582_v29 = vsel %vm3028_vm7, %v382_v15, 0.0  ;;  %vm425_vm7 = vcmp.ge.s32.totalorder %v2998_v2, 1  ;;  %v385_v56 = vmax.f32 %v355_v45, 0.0  ;;  %v2660_v45 = vld [vmem:[%s3955_s1 + $0x120] sm:$0xff]  }
  0x30   : > { %2384 = vmatpush3.bf16.msra.mxu0 %v2649_v58  ;;  %v649_v39 = vrot.slane %v582_v29, 1  ;;  %v714_v50 = vrot.slane %v582_v29, 2  ;;  %v323_v58 = vmul.f32 %v2925_v42, %v288_v31  ;;  %v386_v44 = vmax.f32 %v356_v52, 0.0  ;;  %v2659_v29 = vld [vmem:[%s3955_s1 + $0x1d0] sm:$0xff]  }
  0x31   : > { %2385 = vmatprep.subr.bf16.mxu0 %v2650_v41  ;;  %2208 = vmatprep.mubr.msk.bf16.mxu1 %vm3062_vm11, %v3155_v35  ;;  %v3223_v3 = vpack.c.bf16 %v385_v56, %v384_v21  ;;  %v585_v41 = vsel %vm3107_vm14, %v385_v56, 0.0  ;;  %v357_v10 = vadd.f32 %v2930_v43, %v322_v32  ;;  %vm4000_vm14 = vmmov %vm3995_vm13  ;;  %vm435_vm13 = vcmp.le.s32.totalorder %v2998_v2, 16  ;;  %v293_v52 = vld [vmem:[%s2903_s13 + $0x90] sm:$0xff] }
  0x32   : > { %v650_v54 = vsel %vm637_vm4, %v648_v33, %v649_v39  ;;  %v652_v60 = vsel %vm637_vm4, %v649_v39, %v651_v46  ;;  %v715_v61 = vsel %vm3961_vm9, %v713_v34, %v714_v50  ;;  %v717_v4 = vsel %vm3961_vm9, %v714_v50, %v716_v51  ;;  %vm3256_vm8 = vmand %vm3163_vm12, %vm4000_vm14  ;;  %2448 = vmatpush3.bf16.msra.mxu1 %v2657_v48  ;;  %v2661_v51 = vld [vmem:[%s3955_s1 + $0x190] sm:$0xff]  }
  0x33   : > { %2184 = vmatmul.mubr.msk.bf16.gmra.mrb[4].mxu0 %vm2182_vm6, %v3070_v47  ;;  %v718_v47 = vrot.slane %v584_v57, 2  ;;  %v3221_v63 = vpack.c.bf16 %v652_v60, %v650_v54  ;;  %v3230_v7 = vpack.c.bf16 %v717_v4, %v715_v61  ;;  %v358_v11 = vadd.f32 %v2930_v43, %v323_v58  ;;  %vm3240_vm6 = vmpackc.low %vm3163_vm12, %vm3206_vm15  ;;  %2449 = vmatprep.subr.bf16.mxu1 %v2659_v29  ;;  %v292_v58 = vld [vmem:[%s2903_s13 + $0x88] sm:$0x3]  ;;  %v2676_v60 = vld [vmem:[%s3955_s1 + $0x1f8] sm:$0xff]  }
  0x34   : > { %1528 = vmatmul.mubr.bf16.gmra.mrb[4].mxu1 %v3132_v16  ;;  %2386 = vmatpush3.bf16.msra.mxu0 %v2652_v27  ;;  %v586_v5 = vsel %vm3217_vm0, %v386_v44, 0.0  ;;  %v654_v15 = vrot.slane %v585_v41, 1  ;;  %v719_v17 = vrot.slane %v585_v41, 2  ;;  %v387_v26 = vmax.f32 %v357_v10, 0.0  ;;  %vm3310_vm5 = vmand %vm425_vm7, %vm435_vm13  ;;  %v2663_v41 = vld [vmem:[%s3955_s1 + $0x1d8] sm:$0xff]  }
  0x35   : > { %2387 = vmatprep.subr.bf16.mxu0 %v2654_v37  ;;  %1438 = vmatprep.mubr.bf16.mxu0 %v3221_v63  ;;  %v656_v23 = vrot.slane %v586_v5, 1  ;;  %v388_v27 = vmax.f32 %v358_v11, 0.0  ;;  %v721_v28 = vrot.slane %v586_v5, 2  ;;  %v359_v33 = vadd.f32 %v2930_v43, %v324_v18  ;;  %vm3345_vm7 = vmand %vm3310_vm5, %vm449_vm2 }
  0x36   : > { %2211 = vmatprep.mubr.msk.bf16.mxu1 %vm3184_vm1, %v3223_v3  ;;  %v655_v32 = vsel %vm637_vm4, %v653_v0, %v654_v15  ;;  %v325_v34 = vmul.f32 %v2925_v42, %v290_v14  ;;  %v587_v37 = vsel %vm3206_vm15, %v387_v26, 0.0  ;;  %v720_v39 = vsel %vm3961_vm9, %v718_v47, %v719_v17  ;;  %2450 = vmatpush3.bf16.msra.mxu1 %v2661_v51  ;;  %vm4011_vm15 = vmmov %vm4000_vm14 }
  0x37   : > { %v657_v1 = vsel %vm637_vm4, %v654_v15, %v656_v23  ;;  %v3282_v38 = vpack.c.bf16 %v388_v27, %v387_v26  ;;  %v658_v55 = vrot.slane %v587_v37, 1  ;;  %v723_v46 = vrot.slane %v587_v37, 2  ;;  %2451 = vmatprep.subr.bf16.mxu1 %v2663_v41  ;;  %v2665_v23 = vld [vmem:[%s3955_s1 + $0x198] sm:$0xff]   ;;  %vm3368_vm0 = vmand %vm3268_vm10, %vm4011_vm15  ;;  %v2668_v41 = vld [vmem:[%s3955_s1 + $0x130] sm:$0xff]  }
  0x38   : > { %2388 = vmatpush3.bf16.msra.mxu0 %v2656_v53  ;;  %v3292_v21 = vpack.c.bf16 %v657_v1, %v655_v32  ;;  %v722_v50 = vsel %vm3961_vm9, %v719_v17, %v721_v28  ;;  %v389_v53 = vmax.f32 %v359_v33, 0.0  ;;  %v588_v54 = vsel %vm3163_vm12, %v388_v27, 0.0  ;;  %vm3322_vm12 = vmand %vm3268_vm10, %vm449_vm2 }
  0x39   : > { %2389 = vmatprep.subr.bf16.mxu0 %v2658_v22  ;;  %v326_v56 = vmul.f32 %v2925_v42, %v291_v20  ;;  %v360_v57 = vadd.f32 %v2930_v43, %v325_v34  ;;  %v659_v36 = vrot.slane %v588_v54, 1  ;;  %v724_v2 = vrot.slane %v588_v54, 2  ;;  %v2664_v22 = vld [vmem:[%s3955_s1 + $0x128] sm:$0xff]   ;;  %vm3398_vm13 = vmpackc.low %vm3310_vm5, %vm3345_vm7 }
  0x3a   : > { %v327_v47 = vmul.f32 %v2925_v42, %v292_v58  ;;  %v328_v61 = vmul.f32 %v2925_v42, %v293_v52  ;;  %v3328_v62 = vpack.c.bf16 %v722_v50, %v720_v39  ;;  %v589_v4 = vsel %vm3256_vm8, %v389_v53, 0.0  ;;  %vm3380_vm8 = vmpackc.low %vm3268_vm10, %vm3322_vm12  ;;  %2452 = vmatpush3.bf16.msra.mxu1 %v2665_v23  ;;  %v295_v39 = vld [vmem:[%s2903_s13 + $0xa0] sm:$0x3]  ;;  %v2666_v58 = vld [vmem:[%s3955_s1 + $0x170] sm:$0xff]  }
  0x3b   : > { %2187 = vmatmul.mubr.msk.bf16.gmra.mrb[8].mxu0 %vm3062_vm11, %v3155_v35  ;;  %v361_v44 = vadd.f32 %v2930_v43, %v326_v56  ;;  %v390_v48 = vmax.f32 %v360_v57, 0.0  ;;  %v660_v10 = vsel %vm637_vm4, %v658_v55, %v659_v36  ;;  %v661_v11 = vrot.slane %v589_v4, 1  ;;  %v2670_v23 = vld [vmem:[%s3955_s1 + $0x1e8] sm:$0xff]  }
  0x3c   : > { %1536 = vmatmul.mubr.bf16.gmra.mrb[8].mxu1 %v3230_v7  ;;  %2390 = vmatpush3.bf16.msra.mxu0 %v2660_v45  ;;  %v726_v14 = vrot.slane %v589_v4, 2  ;;  %v329_v5 = vmul.f32 %v2925_v42, %v294_v59  ;;  %v362_v19 = vadd.f32 %v2930_v43, %v327_v47  ;;  %v363_v20 = vadd.f32 %v2930_v43, %v328_v61  ;;  %v296_v45 = vld [vmem:[%s2903_s13 + $0xa8] sm:$0xff] }
  0x3d   : > { %1446 = vmatprep.mubr.bf16.mxu0 %v3292_v21  ;;  %2214 = vmatprep.mubr.msk.bf16.mxu1 %vm3240_vm6, %v3282_v38  ;;  %v391_v17 = vmax.f32 %v361_v44, 0.0  ;;  %v3351_v18 = vsel %vm3322_vm12, %v390_v48, 0.0  ;;  %v662_v26 = vsel %vm637_vm4, %v659_v36, %v661_v11  ;;  %v725_v28 = vsel %vm3961_vm9, %v723_v46, %v724_v2 }
  0x3e   : > { %2391 = vmatprep.subr.bf16.mxu0 %v2662_v6  ;;  %v663_v27 = vrot.slane %v3351_v18, 1  ;;  %vm436_vm14 = vcmp.le.s32.totalorder %v3012_v12, 16  ;;  %v3373_v33 = vpack.c.bf16 %v662_v26, %v660_v10  ;;  %v728_v34 = vrot.slane %v3351_v18, 2  ;;  %v2667_v6 = vld [vmem:[%s3955_s1 + $0x1e0] sm:$0xff]  }
  0x3f   : > { %v3384_v1 = vpack.c.bf16 %v391_v17, %v390_v48  ;;  %v392_v37 = vmax.f32 %v362_v19, 0.0  ;;  %v591_v55 = vsel %vm3268_vm10, %v391_v17, 0.0  ;;  %v364_v46 = vadd.f32 %v2930_v43, %v329_v5  ;;  %vm4018_vm10 = vmmov %vm4011_vm15  ;;  %2453 = vmatprep.subr.bf16.mxu1 %v2667_v6  ;;  %v2669_v17 = vld [vmem:[%s3955_s1 + $0x1a0] sm:$0xff]   ;;  %v2674_v6 = vld [vmem:[%s3955_s1 + $0x138] sm:$0xff]  }
  0x40   : > { %2392 = vmatpush3.bf16.msra.mxu0 %v2664_v22  ;;  %v393_v50 = vmax.f32 %v363_v20, 0.0  ;;  %v330_v52 = vmul.f32 %v2925_v42, %v295_v39  ;;  %v727_v31 = vsel %vm3961_vm9, %v724_v2, %v726_v14  ;;  %v664_v54 = vrot.slane %v591_v55, 1  ;;  %vm3412_vm12 = vmand %vm3310_vm5, %vm4018_vm10  ;;  %v297_v2 = vld [vmem:[%s2903_s13 + $0xb0] sm:$0xff]  ;;  %2454 = vmatpush3.bf16.msra.mxu1 %v2669_v17 }
  0x41   : > { %v592_v53 = vsel %vm3368_vm0, %v392_v37, 0.0  ;;  %v729_v56 = vrot.slane %v591_v55, 2  ;;  %v394_v36 = vmax.f32 %v364_v46, 0.0  ;;  %v331_v47 = vmul.f32 %v2925_v42, %v296_v45  ;;  %vm3432_vm15 = vmand %vm426_vm3, %vm436_vm14  ;;  %2393 = vmatprep.subr.bf16.mxu0 %v2666_v58  ;;  %2455 = vmatprep.subr.bf16.mxu1 %v2670_v23  ;;  %v299_v55 = vld [vmem:[%s2903_s13 + $0xc0] sm:$0xff]  ;;  %v300_v46 = vld [vmem:[%s2903_s13 + $0xc8] sm:$0xff] }
  0x42   : > { %v666_v59 = vrot.slane %v592_v53, 1  ;;  %v3424_v0 = vsel %vm3345_vm7, %v393_v50, 0.0  ;;  %v665_v4 = vsel %vm637_vm4, %v663_v27, %v664_v54  ;;  %v731_v48 = vrot.slane %v592_v53, 2  ;;  %vm3467_vm3 = vmand %vm3432_vm15, %vm449_vm2  ;;  %v2671_v27 = vld [vmem:[%s3955_s1 + $0x1a8] sm:$0xff]   ;;  %v2677_v23 = vld [vmem:[%s3955_s1 + $0x1b8] sm:$0xff]  }
  0x43   : > { %2190 = vmatmul.mubr.msk.bf16.gmra.mrb[12].mxu0 %vm3184_vm1, %v3223_v3  ;;  %v668_v44 = vrot.slane %v3424_v0, 1  ;;  %vm427_vm7 = vcmp.ge.s32.totalorder %v3121_v8, 1  ;;  %v365_v10 = vadd.f32 %v2930_v43, %v330_v52  ;;  %v3447_v11 = vpack.c.bf16 %v727_v31, %v725_v28  ;;  %v298_v28 = vld [vmem:[%s2903_s13 + $0xb8] sm:$0x3]  ;;  %vm3496_vm0 = vmpackc.low %vm3432_vm15, %vm3467_vm3 }
  0x44   : > { %1544 = vmatmul.mubr.bf16.gmra.mrb[12].mxu1 %v3328_v62  ;;  %1454 = vmatprep.mubr.bf16.mxu0 %v3373_v33  ;;  %v667_v12 = vsel %vm637_vm4, %v664_v54, %v666_v59  ;;  %v3453_v5 = vsel %vm3310_vm5, %v394_v36, 0.0  ;;  %v332_v15 = vmul.f32 %v2925_v42, %v297_v2  ;;  %v3459_v18 = vpack.c.bf16 %v394_v36, %v393_v50  ;;  %v2672_v54 = vld [vmem:[%s3955_s1 + $0x178] sm:$0xff]   ;;  %v2673_v36 = vld [vmem:[%s3955_s1 + $0x1f0] sm:$0xff]   ;;  %vm4027_vm14 = vmmov %vm4018_vm10 }
  0x45   : > { %2217 = vmatprep.mubr.msk.bf16.mxu1 %vm3380_vm8, %v3384_v1  ;;  %v3449_v14 = vpack.c.bf16 %v667_v12, %v665_v4  ;;  %2394 = vmatpush3.bf16.msra.mxu0 %v2668_v41  ;;  %v395_v19 = vmax.f32 %v365_v10, 0.0  ;;  %v669_v20 = vrot.slane %v3453_v5, 1  ;;  %v366_v22 = vadd.f32 %v2930_v43, %v331_v47  ;;  %vm3523_vm10 = vmand %vm3432_vm15, %vm4027_vm14 }
  0x46   : > { %v367_v26 = vadd.f32 %v2930_v43, %v332_v15  ;;  %vm437_vm5 = vcmp.le.s32.totalorder %v3121_v8, 16  ;;  %v733_v32 = vrot.slane %v3424_v0, 2  ;;  %v730_v37 = vsel %vm3961_vm9, %v728_v34, %v729_v56  ;;  %2456 = vmatpush3.bf16.msra.mxu1 %v2671_v27  ;;  %2395 = vmatprep.subr.bf16.mxu0 %v2672_v54  ;;  %v2675_v15 = vld [vmem:[%s3955_s1 + $0x1b0] sm:$0xff]  }
  0x47   : > { %v595_v39 = vsel %vm3412_vm12, %v395_v19, 0.0  ;;  %v396_v45 = vmax.f32 %v366_v22, 0.0  ;;  %v732_v50 = vsel %vm3961_vm9, %v729_v56, %v731_v48  ;;  %v333_v53 = vmul.f32 %v2925_v42, %v298_v28  ;;  %2457 = vmatprep.subr.bf16.mxu1 %v2673_v36  ;;  %vm3549_vm12 = vmand %vm427_vm7, %vm437_vm5 }
  0x48   : > { %v671_v52 = vrot.slane %v595_v39, 1  ;;  %v397_v31 = vmax.f32 %v367_v26, 0.0  ;;  %v670_v56 = vsel %vm637_vm4, %v668_v44, %v669_v20  ;;  %v334_v58 = vmul.f32 %v2925_v42, %v299_v55  ;;  %v3567_v26 = vld [vmem:[%s3955_s1 + $0x200] sm:$0xff]  }
  0x49   : > { %v3510_v57 = vsel %vm3467_vm3, %v396_v45, 0.0  ;;  %v335_v59 = vmul.f32 %v2925_v42, %v300_v46  ;;  %v734_v2 = vrot.slane %v3453_v5, 2  ;;  %v736_v47 = vrot.slane %v595_v39, 2  ;;  %2396 = vmatpush3.bf16.msra.mxu0 %v2674_v6  ;;  %v304_v6 = vld [vmem:[%s2903_s13 + $0xe8] sm:$0x3] }
  0x4a   : > { %v672_v0 = vsel %vm637_vm4, %v669_v20, %v671_v52  ;;  %v368_v44 = vadd.f32 %v2930_v43, %v333_v53  ;;  %v597_v48 = vsel %vm3432_vm15, %v397_v31, 0.0  ;;  %v3533_v41 = vpack.c.bf16 %v732_v50, %v730_v37  ;;  %2458 = vmatpush3.bf16.msra.mxu1 %v2675_v15  ;;  %2525 = vmatprep.subr.bf16.mxu0 %v3567_v26  ;;  %vm3585_vm15 = vmand %vm3549_vm12, %vm449_vm2 }
  0x4b   : > { %2193 = vmatmul.mubr.msk.bf16.gmra.mrb[16].mxu0 %vm3240_vm6, %v3282_v38  ;;  %v3535_v12 = vpack.c.bf16 %v672_v0, %v670_v56  ;;  %v673_v10 = vrot.slane %v3510_v57, 1  ;;  %v3538_v5 = vpack.c.bf16 %v397_v31, %v396_v45  ;;  %v674_v61 = vrot.slane %v597_v48, 1  ;;  %2459 = vmatprep.subr.bf16.mxu1 %v2676_v60  ;;  %vm2224_vm3 = vmpackc.low %vm3549_vm12, %vm3585_vm15 }
  0x4c   : > { %1552 = vmatmul.mubr.bf16.gmra.mrb[16].mxu1 %v3447_v11  ;;  %1462 = vmatprep.mubr.bf16.mxu0 %v3449_v14  ;;  %v398_v17 = vmax.f32 %v368_v44, 0.0  ;;  %v369_v19 = vadd.f32 %v2930_v43, %v334_v58  ;;  %v370_v20 = vadd.f32 %v2930_v43, %v335_v59  ;;  %v735_v27 = vsel %vm3961_vm9, %v733_v32, %v734_v2  ;;  %v301_v58 = vld [vmem:[%s2903_s13 + $0xd0] sm:$0x3]  ;;  %v302_v44 = vld [vmem:[%s2903_s13 + $0xd8] sm:$0xff] }
  0x4d   : > { %2220 = vmatprep.mubr.msk.bf16.mxu1 %vm3398_vm13, %v3459_v18  ;;  %v414_v37 = vadd.s32 9, %v2868_v24  ;;  %v737_v39 = vsel %vm3961_vm9, %v734_v2, %v736_v47  ;;  %v675_v45 = vsel %vm637_vm4, %v673_v10, %v674_v61  ;;  %v738_v50 = vrot.slane %v3510_v57, 2 }
  0x4e   : > { %v598_v8 = vsel %vm3523_vm10, %v398_v17, 0.0  ;;  %v399_v55 = vmax.f32 %v369_v19, 0.0  ;;  %v400_v46 = vmax.f32 %v370_v20, 0.0  ;;  %2460 = vmatpush3.bf16.msra.mxu1 %v2677_v23  ;;  %v739_v52 = vrot.slane %v597_v48, 2  ;;  %vm3610_vm10 = vmand %vm3549_vm12, %vm4027_vm14  ;;  %v303_v48 = vld [vmem:[%s2903_s13 + $0xe0] sm:$0xff]  ;;  %s2098_s13 = sshll.u32 %s4058_s19, 5 }
  0x4f   : > { %v676_v28 = vrot.slane %v598_v8, 1  ;;  %v741_v31 = vrot.slane %v598_v8, 2  ;;  %2557 = vmatprep.subr.bf16.mxu1 %v3567_v26  ;;  %v3590_v53 = vpack.c.bf16 %v737_v39, %v735_v27  ;;  %vm428_vm7 = vcmp.ge.s32.totalorder %v414_v37, 1  ;;  %s259_s7 = sadd.s32 %s2098_s13, %s2097_s6 }
  0x50   : > { %v599_v56 = vsel %vm3585_vm15, %v399_v55, 0.0  ;;  %v3600_v57 = vpack.c.bf16 %v400_v46, %v399_v55  ;;  %v600_v59 = vsel %vm3549_vm12, %v400_v46, 0.0  ;;  %vm438_vm5 = vcmp.le.s32.totalorder %v414_v37, 16  ;;  %s2099_s8 = sshll.u32 %s259_s7, 3 }
  0x51   : > { %v677_v32 = vsel %vm637_vm4, %v674_v61, %v676_v28  ;;  %v336_v36 = vmul.f32 %v2925_v42, %v301_v58  ;;  %v771_v2 = vrot.slane %v599_v56, 1  ;;  %v740_v47 = vsel %vm3961_vm9, %v738_v50, %v739_v52  ;;  %vm3629_vm14 = vmand %vm428_vm7, %vm438_vm5  ;;  %s3891_s11 = scalar_lea.vmem %s3958_s4, %s2099_s8 }
  0x52   : > { %v3592_v54 = vpack.c.bf16 %v677_v32, %v675_v45  ;;  %v742_v4 = vsel %vm3961_vm9, %v739_v52, %v741_v31  ;;  %v772_v15 = vrot.slane %v600_v59, 1  ;;  %v337_v17 = vmul.f32 %v2925_v42, %v302_v44  ;;  %vm3644_vm9 = vmand %vm3629_vm14, %vm449_vm2 }
  0x53   : > { %2196 = vmatmul.mubr.msk.bf16.gmra.mrb[20].mxu0 %vm3380_vm8, %v3384_v1  ;;  %v371_v10 = vadd.f32 %v2930_v43, %v336_v36  ;;  %v338_v61 = vmul.f32 %v2925_v42, %v303_v48  ;;  %v779_v20 = vrot.slane %v599_v56, 2  ;;  %v780_v60 = vrot.slane %v600_v59, 2  ;;  %vm2248_vm2 = vmpackc.low %vm3629_vm14, %vm3644_vm9 }
  0x54   : > { %1560 = vmatmul.mubr.bf16.gmra.mrb[20].mxu1 %v3533_v41  ;;  %1470 = vmatprep.mubr.bf16.mxu0 %v3535_v12  ;;  %v339_v23 = vmul.f32 %v2925_v42, %v304_v6  ;;  %v372_v28 = vadd.f32 %v2930_v43, %v337_v17  ;;  %vm4040_vm7 = vcmp.le.s32.totalorder %v2890_v30, 16  ;;  %v3658_v25 = vpack.c.bf16 %v742_v4, %v740_v47 }
  0x55   : > { %2223 = vmatprep.mubr.msk.bf16.mxu1 %vm3496_vm0, %v3538_v5  ;;  %v401_v27 = vmax.f32 %v371_v10, 0.0  ;;  %v373_v37 = vadd.f32 %v2930_v43, %v338_v61  ;;  %vm3654_vm5 = vmand %vm3629_vm14, %vm4040_vm7  ;;  %v773_v30 = vsel %vm637_vm4, %v771_v2, %v772_v15  ;;  %vm4043_vm7 = vcmask 1045504  }
  0x56   : > { %v374_v42 = vadd.f32 %v2930_v43, %v339_v23  ;;  %v402_v55 = vmax.f32 %v372_v28, 0.0  ;;  %v781_v32 = vsel %vm4043_vm7, %v779_v20, %v780_v60  ;;  %v2680_v28 = vld [vmem:[%s3955_s1 + $0x210] sm:$0xff]  }
  0x57   : > { %v601_v45 = vsel %vm3610_vm10, %v401_v27, 0.0  ;;  %v403_v46 = vmax.f32 %v373_v37, 0.0  ;;  %vm4044_vm10 = vmmov %vm4043_vm7  ;;  %v2679_v27 = vld [vmem:[%s3955_s1 + $0x208] sm:$0xff]  }
  0x58   : > { %v774_v50 = vrot.slane %v601_v45, 1  ;;  %v782_v52 = vrot.slane %v601_v45, 2  ;;  %v404_v31 = vmax.f32 %v374_v42, 0.0  ;;  %v602_v43 = vsel %vm3644_vm9, %v402_v55, 0.0 }
  0x59   : > { %v603_v56 = vsel %vm3629_vm14, %v403_v46, 0.0  ;;  %v3673_v58 = vpack.c.bf16 %v403_v46, %v402_v55  ;;  %v791_v2 = vrot.slane %v602_v43, 1  ;;  %v799_v6 = vrot.slane %v602_v43, 2 }
  0x5a   : > { %v775_v59 = vsel %vm637_vm4, %v772_v15, %v774_v50  ;;  %v783_v36 = vsel %vm4044_vm10, %v780_v60, %v782_v52  ;;  %v604_v0 = vsel %vm3654_vm5, %v404_v31, 0.0  ;;  %v792_v44 = vrot.slane %v603_v56, 1  ;;  %vm4045_vm5 = vmmov %vm4043_vm7 }
  0x5b   : > { %2199 = vmatmul.mubr.msk.bf16.gmra.mrb[24].mxu0 %vm3398_vm13, %v3459_v18  ;;  %v3684_v47 = vpack.c.bf16 %v775_v59, %v773_v30  ;;  %v3686_v4 = vpack.c.bf16 %v783_v36, %v781_v32  ;;  %v794_v48 = vrot.slane %v604_v0, 1  ;;  %v800_v10 = vrot.slane %v603_v56, 2  ;;  %vm4046_vm7 = vmmov %vm4045_vm5 }
  0x5c   : > { %1568 = vmatmul.mubr.bf16.gmra.mrb[24].mxu1 %v3590_v53  ;;  %1478 = vmatprep.mubr.bf16.mxu0 %v3592_v54  ;;  %v802_v15 = vrot.slane %v604_v0, 2  ;;  %v3690_v17 = vsel %vm637_vm4, %v791_v2, %v792_v44 }
  0x5d   : > { %2226 = vmatprep.mubr.msk.bf16.mxu1 %vm2224_vm3, %v3600_v57  ;;  %v3693_v61 = vsel %vm637_vm4, %v792_v44, %v794_v48  ;;  %v3698_v20 = vsel %vm4045_vm5, %v799_v6, %v800_v10 }
  0x5e   : > { %v3701_v60 = vsel %vm4046_vm7, %v800_v10, %v802_v15 }
  0x5f   : > { %v806_v23 = vpack.c.bf16 %v3701_v60, %v3698_v20 }
  0x63   : > { %2202 = vmatmul.mubr.msk.bf16.gmra.mrb[28].mxu0 %vm3496_vm0, %v3538_v5 }
  0x64   : > { %1576 = vmatmul.mubr.bf16.gmra.mrb[28].mxu1 %v3658_v25  ;;  %1616 = vmatprep.mubr.bf16.mxu0 %v3132_v16  ;;  %v798_v16 = vpack.c.bf16 %v3693_v61, %v3690_v17 }
  0x65   : > { %1713 = vmatprep.mubr.bf16.mxu1 %v3221_v63 }
  0x6b   : > { %1617 = vmatmul.mubr.bf16.vlgmr.msra.gmra.mrb[32].mxu0 %v3123_v9  ;;  %v2682_v9 = vld [vmem:[%s3955_s1 + $0x220] sm:$0xff]  }
  0x6c   : > { %2229 = vmatmul.mubr.msk.bf16.vlgmr.msra.gmra.mrb[32].mxu1 %vm3062_vm11, %v3155_v35  ;;  %2526 = vmatpush3.bf16.msra.mxu0 %v3567_v26  ;;  %v2683_v35 = vld [vmem:[%s3955_s1 + $0x228] sm:$0xff]  }
  0x6d   : > { %1624 = vmatprep.mubr.bf16.mxu0 %v3230_v7  ;;  %1721 = vmatprep.mubr.bf16.mxu1 %v3292_v21 }
  0x6e   : > { %2527 = vmatprep.subr.bf16.mxu0 %v2679_v27  ;;  %2565 = vmatpush3.bf16.msra.mxu1 %v3567_v26 }
  0x6f   : > { %2558 = vmatprep.subr.bf16.mxu1 %v2679_v27 }
  0x70   : > { %2528 = vmatpush3.bf16.msra.mxu0 %v2679_v27 }
  0x71   : > { %2529 = vmatprep.subr.bf16.mxu0 %v2680_v28 }
  0x72   : > { %2566 = vmatpush3.bf16.msra.mxu1 %v2679_v27 }
  0x73   : > { %1625 = vmatmul.mubr.bf16.gmra.mrb[36].mxu0 %v3221_v63  ;;  %2559 = vmatprep.subr.bf16.mxu1 %v2680_v28  ;;  %v2685_v63 = vld [vmem:[%s3955_s1 + $0x238] sm:$0xff]  }
  0x74   : > { %2232 = vmatmul.mubr.msk.bf16.gmra.mrb[36].mxu1 %vm3184_vm1, %v3223_v3  ;;  %1632 = vmatprep.mubr.bf16.mxu0 %v3328_v62 }
  0x75   : > { %1729 = vmatprep.mubr.bf16.mxu1 %v3373_v33  ;;  %2530 = vmatpush3.bf16.msra.mxu0 %v2680_v28 }
  0x76   : > { %2531 = vmatprep.subr.bf16.mxu0 %v2681_v40  ;;  %2567 = vmatpush3.bf16.msra.mxu1 %v2680_v28 }
  0x77   : > { %2560 = vmatprep.subr.bf16.mxu1 %v2681_v40 }
  0x79   : > { %2532 = vmatpush3.bf16.msra.mxu0 %v2681_v40 }
  0x7a   : > { %2533 = vmatprep.subr.bf16.mxu0 %v2682_v9  ;;  %2568 = vmatpush3.bf16.msra.mxu1 %v2681_v40 }
  0x7b   : > { %1633 = vmatmul.mubr.bf16.gmra.mrb[40].mxu0 %v3292_v21  ;;  %2561 = vmatprep.subr.bf16.mxu1 %v2682_v9 }
  0x7c   : > { %2235 = vmatmul.mubr.msk.bf16.gmra.mrb[40].mxu1 %vm3240_vm6, %v3282_v38  ;;  %1640 = vmatprep.mubr.bf16.mxu0 %v3447_v11 }
  0x7d   : > { %1737 = vmatprep.mubr.bf16.mxu1 %v3449_v14  ;;  %2534 = vmatpush3.bf16.msra.mxu0 %v2682_v9 }
  0x7e   : > { %2535 = vmatprep.subr.bf16.mxu0 %v2683_v35  ;;  %2569 = vmatpush3.bf16.msra.mxu1 %v2682_v9 }
  0x7f   : > { %2562 = vmatprep.subr.bf16.mxu1 %v2683_v35 }
  0x81   : > { %2536 = vmatpush3.bf16.msra.mxu0 %v2683_v35 }
  0x82   : > { %2537 = vmatprep.subr.bf16.mxu0 %v2684_v49  ;;  %2570 = vmatpush3.bf16.msra.mxu1 %v2683_v35 }
  0x83   : > { %1641 = vmatmul.mubr.bf16.gmra.mrb[44].mxu0 %v3373_v33  ;;  %2563 = vmatprep.subr.bf16.mxu1 %v2684_v49 }
  0x84   : > { %2238 = vmatmul.mubr.msk.bf16.gmra.mrb[44].mxu1 %vm3380_vm8, %v3384_v1  ;;  %1648 = vmatprep.mubr.bf16.mxu0 %v3533_v41 }
  0x85   : > { %1745 = vmatprep.mubr.bf16.mxu1 %v3535_v12  ;;  %2538 = vmatpush3.bf16.msra.mxu0 %v2684_v49 }
  0x86   : > { %2539 = vmatprep.subr.bf16.mxu0 %v2685_v63  ;;  %2571 = vmatpush3.bf16.msra.mxu1 %v2684_v49 }
  0x87   : > { %2564 = vmatprep.subr.bf16.mxu1 %v2685_v63 }
  0x89   : > { %2540 = vmatpush3.bf16.msra.mxu0 %v2685_v63 }
  0x8a   : > { %2572 = vmatpush3.bf16.msra.mxu1 %v2685_v63 }
  0x8b   : > { %1649 = vmatmul.mubr.bf16.gmra.mrb[48].mxu0 %v3449_v14 }
  0x8c   : > { %2241 = vmatmul.mubr.msk.bf16.gmra.mrb[48].mxu1 %vm3398_vm13, %v3459_v18  ;;  %1656 = vmatprep.mubr.bf16.mxu0 %v3590_v53 }
  0x8d   : > { %1753 = vmatprep.mubr.bf16.mxu1 %v3592_v54 }
  0x93   : > { %1657 = vmatmul.mubr.bf16.gmra.mrb[52].mxu0 %v3535_v12 }
  0x94   : > { %2244 = vmatmul.mubr.msk.bf16.gmra.mrb[52].mxu1 %vm3496_vm0, %v3538_v5  ;;  %1664 = vmatprep.mubr.bf16.mxu0 %v3658_v25 }
  0x95   : > { %1761 = vmatprep.mubr.bf16.mxu1 %v3684_v47 }
  0x9b   : > { %1665 = vmatmul.mubr.bf16.gmra.mrb[56].mxu0 %v3592_v54 }
  0x9c   : > { %2247 = vmatmul.mubr.msk.bf16.gmra.mrb[56].mxu1 %vm2224_vm3, %v3600_v57  ;;  %1672 = vmatprep.mubr.bf16.mxu0 %v3686_v4 }
  0x9d   : > { %1769 = vmatprep.mubr.bf16.mxu1 %v798_v16 }
  0xa3   : > { %1673 = vmatmul.mubr.bf16.gmra.mrb[60].mxu0 %v3684_v47 }
  0xa4   : > { %2250 = vmatmul.mubr.msk.bf16.gmra.mrb[60].mxu1 %vm2248_vm2, %v3673_v58  ;;  %2541 = vmatprep.mubr.bf16.mxu0 %v3230_v7  ;;  %v3795_v7 = vld [vmem:[%s3956_s2] ss:$0 sm:$0xff] }
  0xa5   : > { %2549 = vmatprep.mubr.bf16.mxu1 %v3590_v53 }
  0xab   : > { %2542 = vmatmul.mubr.bf16.vlgmr.msra.gmra.mrb[64].mxu0 %v3328_v62 }
  0xac   : > { %2550 = vmatmul.mubr.bf16.vlgmr.msra.gmra.mrb[64].mxu1 %v3658_v25  ;;  %2545 = vmatprep.mubr.bf16.mxu0 %v3447_v11 }
  0xad   : > { %2553 = vmatprep.mubr.bf16.mxu1 %v3686_v4 }
  0xb3   : > { %2546 = vmatmul.mubr.bf16.gmra.mrb[68].mxu0 %v3533_v41 }
  0xb4   : > { %2554 = vmatmul.mubr.bf16.gmra.mrb[68].mxu1 %v806_v23 }
  0xfe   : > { %v2269_v3 = vpop.f32.mrb[0].mxu0 }
  0xff   : > { %v2270_v13 = vpop.f32.mrb[1].mxu0  ;;  %v2333_v38 = vpop.f32.mrb[0].mxu1 }
 0x100   : > { %v2271_v21 = vadd.f32 %v2270_v13, %v2269_v3  ;;  %v2272_v62 = vpop.f32.mrb[2].mxu0  ;;  %v2334_v33 = vpop.f32.mrb[1].mxu1 }
 0x101   : > { %v2273_v29 = vpop.f32.mrb[3].mxu0  ;;  %v2335_v1 = vadd.f32 %v2334_v33, %v2333_v38  ;;  %v2336_v51 = vpop.f32.mrb[2].mxu1 }
 0x102   : > { %v1425_v11 = vadd.f32 %v2271_v21, %v3795_v7  ;;  %v2274_v14 = vadd.f32 %v2273_v29, %v2272_v62  ;;  %v2337_v18 = vpop.f32.mrb[3].mxu1 }
 0x103   : > { %v2338_v34 = vadd.f32 %v2337_v18, %v2336_v51 }
 0x104   : > { %v1428_v41 = vadd.f32 %v2274_v14, %v3795_v7  ;;  %v3799_v12 = vadd.f32 %v2335_v1, %v1425_v11 }
 0x106   : > { %v3801_v5 = vadd.f32 %v2338_v34, %v1428_v41  ;;  %v2275_v22 = vpop.f32.mrb[4].mxu0 }
 0x107   : > { %v2276_v26 = vpop.f32.mrb[5].mxu0  ;;  %v2339_v24 = vpop.f32.mrb[4].mxu1 }
 0x108   : > { %v2277_v53 = vadd.f32 %v2276_v26, %v2275_v22  ;;  %v2278_v54 = vpop.f32.mrb[6].mxu0  ;;  %v2340_v57 = vpop.f32.mrb[5].mxu1 }
 0x109   : > { %v2279_v19 = vpop.f32.mrb[7].mxu0  ;;  %v2341_v8 = vadd.f32 %v2340_v57, %v2339_v24  ;;  %v2342_v37 = vpop.f32.mrb[6].mxu1 }
 0x10a   : > { %v1433_v39 = vadd.f32 %v2277_v53, %v3795_v7  ;;  %v2280_v25 = vadd.f32 %v2279_v19, %v2278_v54  ;;  %v2343_v42 = vpop.f32.mrb[7].mxu1 }
 0x10b   : > { %v2344_v45 = vadd.f32 %v2343_v42, %v2342_v37 }
 0x10c   : > { %v1436_v30 = vadd.f32 %v2280_v25, %v3795_v7  ;;  %v3805_v55 = vadd.f32 %v2341_v8, %v1433_v39 }
 0x10e   : > { %v3807_v46 = vadd.f32 %v2344_v45, %v1436_v30  ;;  %v2281_v50 = vpop.f32.mrb[8].mxu0 }
 0x10f   : > { %v2282_v32 = vpop.f32.mrb[9].mxu0  ;;  %v2345_v52 = vpop.f32.mrb[8].mxu1 }
 0x110   : > { %v2283_v31 = vadd.f32 %v2282_v32, %v2281_v50  ;;  %v2284_v43 = vpop.f32.mrb[10].mxu0  ;;  %v2346_v56 = vpop.f32.mrb[9].mxu1 }
 0x111   : > { %v2285_v58 = vpop.f32.mrb[11].mxu0  ;;  %v2347_v59 = vadd.f32 %v2346_v56, %v2345_v52  ;;  %v2348_v36 = vpop.f32.mrb[10].mxu1 }
 0x112   : > { %v1441_v0 = vadd.f32 %v2283_v31, %v3795_v7  ;;  %v2286_v2 = vadd.f32 %v2285_v58, %v2284_v43  ;;  %v2349_v47 = vpop.f32.mrb[11].mxu1 }
 0x113   : > { %v2350_v4 = vadd.f32 %v2349_v47, %v2348_v36 }
 0x114   : > { %v1444_v44 = vadd.f32 %v2286_v2, %v3795_v7  ;;  %v3811_v48 = vadd.f32 %v2347_v59, %v1441_v0 }
 0x116   : > { %v3813_v6 = vadd.f32 %v2350_v4, %v1444_v44  ;;  %v2287_v10 = vpop.f32.mrb[12].mxu0 }
 0x117   : > { %v2288_v15 = vpop.f32.mrb[13].mxu0  ;;  %v2351_v17 = vpop.f32.mrb[12].mxu1 }
 0x118   : > { %v2289_v61 = vadd.f32 %v2288_v15, %v2287_v10  ;;  %v2290_v16 = vpop.f32.mrb[14].mxu0  ;;  %v2352_v20 = vpop.f32.mrb[13].mxu1 }
 0x119   : > { %v2291_v60 = vpop.f32.mrb[15].mxu0  ;;  %v2353_v23 = vadd.f32 %v2352_v20, %v2351_v17  ;;  %v2354_v27 = vpop.f32.mrb[14].mxu1 }
 0x11a   : > { %v1449_v28 = vadd.f32 %v2289_v61, %v3795_v7  ;;  %v2292_v40 = vadd.f32 %v2291_v60, %v2290_v16  ;;  %v2355_v9 = vpop.f32.mrb[15].mxu1 }
 0x11b   : > { %v2356_v35 = vadd.f32 %v2355_v9, %v2354_v27 }
 0x11c   : > { %v1452_v49 = vadd.f32 %v2292_v40, %v3795_v7  ;;  %v3817_v63 = vadd.f32 %v2353_v23, %v1449_v28 }
 0x11e   : > { %v3819_v3 = vadd.f32 %v2356_v35, %v1452_v49  ;;  %v2293_v13 = vpop.f32.mrb[16].mxu0 }
 0x11f   : > { %v2294_v38 = vpop.f32.mrb[17].mxu0  ;;  %v2357_v21 = vpop.f32.mrb[16].mxu1 }
 0x120   : > { %v2295_v62 = vadd.f32 %v2294_v38, %v2293_v13  ;;  %v2296_v33 = vpop.f32.mrb[18].mxu0  ;;  %v2358_v29 = vpop.f32.mrb[17].mxu1 }
 0x121   : > { %v2297_v1 = vpop.f32.mrb[19].mxu0  ;;  %v2359_v51 = vadd.f32 %v2358_v29, %v2357_v21  ;;  %v2360_v11 = vpop.f32.mrb[18].mxu1 }
 0x122   : > { %v1457_v14 = vadd.f32 %v2295_v62, %v3795_v7  ;;  %v2298_v18 = vadd.f32 %v2297_v1, %v2296_v33  ;;  %v2361_v34 = vpop.f32.mrb[19].mxu1 }
 0x123   : > { %v2362_v41 = vadd.f32 %v2361_v34, %v2360_v11 }
 0x124   : > { %v1460_v22 = vadd.f32 %v2298_v18, %v3795_v7  ;;  %v3823_v26 = vadd.f32 %v2359_v51, %v1457_v14 }
 0x126   : > { %v3825_v24 = vadd.f32 %v2362_v41, %v1460_v22  ;;  %v2299_v53 = vpop.f32.mrb[20].mxu0 }
 0x127   : > { %v2300_v54 = vpop.f32.mrb[21].mxu0  ;;  %v2363_v57 = vpop.f32.mrb[20].mxu1 }
 0x128   : > { %v2301_v19 = vadd.f32 %v2300_v54, %v2299_v53  ;;  %v2302_v8 = vpop.f32.mrb[22].mxu0  ;;  %v2364_v37 = vpop.f32.mrb[21].mxu1 }
 0x129   : > { %v2303_v39 = vpop.f32.mrb[23].mxu0  ;;  %v2365_v25 = vadd.f32 %v2364_v37, %v2363_v57  ;;  %v2366_v42 = vpop.f32.mrb[22].mxu1 }
 0x12a   : > { %v1465_v45 = vadd.f32 %v2301_v19, %v3795_v7  ;;  %v2304_v30 = vadd.f32 %v2303_v39, %v2302_v8  ;;  %v2367_v50 = vpop.f32.mrb[23].mxu1 }
 0x12b   : > { %v2368_v32 = vadd.f32 %v2367_v50, %v2366_v42 }
 0x12c   : > { %v1468_v52 = vadd.f32 %v2304_v30, %v3795_v7  ;;  %v3829_v31 = vadd.f32 %v2365_v25, %v1465_v45 }
 0x12e   : > { %v3831_v43 = vadd.f32 %v2368_v32, %v1468_v52  ;;  %v2305_v56 = vpop.f32.mrb[24].mxu0 }
 0x12f   : > { %v2306_v58 = vpop.f32.mrb[25].mxu0  ;;  %v2369_v59 = vpop.f32.mrb[24].mxu1 }
 0x130   : > { %v2307_v36 = vadd.f32 %v2306_v58, %v2305_v56  ;;  %v2308_v0 = vpop.f32.mrb[26].mxu0  ;;  %v2370_v2 = vpop.f32.mrb[25].mxu1 }
 0x131   : > { %v2309_v47 = vpop.f32.mrb[27].mxu0  ;;  %v2371_v4 = vadd.f32 %v2370_v2, %v2369_v59  ;;  %v2372_v44 = vpop.f32.mrb[26].mxu1 }
 0x132   : > { %v1473_v10 = vadd.f32 %v2307_v36, %v3795_v7  ;;  %v2310_v15 = vadd.f32 %v2309_v47, %v2308_v0  ;;  %v2373_v17 = vpop.f32.mrb[27].mxu1 }
 0x133   : > { %v2374_v61 = vadd.f32 %v2373_v17, %v2372_v44 }
 0x134   : > { %v1476_v16 = vadd.f32 %v2310_v15, %v3795_v7  ;;  %v3835_v20 = vadd.f32 %v2371_v4, %v1473_v10 }
 0x136   : > { %v3837_v60 = vadd.f32 %v2374_v61, %v1476_v16  ;;  %v2311_v23 = vpop.f32.mrb[28].mxu0 }
 0x137   : > { %v2312_v27 = vpop.f32.mrb[29].mxu0  ;;  %v2375_v28 = vpop.f32.mrb[28].mxu1 }
 0x138   : > { %v2313_v40 = vadd.f32 %v2312_v27, %v2311_v23  ;;  %v2314_v9 = vpop.f32.mrb[30].mxu0  ;;  %v2376_v35 = vpop.f32.mrb[29].mxu1 }
 0x139   : > { %v2315_v49 = vpop.f32.mrb[31].mxu0  ;;  %v2377_v13 = vadd.f32 %v2376_v35, %v2375_v28  ;;  %v2378_v38 = vpop.f32.mrb[30].mxu1 }
 0x13a   : > { %v1481_v21 = vadd.f32 %v2313_v40, %v3795_v7  ;;  %v2316_v62 = vadd.f32 %v2315_v49, %v2314_v9  ;;  %v2379_v33 = vpop.f32.mrb[31].mxu1 }
 0x13b   : > { %v2380_v29 = vadd.f32 %v2379_v33, %v2378_v38 }
 0x13c   : > { %v1484_v1 = vadd.f32 %v2316_v62, %v3795_v7  ;;  %v3841_v51 = vadd.f32 %v2377_v13, %v1481_v21 }
 0x13e   : > { %v3843_v11 = vadd.f32 %v2380_v29, %v1484_v1  ;;  %v2397_v14 = vpop.f32.mrb[32].mxu0 }
 0x13f   : > { %v2398_v18 = vpop.f32.mrb[33].mxu0  ;;  %v2461_v34 = vpop.f32.mrb[32].mxu1 }
 0x140   : > { %v2399_v41 = vadd.f32 %v2398_v18, %v2397_v14  ;;  %v2400_v22 = vpop.f32.mrb[34].mxu0  ;;  %v2462_v53 = vpop.f32.mrb[33].mxu1 }
 0x141   : > { %v2401_v54 = vpop.f32.mrb[35].mxu0  ;;  %v2463_v57 = vadd.f32 %v2462_v53, %v2461_v34  ;;  %v2464_v19 = vpop.f32.mrb[34].mxu1 }
 0x142   : > { %v1619_v8 = vadd.f32 %v2399_v41, %v3799_v12  ;;  %v2402_v37 = vadd.f32 %v2401_v54, %v2400_v22  ;;  %v2465_v39 = vpop.f32.mrb[35].mxu1 }
 0x143   : > { %v2466_v25 = vadd.f32 %v2465_v39, %v2464_v19 }
 0x144   : > { %v1622_v7 = vadd.f32 %v2402_v37, %v3801_v5  ;;  %v3847_v42 = vadd.f32 %v2463_v57, %v1619_v8 }
 0x146   : > { %v2403_v45 = vpop.f32.mrb[36].mxu0  ;;  %v3849_v30 = vadd.f32 %v2466_v25, %v1622_v7 }
 0x147   : > { %v2404_v50 = vpop.f32.mrb[37].mxu0  ;;  %v2467_v32 = vpop.f32.mrb[36].mxu1 }
 0x148   : > { %v2405_v52 = vadd.f32 %v2404_v50, %v2403_v45  ;;  %v2406_v56 = vpop.f32.mrb[38].mxu0  ;;  %v2468_v58 = vpop.f32.mrb[37].mxu1 }
 0x149   : > { %v2407_v59 = vpop.f32.mrb[39].mxu0  ;;  %v2469_v36 = vadd.f32 %v2468_v58, %v2467_v32  ;;  %v2470_v0 = vpop.f32.mrb[38].mxu1 }
 0x14a   : > { %v1627_v12 = vadd.f32 %v2405_v52, %v3805_v55  ;;  %v2408_v2 = vadd.f32 %v2407_v59, %v2406_v56  ;;  %v2471_v47 = vpop.f32.mrb[39].mxu1 }
 0x14b   : > { %v2472_v4 = vadd.f32 %v2471_v47, %v2470_v0 }
 0x14c   : > { %v1630_v5 = vadd.f32 %v2408_v2, %v3807_v46  ;;  %v3853_v44 = vadd.f32 %v2469_v36, %v1627_v12 }
 0x14e   : > { %v2409_v10 = vpop.f32.mrb[40].mxu0  ;;  %v3855_v15 = vadd.f32 %v2472_v4, %v1630_v5 }
 0x14f   : > { %v2410_v17 = vpop.f32.mrb[41].mxu0  ;;  %v2473_v61 = vpop.f32.mrb[40].mxu1 }
 0x150   : > { %v2411_v16 = vadd.f32 %v2410_v17, %v2409_v10  ;;  %v2412_v23 = vpop.f32.mrb[42].mxu0  ;;  %v2474_v27 = vpop.f32.mrb[41].mxu1 }
 0x151   : > { %v2413_v28 = vpop.f32.mrb[43].mxu0  ;;  %v2475_v40 = vadd.f32 %v2474_v27, %v2473_v61  ;;  %v2476_v9 = vpop.f32.mrb[42].mxu1 }
 0x152   : > { %v1635_v55 = vadd.f32 %v2411_v16, %v3811_v48  ;;  %v2414_v35 = vadd.f32 %v2413_v28, %v2412_v23  ;;  %v2477_v49 = vpop.f32.mrb[43].mxu1 }
 0x153   : > { %v2478_v13 = vadd.f32 %v2477_v49, %v2476_v9 }
 0x154   : > { %v1638_v46 = vadd.f32 %v2414_v35, %v3813_v6  ;;  %v3859_v38 = vadd.f32 %v2475_v40, %v1635_v55 }
 0x156   : > { %v2415_v21 = vpop.f32.mrb[44].mxu0  ;;  %v3861_v62 = vadd.f32 %v2478_v13, %v1638_v46 }
 0x157   : > { %v2416_v33 = vpop.f32.mrb[45].mxu0  ;;  %v2479_v29 = vpop.f32.mrb[44].mxu1 }
 0x158   : > { %v2417_v1 = vadd.f32 %v2416_v33, %v2415_v21  ;;  %v2418_v14 = vpop.f32.mrb[46].mxu0  ;;  %v2480_v18 = vpop.f32.mrb[45].mxu1 }
 0x159   : > { %v2419_v34 = vpop.f32.mrb[47].mxu0  ;;  %v2481_v41 = vadd.f32 %v2480_v18, %v2479_v29  ;;  %v2482_v22 = vpop.f32.mrb[46].mxu1 }
 0x15a   : > { %v1643_v48 = vadd.f32 %v2417_v1, %v3817_v63  ;;  %v2420_v53 = vadd.f32 %v2419_v34, %v2418_v14  ;;  %v2483_v54 = vpop.f32.mrb[47].mxu1 }
 0x15b   : > { %v2484_v57 = vadd.f32 %v2483_v54, %v2482_v22 }
 0x15c   : > { %v1646_v6 = vadd.f32 %v2420_v53, %v3819_v3  ;;  %v3865_v19 = vadd.f32 %v2481_v41, %v1643_v48 }
 0x15e   : > { %v2421_v8 = vpop.f32.mrb[48].mxu0  ;;  %v3867_v37 = vadd.f32 %v2484_v57, %v1646_v6 }
 0x15f   : > { %v2422_v39 = vpop.f32.mrb[49].mxu0  ;;  %v2485_v25 = vpop.f32.mrb[48].mxu1 }
 0x160   : > { %v2423_v7 = vadd.f32 %v2422_v39, %v2421_v8  ;;  %v2424_v45 = vpop.f32.mrb[50].mxu0  ;;  %v2486_v50 = vpop.f32.mrb[49].mxu1 }
 0x161   : > { %v2425_v32 = vpop.f32.mrb[51].mxu0  ;;  %v2487_v52 = vadd.f32 %v2486_v50, %v2485_v25  ;;  %v2488_v56 = vpop.f32.mrb[50].mxu1 }
 0x162   : > { %v1651_v63 = vadd.f32 %v2423_v7, %v3823_v26  ;;  %v2426_v58 = vadd.f32 %v2425_v32, %v2424_v45  ;;  %v2489_v59 = vpop.f32.mrb[51].mxu1 }
 0x163   : > { %v2490_v36 = vadd.f32 %v2489_v59, %v2488_v56 }
 0x164   : > { %v1654_v3 = vadd.f32 %v2426_v58, %v3825_v24  ;;  %v3871_v0 = vadd.f32 %v2487_v52, %v1651_v63 }
 0x166   : > { %v2427_v12 = vpop.f32.mrb[52].mxu0  ;;  %v3873_v2 = vadd.f32 %v2490_v36, %v1654_v3 }
 0x167   : > { %v2428_v47 = vpop.f32.mrb[53].mxu0  ;;  %v2491_v4 = vpop.f32.mrb[52].mxu1 }
 0x168   : > { %v2429_v5 = vadd.f32 %v2428_v47, %v2427_v12  ;;  %v2430_v10 = vpop.f32.mrb[54].mxu0  ;;  %v2492_v17 = vpop.f32.mrb[53].mxu1 }
 0x169   : > { %v2431_v61 = vpop.f32.mrb[55].mxu0  ;;  %v2493_v16 = vadd.f32 %v2492_v17, %v2491_v4  ;;  %v2494_v26 = vpop.f32.mrb[54].mxu1 }
 0x16a   : > { %v1659_v23 = vadd.f32 %v2429_v5, %v3829_v31  ;;  %v2432_v27 = vadd.f32 %v2431_v61, %v2430_v10  ;;  %v2495_v28 = vpop.f32.mrb[55].mxu1 }
 0x16b   : > { %v2496_v24 = vadd.f32 %v2495_v28, %v2494_v26 }
 0x16c   : > { %v1662_v40 = vadd.f32 %v2432_v27, %v3831_v43  ;;  %v1756_v9 = vadd.f32 %v2493_v16, %v1659_v23 }
 0x16e   : > { %v2433_v55 = vpop.f32.mrb[56].mxu0  ;;  %v1759_v35 = vadd.f32 %v2496_v24, %v1662_v40 }
 0x16f   : > { %v2434_v49 = vpop.f32.mrb[57].mxu0  ;;  %v2497_v13 = vpop.f32.mrb[56].mxu1 }
 0x170   : > { %v2435_v46 = vadd.f32 %v2434_v49, %v2433_v55  ;;  %v2436_v21 = vpop.f32.mrb[58].mxu0  ;;  %v2498_v33 = vpop.f32.mrb[57].mxu1 }
 0x171   : > { %v2437_v29 = vpop.f32.mrb[59].mxu0  ;;  %v2499_v1 = vadd.f32 %v2498_v33, %v2497_v13  ;;  %v2500_v14 = vpop.f32.mrb[58].mxu1 }
 0x172   : > { %v1667_v31 = vadd.f32 %v2435_v46, %v3835_v20  ;;  %v2438_v18 = vadd.f32 %v2437_v29, %v2436_v21  ;;  %v2501_v34 = vpop.f32.mrb[59].mxu1 }
 0x173   : > { %v2502_v41 = vadd.f32 %v2501_v34, %v2500_v14 }
 0x174   : > { %v1670_v43 = vadd.f32 %v2438_v18, %v3837_v60  ;;  %v3881_v22 = vadd.f32 %v2499_v1, %v1667_v31 }
 0x176   : > { %v2439_v48 = vpop.f32.mrb[60].mxu0  ;;  %v3884_v53 = vadd.f32 %v2502_v41, %v1670_v43 }
 0x177   : > { %v2440_v54 = vpop.f32.mrb[61].mxu0  ;;  %v2503_v57 = vpop.f32.mrb[60].mxu1 }
 0x178   : > { %v2441_v6 = vadd.f32 %v2440_v54, %v2439_v48  ;;  %v2442_v8 = vpop.f32.mrb[62].mxu0  ;;  %v2504_v39 = vpop.f32.mrb[61].mxu1 }
 0x179   : > { %v2443_v25 = vpop.f32.mrb[63].mxu0  ;;  %v2505_v20 = vadd.f32 %v2504_v39, %v2503_v57  ;;  %v2506_v7 = vpop.f32.mrb[62].mxu1 }
 0x17a   : > { %v1675_v45 = vadd.f32 %v2441_v6, %v3841_v51  ;;  %v2444_v50 = vadd.f32 %v2443_v25, %v2442_v8  ;;  %v2507_v60 = vpop.f32.mrb[63].mxu1 }
 0x17b   : > { %v2508_v32 = vadd.f32 %v2507_v60, %v2506_v7 }
 0x17c   : > { %v1678_v52 = vadd.f32 %v2444_v50, %v3843_v11  ;;  %v1772_v56 = vadd.f32 %v2505_v20, %v1675_v45 }
 0x17e   : > { %v2543_v63 = vpop.f32.mrb[64].mxu0  ;;  %v1775_v58 = vadd.f32 %v2508_v32, %v1678_v52 }
 0x17f   : > { %v1821_v59 = vadd.f32 %v2543_v63, %v3853_v44  ;;  %v2551_v51 = vpop.f32.mrb[64].mxu1  ;;  %v1812_v36 = vpop.f32.mrb[65].mxu0 }
 0x180   : > { %v3894_v3 = vadd.f32 %v2551_v51, %v1756_v9  ;;  %v1813_v11 = vadd.f32 %v1812_v36, %v3847_v42  ;;  %v1844_v12 = vpop.f32.mrb[65].mxu1  ;;  %v2544_v47 = vpop.f32.mrb[66].mxu0 }
 0x181   : > { %1877 = vst [vmem:[%s3891_s11 + $0x10] sm:$0xff] %v1821_v59  ;;  %v1845_v4 = vadd.f32 %v1844_v12, %v3871_v0  ;;  %v1824_v5 = vadd.f32 %v2544_v47, %v3855_v15  ;;  %v2552_v10 = vpop.f32.mrb[66].mxu1  ;;  %v1815_v44 = vpop.f32.mrb[67].mxu0  ;;  %v1915_v23 = vmul.f32 %v1821_v59, %v1821_v59 }
 0x182   : > { %1885 = vst [vmem:[%s3891_s11 + $0x50] sm:$0xff] %v3894_v3  ;;  %1875 = vst [vmem:[%s3891_s11] sm:$0xff] %v1813_v11  ;;  %v3903_v17 = vadd.f32 %v2552_v10, %v1759_v35  ;;  %v1816_v61 = vadd.f32 %v1815_v44, %v3849_v30  ;;  %v1847_v42 = vpop.f32.mrb[67].mxu1  ;;  %v1913_v26 = vmul.f32 %v1813_v11, %v1813_v11 }
 0x183   : > { %1883 = vst [vmem:[%s3891_s11 + $0x40] sm:$0xff] %v1845_v4  ;;  %1878 = vst [vmem:[%s3891_s11 + $0x18] sm:$0xff] %v1824_v5  ;;  %v1848_v16 = vadd.f32 %v1847_v42, %v3873_v2  ;;  %v1916_v40 = vmul.f32 %v1824_v5, %v1824_v5  ;;  %v1921_v20 = vmul.f32 %v1845_v4, %v1845_v4 }
 0x184   : > { %1886 = vst [vmem:[%s3891_s11 + $0x58] sm:$0xff] %v3903_v17  ;;  %1876 = vst [vmem:[%s3891_s11 + $0x8] sm:$0xff] %v1816_v61  ;;  %v1891_v15 = vadd.f32 %v1816_v61, %v1813_v11  ;;  %v1914_v0 = vmul.f32 %v1816_v61, %v1816_v61 }
 0x185   : > { %1884 = vst [vmem:[%s3891_s11 + $0x48] sm:$0xff] %v1848_v16  ;;  %v1922_v50 = vmul.f32 %v1848_v16, %v1848_v16 }
 0x186   : > { %v1892_v27 = vadd.f32 %v1891_v15, %v1821_v59  ;;  %v1929_v28 = vadd.f32 %v1914_v0, %v1913_v26  ;;  %v2547_v24 = vpop.f32.mrb[68].mxu0 }
 0x187   : > { %v1837_v30 = vadd.f32 %v2547_v24, %v3865_v19  ;;  %v2555_v9 = vpop.f32.mrb[68].mxu1  ;;  %v1828_v55 = vpop.f32.mrb[69].mxu0 }
 0x188   : > { %v1930_v2 = vadd.f32 %v1929_v28, %v1915_v23  ;;  %v1869_v35 = vadd.f32 %v2555_v9, %v1772_v56  ;;  %v1829_v49 = vadd.f32 %v1828_v55, %v3859_v38  ;;  %v1893_v13 = vadd.f32 %v1892_v27, %v1824_v5  ;;  %v1860_v46 = vpop.f32.mrb[69].mxu1  ;;  %v2548_v21 = vpop.f32.mrb[70].mxu0 }
 0x189   : > { %1881 = vst [vmem:[%s3891_s11 + $0x30] sm:$0xff] %v1837_v30  ;;  %v1861_v33 = vadd.f32 %v1860_v46, %v3881_v22  ;;  %v1840_v29 = vadd.f32 %v2548_v21, %v3867_v37  ;;  %v2556_v1 = vpop.f32.mrb[70].mxu1  ;;  %v1831_v19 = vpop.f32.mrb[71].mxu0  ;;  %v1919_v54 = vmul.f32 %v1837_v30, %v1837_v30  ;;  %v1924_v56 = vmul.f32 %v3903_v17, %v3903_v17 }
 0x18a   : > { %1889 = vst [vmem:[%s3891_s11 + $0x70] sm:$0xff] %v1869_v35  ;;  %1879 = vst [vmem:[%s3891_s11 + $0x20] sm:$0xff] %v1829_v49  ;;  %v1894_v14 = vadd.f32 %v1893_v13, %v1829_v49  ;;  %v1917_v31 = vmul.f32 %v1829_v49, %v1829_v49  ;;  %v1931_v18 = vadd.f32 %v1930_v2, %v1916_v40  ;;  %v1863_v38 = vpop.f32.mrb[71].mxu1 }
 0x18b   : > { %1887 = vst [vmem:[%s3891_s11 + $0x60] sm:$0xff] %v1861_v33  ;;  %1882 = vst [vmem:[%s3891_s11 + $0x38] sm:$0xff] %v1840_v29  ;;  %v1872_v34 = vadd.f32 %v2556_v1, %v1775_v58  ;;  %v1832_v41 = vadd.f32 %v1831_v19, %v3861_v62  ;;  %v1864_v22 = vadd.f32 %v1863_v38, %v3884_v53 }
 0x18c   : > { %v1932_v43 = vadd.f32 %v1931_v18, %v1917_v31  ;;  %v1920_v8 = vmul.f32 %v1840_v29, %v1840_v29  ;;  %v1923_v53 = vmul.f32 %v3894_v3, %v3894_v3  ;;  %v1925_v59 = vmul.f32 %v1861_v33, %v1861_v33 }
 0x18d   : > { %1890 = vst [vmem:[%s3891_s11 + $0x78] sm:$0xff] %v1872_v34  ;;  %1880 = vst [vmem:[%s3891_s11 + $0x28] sm:$0xff] %v1832_v41  ;;  %v1895_v37 = vadd.f32 %v1894_v14, %v1832_v41  ;;  %v1918_v48 = vmul.f32 %v1832_v41, %v1832_v41  ;;  %v1926_v12 = vmul.f32 %v1864_v22, %v1864_v22 }
 0x18e   : > { %1888 = vst [vmem:[%s3891_s11 + $0x68] sm:$0xff] %v1864_v22 }
 0x18f   : > { %v1896_v57 = vadd.f32 %v1895_v37, %v1837_v30  ;;  %v1933_v6 = vadd.f32 %v1932_v43, %v1918_v48 }
 0x191   : > { %v1897_v39 = vadd.f32 %v1896_v57, %v1840_v29  ;;  %v1934_v25 = vadd.f32 %v1933_v6, %v1919_v54 }
 0x193   : > { %v1898_v7 = vadd.f32 %v1897_v39, %v1845_v4  ;;  %v1935_v45 = vadd.f32 %v1934_v25, %v1920_v8  ;;  %v1927_v4 = vmul.f32 %v1869_v35, %v1869_v35 }
 0x195   : > { %v1936_v62 = vadd.f32 %v1935_v45, %v1921_v20  ;;  %v1899_v60 = vadd.f32 %v1898_v7, %v1848_v16 }
 0x197   : > { %v1900_v32 = vadd.f32 %v1899_v60, %v3894_v3  ;;  %v1937_v52 = vadd.f32 %v1936_v62, %v1922_v50  ;;  %v1928_v3 = vmul.f32 %v1872_v34, %v1872_v34 }
 0x199   : > { %v1901_v63 = vadd.f32 %v1900_v32, %v3903_v17  ;;  %v1938_v58 = vadd.f32 %v1937_v52, %v1923_v53 }
 0x19b   : > { %v1902_v51 = vadd.f32 %v1901_v63, %v1861_v33  ;;  %v1939_v36 = vadd.f32 %v1938_v58, %v1924_v56 }
 0x19d   : > { %v1903_v11 = vadd.f32 %v1902_v51, %v1864_v22  ;;  %v1940_v47 = vadd.f32 %v1939_v36, %v1925_v59 }
 0x19f   : > { %v1904_v5 = vadd.f32 %v1903_v11, %v1869_v35  ;;  %v1941_v10 = vadd.f32 %v1940_v47, %v1926_v12 }
 0x1a1   : > { %v1905_v44 = vadd.f32 %v1904_v5, %v1872_v34  ;;  %v1942_v61 = vadd.f32 %v1941_v10, %v1927_v4 }
 0x1a3   : > { %v1906_v42 = vrot.slane %v1905_v44, 4  ;;  %v1943_v16 = vadd.f32 %v1942_v61, %v1928_v3 }
 0x1a5   : > { %v1907_v17 = vadd.f32 %v1906_v42, %v1905_v44  ;;  %v1944_v26 = vrot.slane %v1943_v16, 4 }
 0x1a7   : > { %v1908_v15 = vrot.slane %v1907_v17, 2  ;;  %v1945_v0 = vadd.f32 %v1944_v26, %v1943_v16 }
 0x1a9   : > { %v1909_v23 = vadd.f32 %v1908_v15, %v1907_v17  ;;  %v1946_v27 = vrot.slane %v1945_v0, 2 }
 0x1ab   : > { %v1910_v28 = vrot.slane %v1909_v23, 1  ;;  %v1947_v24 = vadd.f32 %v1946_v27, %v1945_v0 }
 0x1ad   : > { %v1911_v40 = vadd.f32 %v1910_v28, %v1909_v23  ;;  %v1948_v30 = vrot.slane %v1947_v24, 1 }
 0x1af   : > { %1912 = vst [vmem:[%s270_s25] sm:$0x1] %v1911_v40  ;;  %v1949_v9 = vadd.f32 %v1948_v30, %v1947_v24 }
 0x1b1   : > { %1950 = vst [vmem:[%s270_s25 + $0x1] sm:$0x1] %v1949_v9 }
 0x1b2 PF: > { %s16_s22 = sadd.s32 1, %s2724_s22   ;;  %s4047_s18 = smov %s2716_s20 }
 0x1b3   : > { %p13_p8 = scmp.ge.s32.totalorder %s16_s22, 6   ;;  %s4048_s19 = smov %s2720_s21 }
 0x1b4   : > { %s4049_s20 = smov %s4052_s23  ;;  %s4050_s21 = smov %s4056_s24 }
 0x1b5   :  { %15 = sbr.rel (!%p13_p8) target bundleno = 3 (0x3), region = 79 }

</bundles_post_ra>
